<compile_context>
chip_gen: v7x
topology: tpu7x:2x2x1
jax: 0.10.0
libtpu: 0.0.40
codegen_flags: <defaults>
</compile_context>

<pallas_src>
import functools

import numpy as np
import jax
import jax.numpy as jnp
from jax import lax
from jax.experimental import pallas as pl
from jax.experimental.pallas import tpu as pltpu

KMAX_FRAC = 0.05   # TopKMaxPooling(0.05)


# ----------------------------------------------------------------------------
# Host-side constant builders (tiny, folded under jit)
# ----------------------------------------------------------------------------
def _interp_matrix_1d(n_out, n_in):
    """(n_out, n_in) linear-interpolation weights, align_corners=True."""
    if n_in == 1:
        return jnp.ones((n_out, 1), jnp.float32)
    scale = (n_in - 1) / max(n_out - 1, 1)
    src = jnp.arange(n_out, dtype=jnp.float32) * scale
    lo = jnp.clip(jnp.floor(src), 0, n_in - 1)
    hi = jnp.clip(lo + 1, 0, n_in - 1)
    frac = src - lo
    lo_i = lo.astype(jnp.int32)
    hi_i = hi.astype(jnp.int32)
    return (jax.nn.one_hot(lo_i, n_in, dtype=jnp.float32) * (1.0 - frac)[:, None]
            + jax.nn.one_hot(hi_i, n_in, dtype=jnp.float32) * frac[:, None])


def _upsample_matrix(hw_in, hw_out):
    """(Ho*Wo, Hi*Wi) bilinear (align_corners=True) upsampling matrix."""
    (hi, wi), (ho, wo) = hw_in, hw_out
    return jnp.kron(_interp_matrix_1d(ho, hi), _interp_matrix_1d(wo, wi))


def _column_masks(H, W):
    """(H*W, 2) f32: col0 = 'reading column ow-1 is valid', col1 = 'ow+1 is valid'."""
    ow = jnp.tile(jnp.arange(W), H)
    left = (ow >= 1).astype(jnp.float32)
    right = (ow <= W - 2).astype(jnp.float32)
    return jnp.stack([left, right], axis=1)


def _get_positive_k(k, n):
    """Exact copy of TopKMaxPooling.get_positive_k (static Python)."""
    if k <= 0:
        return 0
    elif k < 1:
        return round(k * n)
    elif k > n:
        return int(n)
    else:
        return int(k)


# ----------------------------------------------------------------------------
# In-kernel helper: 3x3 conv (+bias) -> 1x1 conv (+bias) -> TopKMaxPooling
#   p: (L, C) f32 rows of one batch.  Writes mean-of-top-k scores to o_ref[0].
# ----------------------------------------------------------------------------
def _smooth_fc_topk(p, cm_ref, ws_ref, bs_ref, wf_ref, bf_ref, o_ref, pad_ref,
                    *, W, kmax):
    L, _ = p.shape
    P = W + 1                                     # halo rows, covers any |dh*W + dw|

    # Zero-padded copy of p in VMEM scratch: pad[P + j] = p[j], zeros elsewhere.
    pad_ref[...] = jnp.zeros_like(pad_ref)
    pad_ref[pl.ds(P, L), :] = p

    mask_l = cm_ref[:, 0:1]                       # (L, 1) valid for dw = -1
    mask_r = cm_ref[:, 1:2]                       # (L, 1) valid for dw = +1

    # 3x3 conv (padding=1) as 9 shifted-slice taps; each tap one MXU matmul.
    acc = None
    tap = 0
    for dh in (-1, 0, 1):
        for dw in (-1, 0, 1):
            xt = pad_ref[pl.ds(P + dh * W + dw, L), :]          # (L, Cin)
            if dw == -1:
                xt = xt * mask_l
            elif dw == 1:
                xt = xt * mask_r
            t = jnp.dot(xt, ws_ref[tap], preferred_element_type=jnp.float32)
            acc = t if acc is None else acc + t
            tap += 1
    h = acc + bs_ref[...]                                        # (L, Cout)

    # 1x1 conv, produced lane-dense as (num_classes, L).
    s = lax.dot_general(wf_ref[...], h, (((1,), (1,)), ((), ())),
                        preferred_element_type=jnp.float32) + bf_ref[...]

    # TopKMaxPooling: mean of the kmax largest values along the lane axis
    # (iterative extraction of one max occurrence per step == torch.sort top-k
    #  with duplicate values counted separately).
    iota = lax.broadcasted_iota(jnp.int32, s.shape, 1)
    vals = s
    total = jnp.zeros((s.shape[0], 1), jnp.float32)
    for _ in range(kmax):
        m = jnp.max(vals, axis=-1, keepdims=True)
        total = total + m
        first = jnp.min(jnp.where(vals == m, iota, L), axis=-1, keepdims=True)
        vals = jnp.where(iota == first, -jnp.inf, vals)
    o_ref[0] = (total * (1.0 / kmax)).astype(o_ref.dtype)


# ----------------------------------------------------------------------------
# Kernels
# ----------------------------------------------------------------------------
def score_kernel(x_ref, cm_ref, ws_ref, bs_ref, wf_ref, bf_ref, o_ref, pad_ref,
                 *, W, kmax):
    _smooth_fc_topk(x_ref[0].astype(jnp.float32), cm_ref, ws_ref, bs_ref,
                    wf_ref, bf_ref, o_ref, pad_ref, W=W, kmax=kmax)


def up_score_kernel(m_ref, x_ref, y_ref, cm_ref, ws_ref, bs_ref, wf_ref, bf_ref,
                    p_ref, o_ref, pad_ref, *, W, kmax):
    # Fused bilinear upsample (align_corners=True) + residual add (one MXU matmul).
    p = jnp.dot(m_ref[...], x_ref[0].astype(jnp.float32),
                preferred_element_type=jnp.float32) + y_ref[0].astype(jnp.float32)
    p_ref[0] = p.astype(p_ref.dtype)
    # Score branch consumes p while it is still on-chip.
    _smooth_fc_topk(p, cm_ref, ws_ref, bs_ref, wf_ref, bf_ref, o_ref, pad_ref,
                    W=W, kmax=kmax)


# ----------------------------------------------------------------------------
# Wrappers
# ----------------------------------------------------------------------------
def _branch_consts(smooth, fc, C):
    cout = smooth['w'].shape[0]
    nc = fc['w'].shape[0]
    # (Cout, Cin, 3, 3) -> (kh, kw, Cin, Cout) -> (9, Cin, Cout); tap = kh*3 + kw
    ws = jnp.transpose(smooth['w'], (2, 3, 1, 0)).reshape(9, C, cout)
    bs = smooth['b'].reshape(1, cout)
    wf = fc['w'].reshape(nc, cout)
    bf = fc['b'].reshape(nc, 1)
    return ws, bs, wf, bf, cout, nc


def score_only(p_rows, H, W, smooth, fc):
    """p_rows: (B, H*W, C) -> (B, num_classes)."""
    B, L, C = p_rows.shape
    kmax = _get_positive_k(KMAX_FRAC, L)
    ws, bs, wf, bf, cout, nc = _branch_consts(smooth, fc, C)
    cm = _column_masks(H, W)
    score = pl.pallas_call(
        functools.partial(score_kernel, W=W, kmax=kmax),
        out_shape=jax.ShapeDtypeStruct((B, nc, 1), p_rows.dtype),
        grid=(B,),
        in_specs=[pl.BlockSpec((1, L, C), lambda b: (b, 0, 0)),
                  pl.BlockSpec((L, 2), lambda b: (0, 0)),
                  pl.BlockSpec((9, C, cout), lambda b: (0, 0, 0)),
                  pl.BlockSpec((1, cout), lambda b: (0, 0)),
                  pl.BlockSpec((nc, cout), lambda b: (0, 0)),
                  pl.BlockSpec((nc, 1), lambda b: (0, 0))],
        out_specs=pl.BlockSpec((1, nc, 1), lambda b: (b, 0, 0)),
        scratch_shapes=[pltpu.VMEM((L + 2 * (W + 1), C), jnp.float32)],
        compiler_params=pltpu.CompilerParams(dimension_semantics=("parallel",)),
    )(p_rows, cm, ws, bs, wf, bf)
    return score.reshape(B, nc)


def upsample_score(x_rows, y_rows, hw_in, hw_out, smooth, fc):
    """x_rows: coarse (B, Li, C), y_rows: residual (B, Lo, C).
    Returns (p_rows (B, Lo, C), score (B, num_classes))."""
    B, Li, C = x_rows.shape
    Lo = y_rows.shape[1]
    H, W = hw_out
    kmax = _get_positive_k(KMAX_FRAC, Lo)
    ws, bs, wf, bf, cout, nc = _branch_consts(smooth, fc, C)
    m = _upsample_matrix(hw_in, hw_out)
    cm = _column_masks(H, W)
    p, score = pl.pallas_call(
        functools.partial(up_score_kernel, W=W, kmax=kmax),
        out_shape=(jax.ShapeDtypeStruct((B, Lo, C), y_rows.dtype),
                   jax.ShapeDtypeStruct((B, nc, 1), y_rows.dtype)),
        grid=(B,),
        in_specs=[pl.BlockSpec((Lo, Li), lambda b: (0, 0)),
                  pl.BlockSpec((1, Li, C), lambda b: (b, 0, 0)),
                  pl.BlockSpec((1, Lo, C), lambda b: (b, 0, 0)),
                  pl.BlockSpec((Lo, 2), lambda b: (0, 0)),
                  pl.BlockSpec((9, C, cout), lambda b: (0, 0, 0)),
                  pl.BlockSpec((1, cout), lambda b: (0, 0)),
                  pl.BlockSpec((nc, cout), lambda b: (0, 0)),
                  pl.BlockSpec((nc, 1), lambda b: (0, 0))],
        out_specs=[pl.BlockSpec((1, Lo, C), lambda b: (b, 0, 0)),
                   pl.BlockSpec((1, nc, 1), lambda b: (b, 0, 0))],
        scratch_shapes=[pltpu.VMEM((Lo + 2 * (W + 1), C), jnp.float32)],
        compiler_params=pltpu.CompilerParams(dimension_semantics=("parallel",)),
    )(m, x_rows, y_rows, cm, ws, bs, wf, bf)
    return p, score.reshape(B, nc)


# ----------------------------------------------------------------------------
# FeaturePyramid.forward
# ----------------------------------------------------------------------------
def feature_pyramid_forward(f1, f2, f3, params):
    """f1 (finest), f2, f3 (coarsest) in NCHW; returns (score1, score2, score3, p1)."""
    B, C, H1, W1 = f1.shape
    H2, W2 = f2.shape[2], f2.shape[3]
    H3, W3 = f3.shape[2], f3.shape[3]

    # NCHW -> (B, H*W, C) rows; kept end-to-end.
    t1 = jnp.transpose(f1, (0, 2, 3, 1)).reshape(B, H1 * W1, C)
    t2 = jnp.transpose(f2, (0, 2, 3, 1)).reshape(B, H2 * W2, C)
    t3 = jnp.transpose(f3, (0, 2, 3, 1)).reshape(B, H3 * W3, C)

    score3 = score_only(t3, H3, W3, params['smooth3'], params['fc3'])
    p2, score2 = upsample_score(t3, t2, (H3, W3), (H2, W2),
                                params['smooth2'], params['fc2'])
    p1, score1 = upsample_score(p2, t1, (H2, W2), (H1, W1),
                                params['smooth1'], params['fc1'])

    # Only the p1 output goes back to NCHW (module boundary).
    p1_nchw = jnp.transpose(p1.reshape(B, H1, W1, C), (0, 3, 1, 2))
    return score1, score2, score3, p1_nchw


# ----------------------------------------------------------------------------
# Parameter construction (PyTorch shapes)
# ----------------------------------------------------------------------------
def make_params(key, feature_dim, num_classes):
    ks = iter(jax.random.split(key, 12))

    def conv3(cin, cout):
        return dict(w=0.05 * jax.random.normal(next(ks), (cout, cin, 3, 3), jnp.float32),
                    b=0.05 * jax.random.normal(next(ks), (cout,), jnp.float32))

    def conv1(cin, cout):
        return dict(w=0.05 * jax.random.normal(next(ks), (cout, cin, 1, 1), jnp.float32),
                    b=0.05 * jax.random.normal(next(ks), (cout,), jnp.float32))

    return dict(
        smooth1=conv3(feature_dim, feature_dim),
        smooth2=conv3(feature_dim, feature_dim),
        smooth3=conv3(feature_dim, feature_dim),
        fc1=conv1(feature_dim, num_classes),
        fc2=conv1(feature_dim, num_classes),
        fc3=conv1(feature_dim, num_classes),
    )


# ----------------------------------------------------------------------------
# Pure-JAX/XLA reference (for a runtime numerical check)
# ----------------------------------------------------------------------------
def _reference_forward(f1, f2, f3, params):
    def up(x, size):
        ho, wo = size
        hi, wi = x.shape[2], x.shape[3]
        wy = _interp_matrix_1d(ho, hi)
        wx = _interp_matrix_1d(wo, wi)
        return jnp.einsum('oi,pj,bcij->bcop', wy, wx, x,
                          precision=lax.Precision.HIGHEST)

    def conv(x, w, b):
        y = lax.conv_general_dilated(x, w, (1, 1), 'SAME',
                                     dimension_numbers=('NCHW', 'OIHW', 'NCHW'),
                                     precision=lax.Precision.HIGHEST)
        return y + b[None, :, None, None]

    def kmp(x):
        b, c, h, w = x.shape
        n = h * w
        k = _get_positive_k(KMAX_FRAC, n)
        v = jnp.sort(x.reshape(b, c, n), axis=2)[:, :, ::-1][:, :, :k]
        return v.sum(axis=2) / k

    p3 = f3
    p2 = up(p3, f2.shape[2:]) + f2
    p1 = up(p2, f1.shape[2:]) + f1
    s3 = kmp(conv(conv(p3, params['smooth3']['w'], params['smooth3']['b']),
                  params['fc3']['w'], params['fc3']['b']))
    s2 = kmp(conv(conv(p2, params['smooth2']['w'], params['smooth2']['b']),
                  params['fc2']['w'], params['fc2']['b']))
    s1 = kmp(conv(conv(p1, params['smooth1']['w'], params['smooth1']['b']),
                  params['fc1']['w'], params['fc1']['b']))
    return s1, s2, s3, p1


if __name__ == "__main__":
    feature_dim = 16
    num_classes = 8
    B = 2

    key = jax.random.PRNGKey(0)
    kp, k1, k2, k3 = jax.random.split(key, 4)
    params = make_params(kp, feature_dim, num_classes)

    # pyramid features (stand-ins for the fine/mid/coarse scales)
    f1 = jax.random.normal(k1, (B, feature_dim, 16, 16), jnp.float32)
    f2 = jax.random.normal(k2, (B, feature_dim, 8, 8), jnp.float32)
    f3 = jax.random.normal(k3, (B, feature_dim, 4, 4), jnp.float32)

    fwd = jax.jit(feature_pyramid_forward)
    s1, s2, s3, p1 = fwd(f1, f2, f3, params)
    jax.block_until_ready((s1, s2, s3, p1))

    assert s1.shape == (B, num_classes)
    assert s2.shape == (B, num_classes)
    assert s3.shape == (B, num_classes)
    assert p1.shape == (B, feature_dim, 16, 16)

    # Numerical check against the pure-JAX reference.
    r1, r2, r3, rp1 = jax.jit(_reference_forward)(f1, f2, f3, params)
    np.testing.assert_allclose(np.asarray(s1), np.asarray(r1), rtol=2e-2, atol=2e-2)
    np.testing.assert_allclose(np.asarray(s2), np.asarray(r2), rtol=2e-2, atol=2e-2)
    np.testing.assert_allclose(np.asarray(s3), np.asarray(r3), rtol=2e-2, atol=2e-2)
    np.testing.assert_allclose(np.asarray(p1), np.asarray(rp1), rtol=2e-2, atol=2e-2)

    print("KERNEL_OK")
</pallas_src>

<mosaic_0001>
module attributes {stable_mosaic.version = 11 : i64} {
  func.func @up_score_kernel(%arg0: i32, %arg1: memref<64x16xf32, #tpu.memory_space<vmem>>, %arg2: memref<1x16x16xf32, #tpu.memory_space<vmem>>, %arg3: memref<1x64x16xf32, #tpu.memory_space<vmem>>, %arg4: memref<64x2xf32, #tpu.memory_space<vmem>>, %arg5: memref<9x16x16xf32, #tpu.memory_space<vmem>>, %arg6: memref<1x16xf32, #tpu.memory_space<vmem>>, %arg7: memref<8x16xf32, #tpu.memory_space<vmem>>, %arg8: memref<8x1xf32, #tpu.memory_space<vmem>>, %arg9: memref<1x64x16xf32, #tpu.memory_space<vmem>>, %arg10: memref<1x8x1xf32, #tpu.memory_space<vmem>>, %arg11: memref<82x16xf32, #tpu.memory_space<vmem>>) attributes {dimension_semantics = [#tpu.dimension_semantics<parallel>], iteration_bounds = array<i64: 2>, scalar_prefetch = 0 : i64, scratch_operands = 1 : i64, tpu.core_type = #tpu.core_type<tc>, window_params = [{pipeline_mode = #tpu.pipeline_mode<synchronous>, transform_indices = @transform_0, window_bounds = array<i64: 64, 16>}, {transform_indices = @transform_1, window_bounds = array<i64: 1, 16, 16>}, {transform_indices = @transform_2, window_bounds = array<i64: 1, 64, 16>}, {pipeline_mode = #tpu.pipeline_mode<synchronous>, transform_indices = @transform_3, window_bounds = array<i64: 64, 2>}, {pipeline_mode = #tpu.pipeline_mode<synchronous>, transform_indices = @transform_4, window_bounds = array<i64: 9, 16, 16>}, {pipeline_mode = #tpu.pipeline_mode<synchronous>, transform_indices = @transform_5, window_bounds = array<i64: 1, 16>}, {pipeline_mode = #tpu.pipeline_mode<synchronous>, transform_indices = @transform_6, window_bounds = array<i64: 8, 16>}, {pipeline_mode = #tpu.pipeline_mode<synchronous>, transform_indices = @transform_7, window_bounds = array<i64: 8, 1>}, {transform_indices = @transform_8, window_bounds = array<i64: 1, 64, 16>}, {transform_indices = @transform_9, window_bounds = array<i64: 1, 8, 1>}]} {
    %c0 = arith.constant 0 : index
    %c0_0 = arith.constant 0 : index
    %0 = vector.load %arg1[%c0, %c0_0] : memref<64x16xf32, #tpu.memory_space<vmem>>, vector<64x16xf32>
    %c0_1 = arith.constant 0 : index
    %c0_2 = arith.constant 0 : index
    %c0_3 = arith.constant 0 : index
    %1 = vector.load %arg2[%c0_1, %c0_2, %c0_3] : memref<1x16x16xf32, #tpu.memory_space<vmem>>, vector<1x16x16xf32>
    %2 = vector.shape_cast %1 : vector<1x16x16xf32> to vector<16x16xf32>
    %cst = arith.constant dense<0.000000e+00> : vector<64x16xf32>
    %3 = tpu.matmul %0, %2, %cst {dimension_numbers = #tpu.dot_dimension_numbers<[1], [0], [0], [1], [0, 0, 1, 1], [], []>} : vector<64x16xf32>, vector<16x16xf32>, vector<64x16xf32> -> vector<64x16xf32>
    %c0_4 = arith.constant 0 : index
    %c0_5 = arith.constant 0 : index
    %c0_6 = arith.constant 0 : index
    %4 = vector.load %arg3[%c0_4, %c0_5, %c0_6] : memref<1x64x16xf32, #tpu.memory_space<vmem>>, vector<1x64x16xf32>
    %5 = vector.shape_cast %4 : vector<1x64x16xf32> to vector<64x16xf32>
    %6 = arith.addf %3, %5 : vector<64x16xf32>
    %c0_7 = arith.constant 0 : index
    %c0_8 = arith.constant 0 : index
    %c0_9 = arith.constant 0 : index
    %7 = vector.load %arg9[%c0_7, %c0_8, %c0_9] : memref<1x64x16xf32, #tpu.memory_space<vmem>>, vector<1x64x16xf32>
    %8 = vector.shape_cast %7 : vector<1x64x16xf32> to vector<64x16xf32>
    %9 = vector.shape_cast %6 : vector<64x16xf32> to vector<1x64x16xf32>
    tpu.vector_store %arg9[%c0_7, %c0_8, %c0_9], %9 {strides = array<i32>} : memref<1x64x16xf32, #tpu.memory_space<vmem>>, vector<1x64x16xf32>,
    %cst_10 = arith.constant 0.000000e+00 : f32
    %10 = vector.broadcast %cst_10 : f32 to vector<82x16xf32>
    %c0_11 = arith.constant 0 : index
    %c0_12 = arith.constant 0 : index
    %11 = vector.load %arg11[%c0_11, %c0_12] : memref<82x16xf32, #tpu.memory_space<vmem>>, vector<82x16xf32>
    tpu.vector_store %arg11[%c0_11, %c0_12], %10 {strides = array<i32>} : memref<82x16xf32, #tpu.memory_space<vmem>>, vector<82x16xf32>,
    %c9 = arith.constant 9 : index
    %c0_13 = arith.constant 0 : index
    %12 = vector.load %arg11[%c9, %c0_13] : memref<82x16xf32, #tpu.memory_space<vmem>>, vector<64x16xf32>
    tpu.vector_store %arg11[%c9, %c0_13], %6 {strides = array<i32>} : memref<82x16xf32, #tpu.memory_space<vmem>>, vector<64x16xf32>,
    %c0_14 = arith.constant 0 : index
    %c0_15 = arith.constant 0 : index
    %13 = vector.load %arg4[%c0_14, %c0_15] : memref<64x2xf32, #tpu.memory_space<vmem>>, vector<64x1xf32>
    %c0_16 = arith.constant 0 : index
    %c1 = arith.constant 1 : index
    %14 = vector.load %arg4[%c0_16, %c1] : memref<64x2xf32, #tpu.memory_space<vmem>>, vector<64x1xf32>
    %c0_17 = arith.constant 0 : index
    %c0_18 = arith.constant 0 : index
    %15 = vector.load %arg11[%c0_17, %c0_18] : memref<82x16xf32, #tpu.memory_space<vmem>>, vector<64x16xf32>
    %16 = vector.broadcast %13 : vector<64x1xf32> to vector<64x16xf32>
    %17 = arith.mulf %15, %16 : vector<64x16xf32>
    %c0_19 = arith.constant 0 : index
    %c0_20 = arith.constant 0 : index
    %c0_21 = arith.constant 0 : index
    %18 = vector.load %arg5[%c0_19, %c0_20, %c0_21] : memref<9x16x16xf32, #tpu.memory_space<vmem>>, vector<1x16x16xf32>
    %19 = vector.shape_cast %18 : vector<1x16x16xf32> to vector<16x16xf32>
    %cst_22 = arith.constant dense<0.000000e+00> : vector<64x16xf32>
    %20 = tpu.matmul %17, %19, %cst_22 {dimension_numbers = #tpu.dot_dimension_numbers<[1], [0], [0], [1], [0, 0, 1, 1], [], []>} : vector<64x16xf32>, vector<16x16xf32>, vector<64x16xf32> -> vector<64x16xf32>
    %c1_23 = arith.constant 1 : index
    %c0_24 = arith.constant 0 : index
    %21 = vector.load %arg11[%c1_23, %c0_24] : memref<82x16xf32, #tpu.memory_space<vmem>>, vector<64x16xf32>
    %c1_25 = arith.constant 1 : index
    %c0_26 = arith.constant 0 : index
    %c0_27 = arith.constant 0 : index
    %22 = vector.load %arg5[%c1_25, %c0_26, %c0_27] : memref<9x16x16xf32, #tpu.memory_space<vmem>>, vector<1x16x16xf32>
    %23 = vector.shape_cast %22 : vector<1x16x16xf32> to vector<16x16xf32>
    %cst_28 = arith.constant dense<0.000000e+00> : vector<64x16xf32>
    %24 = tpu.matmul %21, %23, %cst_28 {dimension_numbers = #tpu.dot_dimension_numbers<[1], [0], [0], [1], [0, 0, 1, 1], [], []>} : vector<64x16xf32>, vector<16x16xf32>, vector<64x16xf32> -> vector<64x16xf32>
    %25 = arith.addf %20, %24 : vector<64x16xf32>
    %c2 = arith.constant 2 : index
    %c0_29 = arith.constant 0 : index
    %26 = vector.load %arg11[%c2, %c0_29] : memref<82x16xf32, #tpu.memory_space<vmem>>, vector<64x16xf32>
    %27 = vector.broadcast %14 : vector<64x1xf32> to vector<64x16xf32>
    %28 = arith.mulf %26, %27 : vector<64x16xf32>
    %c2_30 = arith.constant 2 : index
    %c0_31 = arith.constant 0 : index
    %c0_32 = arith.constant 0 : index
    %29 = vector.load %arg5[%c2_30, %c0_31, %c0_32] : memref<9x16x16xf32, #tpu.memory_space<vmem>>, vector<1x16x16xf32>
    %30 = vector.shape_cast %29 : vector<1x16x16xf32> to vector<16x16xf32>
    %cst_33 = arith.constant dense<0.000000e+00> : vector<64x16xf32>
    %31 = tpu.matmul %28, %30, %cst_33 {dimension_numbers = #tpu.dot_dimension_numbers<[1], [0], [0], [1], [0, 0, 1, 1], [], []>} : vector<64x16xf32>, vector<16x16xf32>, vector<64x16xf32> -> vector<64x16xf32>
    %32 = arith.addf %25, %31 : vector<64x16xf32>
    %c8 = arith.constant 8 : index
    %c0_34 = arith.constant 0 : index
    %33 = vector.load %arg11[%c8, %c0_34] : memref<82x16xf32, #tpu.memory_space<vmem>>, vector<64x16xf32>
    %34 = vector.broadcast %13 : vector<64x1xf32> to vector<64x16xf32>
    %35 = arith.mulf %33, %34 : vector<64x16xf32>
    %c3 = arith.constant 3 : index
    %c0_35 = arith.constant 0 : index
    %c0_36 = arith.constant 0 : index
    %36 = vector.load %arg5[%c3, %c0_35, %c0_36] : memref<9x16x16xf32, #tpu.memory_space<vmem>>, vector<1x16x16xf32>
    %37 = vector.shape_cast %36 : vector<1x16x16xf32> to vector<16x16xf32>
    %cst_37 = arith.constant dense<0.000000e+00> : vector<64x16xf32>
    %38 = tpu.matmul %35, %37, %cst_37 {dimension_numbers = #tpu.dot_dimension_numbers<[1], [0], [0], [1], [0, 0, 1, 1], [], []>} : vector<64x16xf32>, vector<16x16xf32>, vector<64x16xf32> -> vector<64x16xf32>
    %39 = arith.addf %32, %38 : vector<64x16xf32>
    %c9_38 = arith.constant 9 : index
    %c0_39 = arith.constant 0 : index
    %40 = vector.load %arg11[%c9_38, %c0_39] : memref<82x16xf32, #tpu.memory_space<vmem>>, vector<64x16xf32>
    %c4 = arith.constant 4 : index
    %c0_40 = arith.constant 0 : index
    %c0_41 = arith.constant 0 : index
    %41 = vector.load %arg5[%c4, %c0_40, %c0_41] : memref<9x16x16xf32, #tpu.memory_space<vmem>>, vector<1x16x16xf32>
    %42 = vector.shape_cast %41 : vector<1x16x16xf32> to vector<16x16xf32>
    %cst_42 = arith.constant dense<0.000000e+00> : vector<64x16xf32>
    %43 = tpu.matmul %40, %42, %cst_42 {dimension_numbers = #tpu.dot_dimension_numbers<[1], [0], [0], [1], [0, 0, 1, 1], [], []>} : vector<64x16xf32>, vector<16x16xf32>, vector<64x16xf32> -> vector<64x16xf32>
    %44 = arith.addf %39, %43 : vector<64x16xf32>
    %c10 = arith.constant 10 : index
    %c0_43 = arith.constant 0 : index
    %45 = vector.load %arg11[%c10, %c0_43] : memref<82x16xf32, #tpu.memory_space<vmem>>, vector<64x16xf32>
    %46 = vector.broadcast %14 : vector<64x1xf32> to vector<64x16xf32>
    %47 = arith.mulf %45, %46 : vector<64x16xf32>
    %c5 = arith.constant 5 : index
    %c0_44 = arith.constant 0 : index
    %c0_45 = arith.constant 0 : index
    %48 = vector.load %arg5[%c5, %c0_44, %c0_45] : memref<9x16x16xf32, #tpu.memory_space<vmem>>, vector<1x16x16xf32>
    %49 = vector.shape_cast %48 : vector<1x16x16xf32> to vector<16x16xf32>
    %cst_46 = arith.constant dense<0.000000e+00> : vector<64x16xf32>
    %50 = tpu.matmul %47, %49, %cst_46 {dimension_numbers = #tpu.dot_dimension_numbers<[1], [0], [0], [1], [0, 0, 1, 1], [], []>} : vector<64x16xf32>, vector<16x16xf32>, vector<64x16xf32> -> vector<64x16xf32>
    %51 = arith.addf %44, %50 : vector<64x16xf32>
    %c16 = arith.constant 16 : index
    %c0_47 = arith.constant 0 : index
    %52 = vector.load %arg11[%c16, %c0_47] : memref<82x16xf32, #tpu.memory_space<vmem>>, vector<64x16xf32>
    %53 = vector.broadcast %13 : vector<64x1xf32> to vector<64x16xf32>
    %54 = arith.mulf %52, %53 : vector<64x16xf32>
    %c6 = arith.constant 6 : index
    %c0_48 = arith.constant 0 : index
    %c0_49 = arith.constant 0 : index
    %55 = vector.load %arg5[%c6, %c0_48, %c0_49] : memref<9x16x16xf32, #tpu.memory_space<vmem>>, vector<1x16x16xf32>
    %56 = vector.shape_cast %55 : vector<1x16x16xf32> to vector<16x16xf32>
    %cst_50 = arith.constant dense<0.000000e+00> : vector<64x16xf32>
    %57 = tpu.matmul %54, %56, %cst_50 {dimension_numbers = #tpu.dot_dimension_numbers<[1], [0], [0], [1], [0, 0, 1, 1], [], []>} : vector<64x16xf32>, vector<16x16xf32>, vector<64x16xf32> -> vector<64x16xf32>
    %58 = arith.addf %51, %57 : vector<64x16xf32>
    %c17 = arith.constant 17 : index
    %c0_51 = arith.constant 0 : index
    %59 = vector.load %arg11[%c17, %c0_51] : memref<82x16xf32, #tpu.memory_space<vmem>>, vector<64x16xf32>
    %c7 = arith.constant 7 : index
    %c0_52 = arith.constant 0 : index
    %c0_53 = arith.constant 0 : index
    %60 = vector.load %arg5[%c7, %c0_52, %c0_53] : memref<9x16x16xf32, #tpu.memory_space<vmem>>, vector<1x16x16xf32>
    %61 = vector.shape_cast %60 : vector<1x16x16xf32> to vector<16x16xf32>
    %cst_54 = arith.constant dense<0.000000e+00> : vector<64x16xf32>
    %62 = tpu.matmul %59, %61, %cst_54 {dimension_numbers = #tpu.dot_dimension_numbers<[1], [0], [0], [1], [0, 0, 1, 1], [], []>} : vector<64x16xf32>, vector<16x16xf32>, vector<64x16xf32> -> vector<64x16xf32>
    %63 = arith.addf %58, %62 : vector<64x16xf32>
    %c18 = arith.constant 18 : index
    %c0_55 = arith.constant 0 : index
    %64 = vector.load %arg11[%c18, %c0_55] : memref<82x16xf32, #tpu.memory_space<vmem>>, vector<64x16xf32>
    %65 = vector.broadcast %14 : vector<64x1xf32> to vector<64x16xf32>
    %66 = arith.mulf %64, %65 : vector<64x16xf32>
    %c8_56 = arith.constant 8 : index
    %c0_57 = arith.constant 0 : index
    %c0_58 = arith.constant 0 : index
    %67 = vector.load %arg5[%c8_56, %c0_57, %c0_58] : memref<9x16x16xf32, #tpu.memory_space<vmem>>, vector<1x16x16xf32>
    %68 = vector.shape_cast %67 : vector<1x16x16xf32> to vector<16x16xf32>
    %cst_59 = arith.constant dense<0.000000e+00> : vector<64x16xf32>
    %69 = tpu.matmul %66, %68, %cst_59 {dimension_numbers = #tpu.dot_dimension_numbers<[1], [0], [0], [1], [0, 0, 1, 1], [], []>} : vector<64x16xf32>, vector<16x16xf32>, vector<64x16xf32> -> vector<64x16xf32>
    %70 = arith.addf %63, %69 : vector<64x16xf32>
    %c0_60 = arith.constant 0 : index
    %c0_61 = arith.constant 0 : index
    %71 = vector.load %arg6[%c0_60, %c0_61] : memref<1x16xf32, #tpu.memory_space<vmem>>, vector<1x16xf32>
    %72 = vector.broadcast %71 : vector<1x16xf32> to vector<64x16xf32>
    %73 = arith.addf %70, %72 : vector<64x16xf32>
    %c0_62 = arith.constant 0 : index
    %c0_63 = arith.constant 0 : index
    %74 = vector.load %arg7[%c0_62, %c0_63] : memref<8x16xf32, #tpu.memory_space<vmem>>, vector<8x16xf32>
    %cst_64 = arith.constant dense<0.000000e+00> : vector<8x64xf32>
    %75 = tpu.matmul %74, %73, %cst_64 {dimension_numbers = #tpu.dot_dimension_numbers<[1], [1], [0], [0], [0, 0, 1, 0], [], []>} : vector<8x16xf32>, vector<64x16xf32>, vector<8x64xf32> -> vector<8x64xf32>
    %c0_65 = arith.constant 0 : index
    %c0_66 = arith.constant 0 : index
    %76 = vector.load %arg8[%c0_65, %c0_66] : memref<8x1xf32, #tpu.memory_space<vmem>>, vector<8x1xf32>
    %77 = vector.broadcast %76 : vector<8x1xf32> to vector<8x64xf32>
    %78 = arith.addf %75, %77 : vector<8x64xf32>
    %79 = tpu.iota {dimensions = array<i32: 1>} : vector<8x64xi32>
    %cst_67 = arith.constant 0.000000e+00 : f32
    %80 = vector.broadcast %cst_67 : f32 to vector<8x1xf32>
    %cst_68 = arith.constant dense<0xFF800000> : vector<8xf32>
    %81 = vector.multi_reduction <maximumf>, %78, %cst_68 [1] : vector<8x64xf32> to vector<8xf32>
    %82 = vector.shape_cast %81 : vector<8xf32> to vector<8x1xf32>
    %83 = arith.addf %80, %82 : vector<8x1xf32>
    %84 = vector.broadcast %82 : vector<8x1xf32> to vector<8x64xf32>
    %85 = arith.cmpf oeq, %78, %84 : vector<8x64xf32>
    %c64_i32 = arith.constant 64 : i32
    %86 = vector.broadcast %c64_i32 : i32 to vector<8x64xi32>
    %87 = arith.select %85, %79, %86 : vector<8x64xi1>, vector<8x64xi32>
    %cst_69 = arith.constant dense<2147483647> : vector<8xi32>
    %88 = vector.multi_reduction <minsi>, %87, %cst_69 [1] : vector<8x64xi32> to vector<8xi32>
    %89 = vector.shape_cast %88 : vector<8xi32> to vector<8x1xi32>
    %90 = vector.broadcast %89 : vector<8x1xi32> to vector<8x64xi32>
    %91 = arith.cmpi eq, %79, %90 : vector<8x64xi32>
    %cst_70 = arith.constant 0xFF800000 : f32
    %92 = vector.broadcast %cst_70 : f32 to vector<8x64xf32>
    %93 = arith.select %91, %92, %78 : vector<8x64xi1>, vector<8x64xf32>
    %cst_71 = arith.constant dense<0xFF800000> : vector<8xf32>
    %94 = vector.multi_reduction <maximumf>, %93, %cst_71 [1] : vector<8x64xf32> to vector<8xf32>
    %95 = vector.shape_cast %94 : vector<8xf32> to vector<8x1xf32>
    %96 = arith.addf %83, %95 : vector<8x1xf32>
    %97 = vector.broadcast %95 : vector<8x1xf32> to vector<8x64xf32>
    %98 = arith.cmpf oeq, %93, %97 : vector<8x64xf32>
    %c64_i32_72 = arith.constant 64 : i32
    %99 = vector.broadcast %c64_i32_72 : i32 to vector<8x64xi32>
    %100 = arith.select %98, %79, %99 : vector<8x64xi1>, vector<8x64xi32>
    %cst_73 = arith.constant dense<2147483647> : vector<8xi32>
    %101 = vector.multi_reduction <minsi>, %100, %cst_73 [1] : vector<8x64xi32> to vector<8xi32>
    %102 = vector.shape_cast %101 : vector<8xi32> to vector<8x1xi32>
    %103 = vector.broadcast %102 : vector<8x1xi32> to vector<8x64xi32>
    %104 = arith.cmpi eq, %79, %103 : vector<8x64xi32>
    %cst_74 = arith.constant 0xFF800000 : f32
    %105 = vector.broadcast %cst_74 : f32 to vector<8x64xf32>
    %106 = arith.select %104, %105, %93 : vector<8x64xi1>, vector<8x64xf32>
    %cst_75 = arith.constant dense<0xFF800000> : vector<8xf32>
    %107 = vector.multi_reduction <maximumf>, %106, %cst_75 [1] : vector<8x64xf32> to vector<8xf32>
    %108 = vector.shape_cast %107 : vector<8xf32> to vector<8x1xf32>
    %109 = arith.addf %96, %108 : vector<8x1xf32>
    %cst_76 = arith.constant 0.333333343 : f32
    %110 = vector.broadcast %cst_76 : f32 to vector<8x1xf32>
    %111 = arith.mulf %109, %110 : vector<8x1xf32>
    %c0_77 = arith.constant 0 : index
    %c0_78 = arith.constant 0 : index
    %c0_79 = arith.constant 0 : index
    %112 = vector.load %arg10[%c0_77, %c0_78, %c0_79] : memref<1x8x1xf32, #tpu.memory_space<vmem>>, vector<1x8x1xf32>
    %113 = vector.shape_cast %112 : vector<1x8x1xf32> to vector<8x1xf32>
    %114 = vector.shape_cast %111 : vector<8x1xf32> to vector<1x8x1xf32>
    tpu.vector_store %arg10[%c0_77, %c0_78, %c0_79], %114 {strides = array<i32>} : memref<1x8x1xf32, #tpu.memory_space<vmem>>, vector<1x8x1xf32>,
    return
  }
  func.func @transform_0(%arg0: i32) -> (i32, i32) {
    %c0_i32 = arith.constant 0 : i32
    %c0_i32_0 = arith.constant 0 : i32
    %c0_i32_1 = arith.constant 0 : i32
    return %c0_i32, %c0_i32_0 : i32, i32
  }
  func.func @transform_1(%arg0: i32) -> (i32, i32, i32) {
    %c0_i32 = arith.constant 0 : i32
    %c0_i32_0 = arith.constant 0 : i32
    %c0_i32_1 = arith.constant 0 : i32
    return %arg0, %c0_i32, %c0_i32_0 : i32, i32, i32
  }
  func.func @transform_2(%arg0: i32) -> (i32, i32, i32) {
    %c0_i32 = arith.constant 0 : i32
    %c0_i32_0 = arith.constant 0 : i32
    %c0_i32_1 = arith.constant 0 : i32
    return %arg0, %c0_i32, %c0_i32_0 : i32, i32, i32
  }
  func.func @transform_3(%arg0: i32) -> (i32, i32) {
    %c0_i32 = arith.constant 0 : i32
    %c0_i32_0 = arith.constant 0 : i32
    %c0_i32_1 = arith.constant 0 : i32
    return %c0_i32, %c0_i32_0 : i32, i32
  }
  func.func @transform_4(%arg0: i32) -> (i32, i32, i32) {
    %c0_i32 = arith.constant 0 : i32
    %c0_i32_0 = arith.constant 0 : i32
    %c0_i32_1 = arith.constant 0 : i32
    %c0_i32_2 = arith.constant 0 : i32
    return %c0_i32, %c0_i32_0, %c0_i32_1 : i32, i32, i32
  }
  func.func @transform_5(%arg0: i32) -> (i32, i32) {
    %c0_i32 = arith.constant 0 : i32
    %c0_i32_0 = arith.constant 0 : i32
    %c0_i32_1 = arith.constant 0 : i32
    return %c0_i32, %c0_i32_0 : i32, i32
  }
  func.func @transform_6(%arg0: i32) -> (i32, i32) {
    %c0_i32 = arith.constant 0 : i32
    %c0_i32_0 = arith.constant 0 : i32
    %c0_i32_1 = arith.constant 0 : i32
    return %c0_i32, %c0_i32_0 : i32, i32
  }
  func.func @transform_7(%arg0: i32) -> (i32, i32) {
    %c0_i32 = arith.constant 0 : i32
    %c0_i32_0 = arith.constant 0 : i32
    %c0_i32_1 = arith.constant 0 : i32
    return %c0_i32, %c0_i32_0 : i32, i32
  }
  func.func @transform_8(%arg0: i32) -> (i32, i32, i32) {
    %c0_i32 = arith.constant 0 : i32
    %c0_i32_0 = arith.constant 0 : i32
    %c0_i32_1 = arith.constant 0 : i32
    return %arg0, %c0_i32, %c0_i32_0 : i32, i32, i32
  }
  func.func @transform_9(%arg0: i32) -> (i32, i32, i32) {
    %c0_i32 = arith.constant 0 : i32
    %c0_i32_0 = arith.constant 0 : i32
    %c0_i32_1 = arith.constant 0 : i32
    return %arg0, %c0_i32, %c0_i32_0 : i32, i32, i32
  }
}

module attributes {stable_mosaic.version = 11 : i64} {
  func.func @up_score_kernel(%arg0: i32, %arg1: memref<256x64xf32, #tpu.memory_space<vmem>>, %arg2: memref<1x64x16xf32, #tpu.memory_space<vmem>>, %arg3: memref<1x256x16xf32, #tpu.memory_space<vmem>>, %arg4: memref<256x2xf32, #tpu.memory_space<vmem>>, %arg5: memref<9x16x16xf32, #tpu.memory_space<vmem>>, %arg6: memref<1x16xf32, #tpu.memory_space<vmem>>, %arg7: memref<8x16xf32, #tpu.memory_space<vmem>>, %arg8: memref<8x1xf32, #tpu.memory_space<vmem>>, %arg9: memref<1x256x16xf32, #tpu.memory_space<vmem>>, %arg10: memref<1x8x1xf32, #tpu.memory_space<vmem>>, %arg11: memref<290x16xf32, #tpu.memory_space<vmem>>) attributes {dimension_semantics = [#tpu.dimension_semantics<parallel>], iteration_bounds = array<i64: 2>, scalar_prefetch = 0 : i64, scratch_operands = 1 : i64, tpu.core_type = #tpu.core_type<tc>, window_params = [{pipeline_mode = #tpu.pipeline_mode<synchronous>, transform_indices = @transform_0, window_bounds = array<i64: 256, 64>}, {transform_indices = @transform_1, window_bounds = array<i64: 1, 64, 16>}, {transform_indices = @transform_2, window_bounds = array<i64: 1, 256, 16>}, {pipeline_mode = #tpu.pipeline_mode<synchronous>, transform_indices = @transform_3, window_bounds = array<i64: 256, 2>}, {pipeline_mode = #tpu.pipeline_mode<synchronous>, transform_indices = @transform_4, window_bounds = array<i64: 9, 16, 16>}, {pipeline_mode = #tpu.pipeline_mode<synchronous>, transform_indices = @transform_5, window_bounds = array<i64: 1, 16>}, {pipeline_mode = #tpu.pipeline_mode<synchronous>, transform_indices = @transform_6, window_bounds = array<i64: 8, 16>}, {pipeline_mode = #tpu.pipeline_mode<synchronous>, transform_indices = @transform_7, window_bounds = array<i64: 8, 1>}, {transform_indices = @transform_8, window_bounds = array<i64: 1, 256, 16>}, {transform_indices = @transform_9, window_bounds = array<i64: 1, 8, 1>}]} {
    %c0 = arith.constant 0 : index
    %c0_0 = arith.constant 0 : index
    %0 = vector.load %arg1[%c0, %c0_0] : memref<256x64xf32, #tpu.memory_space<vmem>>, vector<256x64xf32>
    %c0_1 = arith.constant 0 : index
    %c0_2 = arith.constant 0 : index
    %c0_3 = arith.constant 0 : index
    %1 = vector.load %arg2[%c0_1, %c0_2, %c0_3] : memref<1x64x16xf32, #tpu.memory_space<vmem>>, vector<1x64x16xf32>
    %2 = vector.shape_cast %1 : vector<1x64x16xf32> to vector<64x16xf32>
    %cst = arith.constant dense<0.000000e+00> : vector<256x16xf32>
    %3 = tpu.matmul %0, %2, %cst {dimension_numbers = #tpu.dot_dimension_numbers<[1], [0], [0], [1], [0, 0, 1, 1], [], []>} : vector<256x64xf32>, vector<64x16xf32>, vector<256x16xf32> -> vector<256x16xf32>
    %c0_4 = arith.constant 0 : index
    %c0_5 = arith.constant 0 : index
    %c0_6 = arith.constant 0 : index
    %4 = vector.load %arg3[%c0_4, %c0_5, %c0_6] : memref<1x256x16xf32, #tpu.memory_space<vmem>>, vector<1x256x16xf32>
    %5 = vector.shape_cast %4 : vector<1x256x16xf32> to vector<256x16xf32>
    %6 = arith.addf %3, %5 : vector<256x16xf32>
    %c0_7 = arith.constant 0 : index
    %c0_8 = arith.constant 0 : index
    %c0_9 = arith.constant 0 : index
    %7 = vector.load %arg9[%c0_7, %c0_8, %c0_9] : memref<1x256x16xf32, #tpu.memory_space<vmem>>, vector<1x256x16xf32>
    %8 = vector.shape_cast %7 : vector<1x256x16xf32> to vector<256x16xf32>
    %9 = vector.shape_cast %6 : vector<256x16xf32> to vector<1x256x16xf32>
    tpu.vector_store %arg9[%c0_7, %c0_8, %c0_9], %9 {strides = array<i32>} : memref<1x256x16xf32, #tpu.memory_space<vmem>>, vector<1x256x16xf32>,
    %cst_10 = arith.constant 0.000000e+00 : f32
    %10 = vector.broadcast %cst_10 : f32 to vector<290x16xf32>
    %c0_11 = arith.constant 0 : index
    %c0_12 = arith.constant 0 : index
    %11 = vector.load %arg11[%c0_11, %c0_12] : memref<290x16xf32, #tpu.memory_space<vmem>>, vector<290x16xf32>
    tpu.vector_store %arg11[%c0_11, %c0_12], %10 {strides = array<i32>} : memref<290x16xf32, #tpu.memory_space<vmem>>, vector<290x16xf32>,
    %c17 = arith.constant 17 : index
    %c0_13 = arith.constant 0 : index
    %12 = vector.load %arg11[%c17, %c0_13] : memref<290x16xf32, #tpu.memory_space<vmem>>, vector<256x16xf32>
    tpu.vector_store %arg11[%c17, %c0_13], %6 {strides = array<i32>} : memref<290x16xf32, #tpu.memory_space<vmem>>, vector<256x16xf32>,
    %c0_14 = arith.constant 0 : index
    %c0_15 = arith.constant 0 : index
    %13 = vector.load %arg4[%c0_14, %c0_15] : memref<256x2xf32, #tpu.memory_space<vmem>>, vector<256x1xf32>
    %c0_16 = arith.constant 0 : index
    %c1 = arith.constant 1 : index
    %14 = vector.load %arg4[%c0_16, %c1] : memref<256x2xf32, #tpu.memory_space<vmem>>, vector<256x1xf32>
    %c0_17 = arith.constant 0 : index
    %c0_18 = arith.constant 0 : index
    %15 = vector.load %arg11[%c0_17, %c0_18] : memref<290x16xf32, #tpu.memory_space<vmem>>, vector<256x16xf32>
    %16 = vector.broadcast %13 : vector<256x1xf32> to vector<256x16xf32>
    %17 = arith.mulf %15, %16 : vector<256x16xf32>
    %c0_19 = arith.constant 0 : index
    %c0_20 = arith.constant 0 : index
    %c0_21 = arith.constant 0 : index
    %18 = vector.load %arg5[%c0_19, %c0_20, %c0_21] : memref<9x16x16xf32, #tpu.memory_space<vmem>>, vector<1x16x16xf32>
    %19 = vector.shape_cast %18 : vector<1x16x16xf32> to vector<16x16xf32>
    %cst_22 = arith.constant dense<0.000000e+00> : vector<256x16xf32>
    %20 = tpu.matmul %17, %19, %cst_22 {dimension_numbers = #tpu.dot_dimension_numbers<[1], [0], [0], [1], [0, 0, 1, 1], [], []>} : vector<256x16xf32>, vector<16x16xf32>, vector<256x16xf32> -> vector<256x16xf32>
    %c1_23 = arith.constant 1 : index
    %c0_24 = arith.constant 0 : index
    %21 = vector.load %arg11[%c1_23, %c0_24] : memref<290x16xf32, #tpu.memory_space<vmem>>, vector<256x16xf32>
    %c1_25 = arith.constant 1 : index
    %c0_26 = arith.constant 0 : index
    %c0_27 = arith.constant 0 : index
    %22 = vector.load %arg5[%c1_25, %c0_26, %c0_27] : memref<9x16x16xf32, #tpu.memory_space<vmem>>, vector<1x16x16xf32>
    %23 = vector.shape_cast %22 : vector<1x16x16xf32> to vector<16x16xf32>
    %cst_28 = arith.constant dense<0.000000e+00> : vector<256x16xf32>
    %24 = tpu.matmul %21, %23, %cst_28 {dimension_numbers = #tpu.dot_dimension_numbers<[1], [0], [0], [1], [0, 0, 1, 1], [], []>} : vector<256x16xf32>, vector<16x16xf32>, vector<256x16xf32> -> vector<256x16xf32>
    %25 = arith.addf %20, %24 : vector<256x16xf32>
    %c2 = arith.constant 2 : index
    %c0_29 = arith.constant 0 : index
    %26 = vector.load %arg11[%c2, %c0_29] : memref<290x16xf32, #tpu.memory_space<vmem>>, vector<256x16xf32>
    %27 = vector.broadcast %14 : vector<256x1xf32> to vector<256x16xf32>
    %28 = arith.mulf %26, %27 : vector<256x16xf32>
    %c2_30 = arith.constant 2 : index
    %c0_31 = arith.constant 0 : index
    %c0_32 = arith.constant 0 : index
    %29 = vector.load %arg5[%c2_30, %c0_31, %c0_32] : memref<9x16x16xf32, #tpu.memory_space<vmem>>, vector<1x16x16xf32>
    %30 = vector.shape_cast %29 : vector<1x16x16xf32> to vector<16x16xf32>
    %cst_33 = arith.constant dense<0.000000e+00> : vector<256x16xf32>
    %31 = tpu.matmul %28, %30, %cst_33 {dimension_numbers = #tpu.dot_dimension_numbers<[1], [0], [0], [1], [0, 0, 1, 1], [], []>} : vector<256x16xf32>, vector<16x16xf32>, vector<256x16xf32> -> vector<256x16xf32>
    %32 = arith.addf %25, %31 : vector<256x16xf32>
    %c16 = arith.constant 16 : index
    %c0_34 = arith.constant 0 : index
    %33 = vector.load %arg11[%c16, %c0_34] : memref<290x16xf32, #tpu.memory_space<vmem>>, vector<256x16xf32>
    %34 = vector.broadcast %13 : vector<256x1xf32> to vector<256x16xf32>
    %35 = arith.mulf %33, %34 : vector<256x16xf32>
    %c3 = arith.constant 3 : index
    %c0_35 = arith.constant 0 : index
    %c0_36 = arith.constant 0 : index
    %36 = vector.load %arg5[%c3, %c0_35, %c0_36] : memref<9x16x16xf32, #tpu.memory_space<vmem>>, vector<1x16x16xf32>
    %37 = vector.shape_cast %36 : vector<1x16x16xf32> to vector<16x16xf32>
    %cst_37 = arith.constant dense<0.000000e+00> : vector<256x16xf32>
    %38 = tpu.matmul %35, %37, %cst_37 {dimension_numbers = #tpu.dot_dimension_numbers<[1], [0], [0], [1], [0, 0, 1, 1], [], []>} : vector<256x16xf32>, vector<16x16xf32>, vector<256x16xf32> -> vector<256x16xf32>
    %39 = arith.addf %32, %38 : vector<256x16xf32>
    %c17_38 = arith.constant 17 : index
    %c0_39 = arith.constant 0 : index
    %40 = vector.load %arg11[%c17_38, %c0_39] : memref<290x16xf32, #tpu.memory_space<vmem>>, vector<256x16xf32>
    %c4 = arith.constant 4 : index
    %c0_40 = arith.constant 0 : index
    %c0_41 = arith.constant 0 : index
    %41 = vector.load %arg5[%c4, %c0_40, %c0_41] : memref<9x16x16xf32, #tpu.memory_space<vmem>>, vector<1x16x16xf32>
    %42 = vector.shape_cast %41 : vector<1x16x16xf32> to vector<16x16xf32>
    %cst_42 = arith.constant dense<0.000000e+00> : vector<256x16xf32>
    %43 = tpu.matmul %40, %42, %cst_42 {dimension_numbers = #tpu.dot_dimension_numbers<[1], [0], [0], [1], [0, 0, 1, 1], [], []>} : vector<256x16xf32>, vector<16x16xf32>, vector<256x16xf32> -> vector<256x16xf32>
    %44 = arith.addf %39, %43 : vector<256x16xf32>
    %c18 = arith.constant 18 : index
    %c0_43 = arith.constant 0 : index
    %45 = vector.load %arg11[%c18, %c0_43] : memref<290x16xf32, #tpu.memory_space<vmem>>, vector<256x16xf32>
    %46 = vector.broadcast %14 : vector<256x1xf32> to vector<256x16xf32>
    %47 = arith.mulf %45, %46 : vector<256x16xf32>
    %c5 = arith.constant 5 : index
    %c0_44 = arith.constant 0 : index
    %c0_45 = arith.constant 0 : index
    %48 = vector.load %arg5[%c5, %c0_44, %c0_45] : memref<9x16x16xf32, #tpu.memory_space<vmem>>, vector<1x16x16xf32>
    %49 = vector.shape_cast %48 : vector<1x16x16xf32> to vector<16x16xf32>
    %cst_46 = arith.constant dense<0.000000e+00> : vector<256x16xf32>
    %50 = tpu.matmul %47, %49, %cst_46 {dimension_numbers = #tpu.dot_dimension_numbers<[1], [0], [0], [1], [0, 0, 1, 1], [], []>} : vector<256x16xf32>, vector<16x16xf32>, vector<256x16xf32> -> vector<256x16xf32>
    %51 = arith.addf %44, %50 : vector<256x16xf32>
    %c32 = arith.constant 32 : index
    %c0_47 = arith.constant 0 : index
    %52 = vector.load %arg11[%c32, %c0_47] : memref<290x16xf32, #tpu.memory_space<vmem>>, vector<256x16xf32>
    %53 = vector.broadcast %13 : vector<256x1xf32> to vector<256x16xf32>
    %54 = arith.mulf %52, %53 : vector<256x16xf32>
    %c6 = arith.constant 6 : index
    %c0_48 = arith.constant 0 : index
    %c0_49 = arith.constant 0 : index
    %55 = vector.load %arg5[%c6, %c0_48, %c0_49] : memref<9x16x16xf32, #tpu.memory_space<vmem>>, vector<1x16x16xf32>
    %56 = vector.shape_cast %55 : vector<1x16x16xf32> to vector<16x16xf32>
    %cst_50 = arith.constant dense<0.000000e+00> : vector<256x16xf32>
    %57 = tpu.matmul %54, %56, %cst_50 {dimension_numbers = #tpu.dot_dimension_numbers<[1], [0], [0], [1], [0, 0, 1, 1], [], []>} : vector<256x16xf32>, vector<16x16xf32>, vector<256x16xf32> -> vector<256x16xf32>
    %58 = arith.addf %51, %57 : vector<256x16xf32>
    %c33 = arith.constant 33 : index
    %c0_51 = arith.constant 0 : index
    %59 = vector.load %arg11[%c33, %c0_51] : memref<290x16xf32, #tpu.memory_space<vmem>>, vector<256x16xf32>
    %c7 = arith.constant 7 : index
    %c0_52 = arith.constant 0 : index
    %c0_53 = arith.constant 0 : index
    %60 = vector.load %arg5[%c7, %c0_52, %c0_53] : memref<9x16x16xf32, #tpu.memory_space<vmem>>, vector<1x16x16xf32>
    %61 = vector.shape_cast %60 : vector<1x16x16xf32> to vector<16x16xf32>
    %cst_54 = arith.constant dense<0.000000e+00> : vector<256x16xf32>
    %62 = tpu.matmul %59, %61, %cst_54 {dimension_numbers = #tpu.dot_dimension_numbers<[1], [0], [0], [1], [0, 0, 1, 1], [], []>} : vector<256x16xf32>, vector<16x16xf32>, vector<256x16xf32> -> vector<256x16xf32>
    %63 = arith.addf %58, %62 : vector<256x16xf32>
    %c34 = arith.constant 34 : index
    %c0_55 = arith.constant 0 : index
    %64 = vector.load %arg11[%c34, %c0_55] : memref<290x16xf32, #tpu.memory_space<vmem>>, vector<256x16xf32>
    %65 = vector.broadcast %14 : vector<256x1xf32> to vector<256x16xf32>
    %66 = arith.mulf %64, %65 : vector<256x16xf32>
    %c8 = arith.constant 8 : index
    %c0_56 = arith.constant 0 : index
    %c0_57 = arith.constant 0 : index
    %67 = vector.load %arg5[%c8, %c0_56, %c0_57] : memref<9x16x16xf32, #tpu.memory_space<vmem>>, vector<1x16x16xf32>
    %68 = vector.shape_cast %67 : vector<1x16x16xf32> to vector<16x16xf32>
    %cst_58 = arith.constant dense<0.000000e+00> : vector<256x16xf32>
    %69 = tpu.matmul %66, %68, %cst_58 {dimension_numbers = #tpu.dot_dimension_numbers<[1], [0], [0], [1], [0, 0, 1, 1], [], []>} : vector<256x16xf32>, vector<16x16xf32>, vector<256x16xf32> -> vector<256x16xf32>
    %70 = arith.addf %63, %69 : vector<256x16xf32>
    %c0_59 = arith.constant 0 : index
    %c0_60 = arith.constant 0 : index
    %71 = vector.load %arg6[%c0_59, %c0_60] : memref<1x16xf32, #tpu.memory_space<vmem>>, vector<1x16xf32>
    %72 = vector.broadcast %71 : vector<1x16xf32> to vector<256x16xf32>
    %73 = arith.addf %70, %72 : vector<256x16xf32>
    %c0_61 = arith.constant 0 : index
    %c0_62 = arith.constant 0 : index
    %74 = vector.load %arg7[%c0_61, %c0_62] : memref<8x16xf32, #tpu.memory_space<vmem>>, vector<8x16xf32>
    %cst_63 = arith.constant dense<0.000000e+00> : vector<8x256xf32>
    %75 = tpu.matmul %74, %73, %cst_63 {dimension_numbers = #tpu.dot_dimension_numbers<[1], [1], [0], [0], [0, 0, 1, 0], [], []>} : vector<8x16xf32>, vector<256x16xf32>, vector<8x256xf32> -> vector<8x256xf32>
    %c0_64 = arith.constant 0 : index
    %c0_65 = arith.constant 0 : index
    %76 = vector.load %arg8[%c0_64, %c0_65] : memref<8x1xf32, #tpu.memory_space<vmem>>, vector<8x1xf32>
    %77 = vector.broadcast %76 : vector<8x1xf32> to vector<8x256xf32>
    %78 = arith.addf %75, %77 : vector<8x256xf32>
    %79 = tpu.iota {dimensions = array<i32: 1>} : vector<8x256xi32>
    %cst_66 = arith.constant 0.000000e+00 : f32
    %80 = vector.broadcast %cst_66 : f32 to vector<8x1xf32>
    %cst_67 = arith.constant dense<0xFF800000> : vector<8xf32>
    %81 = vector.multi_reduction <maximumf>, %78, %cst_67 [1] : vector<8x256xf32> to vector<8xf32>
    %82 = vector.shape_cast %81 : vector<8xf32> to vector<8x1xf32>
    %83 = arith.addf %80, %82 : vector<8x1xf32>
    %84 = vector.broadcast %82 : vector<8x1xf32> to vector<8x256xf32>
    %85 = arith.cmpf oeq, %78, %84 : vector<8x256xf32>
    %c256_i32 = arith.constant 256 : i32
    %86 = vector.broadcast %c256_i32 : i32 to vector<8x256xi32>
    %87 = arith.select %85, %79, %86 : vector<8x256xi1>, vector<8x256xi32>
    %cst_68 = arith.constant dense<2147483647> : vector<8xi32>
    %88 = vector.multi_reduction <minsi>, %87, %cst_68 [1] : vector<8x256xi32> to vector<8xi32>
    %89 = vector.shape_cast %88 : vector<8xi32> to vector<8x1xi32>
    %90 = vector.broadcast %89 : vector<8x1xi32> to vector<8x256xi32>
    %91 = arith.cmpi eq, %79, %90 : vector<8x256xi32>
    %cst_69 = arith.constant 0xFF800000 : f32
    %92 = vector.broadcast %cst_69 : f32 to vector<8x256xf32>
    %93 = arith.select %91, %92, %78 : vector<8x256xi1>, vector<8x256xf32>
    %cst_70 = arith.constant dense<0xFF800000> : vector<8xf32>
    %94 = vector.multi_reduction <maximumf>, %93, %cst_70 [1] : vector<8x256xf32> to vector<8xf32>
    %95 = vector.shape_cast %94 : vector<8xf32> to vector<8x1xf32>
    %96 = arith.addf %83, %95 : vector<8x1xf32>
    %97 = vector.broadcast %95 : vector<8x1xf32> to vector<8x256xf32>
    %98 = arith.cmpf oeq, %93, %97 : vector<8x256xf32>
    %c256_i32_71 = arith.constant 256 : i32
    %99 = vector.broadcast %c256_i32_71 : i32 to vector<8x256xi32>
    %100 = arith.select %98, %79, %99 : vector<8x256xi1>, vector<8x256xi32>
    %cst_72 = arith.constant dense<2147483647> : vector<8xi32>
    %101 = vector.multi_reduction <minsi>, %100, %cst_72 [1] : vector<8x256xi32> to vector<8xi32>
    %102 = vector.shape_cast %101 : vector<8xi32> to vector<8x1xi32>
    %103 = vector.broadcast %102 : vector<8x1xi32> to vector<8x256xi32>
    %104 = arith.cmpi eq, %79, %103 : vector<8x256xi32>
    %cst_73 = arith.constant 0xFF800000 : f32
    %105 = vector.broadcast %cst_73 : f32 to vector<8x256xf32>
    %106 = arith.select %104, %105, %93 : vector<8x256xi1>, vector<8x256xf32>
    %cst_74 = arith.constant dense<0xFF800000> : vector<8xf32>
    %107 = vector.multi_reduction <maximumf>, %106, %cst_74 [1] : vector<8x256xf32> to vector<8xf32>
    %108 = vector.shape_cast %107 : vector<8xf32> to vector<8x1xf32>
    %109 = arith.addf %96, %108 : vector<8x1xf32>
    %110 = vector.broadcast %108 : vector<8x1xf32> to vector<8x256xf32>
    %111 = arith.cmpf oeq, %106, %110 : vector<8x256xf32>
    %c256_i32_75 = arith.constant 256 : i32
    %112 = vector.broadcast %c256_i32_75 : i32 to vector<8x256xi32>
    %113 = arith.select %111, %79, %112 : vector<8x256xi1>, vector<8x256xi32>
    %cst_76 = arith.constant dense<2147483647> : vector<8xi32>
    %114 = vector.multi_reduction <minsi>, %113, %cst_76 [1] : vector<8x256xi32> to vector<8xi32>
    %115 = vector.shape_cast %114 : vector<8xi32> to vector<8x1xi32>
    %116 = vector.broadcast %115 : vector<8x1xi32> to vector<8x256xi32>
    %117 = arith.cmpi eq, %79, %116 : vector<8x256xi32>
    %cst_77 = arith.constant 0xFF800000 : f32
    %118 = vector.broadcast %cst_77 : f32 to vector<8x256xf32>
    %119 = arith.select %117, %118, %106 : vector<8x256xi1>, vector<8x256xf32>
    %cst_78 = arith.constant dense<0xFF800000> : vector<8xf32>
    %120 = vector.multi_reduction <maximumf>, %119, %cst_78 [1] : vector<8x256xf32> to vector<8xf32>
    %121 = vector.shape_cast %120 : vector<8xf32> to vector<8x1xf32>
    %122 = arith.addf %109, %121 : vector<8x1xf32>
    %123 = vector.broadcast %121 : vector<8x1xf32> to vector<8x256xf32>
    %124 = arith.cmpf oeq, %119, %123 : vector<8x256xf32>
    %c256_i32_79 = arith.constant 256 : i32
    %125 = vector.broadcast %c256_i32_79 : i32 to vector<8x256xi32>
    %126 = arith.select %124, %79, %125 : vector<8x256xi1>, vector<8x256xi32>
    %cst_80 = arith.constant dense<2147483647> : vector<8xi32>
    %127 = vector.multi_reduction <minsi>, %126, %cst_80 [1] : vector<8x256xi32> to vector<8xi32>
    %128 = vector.shape_cast %127 : vector<8xi32> to vector<8x1xi32>
    %129 = vector.broadcast %128 : vector<8x1xi32> to vector<8x256xi32>
    %130 = arith.cmpi eq, %79, %129 : vector<8x256xi32>
    %cst_81 = arith.constant 0xFF800000 : f32
    %131 = vector.broadcast %cst_81 : f32 to vector<8x256xf32>
    %132 = arith.select %130, %131, %119 : vector<8x256xi1>, vector<8x256xf32>
    %cst_82 = arith.constant dense<0xFF800000> : vector<8xf32>
    %133 = vector.multi_reduction <maximumf>, %132, %cst_82 [1] : vector<8x256xf32> to vector<8xf32>
    %134 = vector.shape_cast %133 : vector<8xf32> to vector<8x1xf32>
    %135 = arith.addf %122, %134 : vector<8x1xf32>
    %136 = vector.broadcast %134 : vector<8x1xf32> to vector<8x256xf32>
    %137 = arith.cmpf oeq, %132, %136 : vector<8x256xf32>
    %c256_i32_83 = arith.constant 256 : i32
    %138 = vector.broadcast %c256_i32_83 : i32 to vector<8x256xi32>
    %139 = arith.select %137, %79, %138 : vector<8x256xi1>, vector<8x256xi32>
    %cst_84 = arith.constant dense<2147483647> : vector<8xi32>
    %140 = vector.multi_reduction <minsi>, %139, %cst_84 [1] : vector<8x256xi32> to vector<8xi32>
    %141 = vector.shape_cast %140 : vector<8xi32> to vector<8x1xi32>
    %142 = vector.broadcast %141 : vector<8x1xi32> to vector<8x256xi32>
    %143 = arith.cmpi eq, %79, %142 : vector<8x256xi32>
    %cst_85 = arith.constant 0xFF800000 : f32
    %144 = vector.broadcast %cst_85 : f32 to vector<8x256xf32>
    %145 = arith.select %143, %144, %132 : vector<8x256xi1>, vector<8x256xf32>
    %cst_86 = arith.constant dense<0xFF800000> : vector<8xf32>
    %146 = vector.multi_reduction <maximumf>, %145, %cst_86 [1] : vector<8x256xf32> to vector<8xf32>
    %147 = vector.shape_cast %146 : vector<8xf32> to vector<8x1xf32>
    %148 = arith.addf %135, %147 : vector<8x1xf32>
    %149 = vector.broadcast %147 : vector<8x1xf32> to vector<8x256xf32>
    %150 = arith.cmpf oeq, %145, %149 : vector<8x256xf32>
    %c256_i32_87 = arith.constant 256 : i32
    %151 = vector.broadcast %c256_i32_87 : i32 to vector<8x256xi32>
    %152 = arith.select %150, %79, %151 : vector<8x256xi1>, vector<8x256xi32>
    %cst_88 = arith.constant dense<2147483647> : vector<8xi32>
    %153 = vector.multi_reduction <minsi>, %152, %cst_88 [1] : vector<8x256xi32> to vector<8xi32>
    %154 = vector.shape_cast %153 : vector<8xi32> to vector<8x1xi32>
    %155 = vector.broadcast %154 : vector<8x1xi32> to vector<8x256xi32>
    %156 = arith.cmpi eq, %79, %155 : vector<8x256xi32>
    %cst_89 = arith.constant 0xFF800000 : f32
    %157 = vector.broadcast %cst_89 : f32 to vector<8x256xf32>
    %158 = arith.select %156, %157, %145 : vector<8x256xi1>, vector<8x256xf32>
    %cst_90 = arith.constant dense<0xFF800000> : vector<8xf32>
    %159 = vector.multi_reduction <maximumf>, %158, %cst_90 [1] : vector<8x256xf32> to vector<8xf32>
    %160 = vector.shape_cast %159 : vector<8xf32> to vector<8x1xf32>
    %161 = arith.addf %148, %160 : vector<8x1xf32>
    %162 = vector.broadcast %160 : vector<8x1xf32> to vector<8x256xf32>
    %163 = arith.cmpf oeq, %158, %162 : vector<8x256xf32>
    %c256_i32_91 = arith.constant 256 : i32
    %164 = vector.broadcast %c256_i32_91 : i32 to vector<8x256xi32>
    %165 = arith.select %163, %79, %164 : vector<8x256xi1>, vector<8x256xi32>
    %cst_92 = arith.constant dense<2147483647> : vector<8xi32>
    %166 = vector.multi_reduction <minsi>, %165, %cst_92 [1] : vector<8x256xi32> to vector<8xi32>
    %167 = vector.shape_cast %166 : vector<8xi32> to vector<8x1xi32>
    %168 = vector.broadcast %167 : vector<8x1xi32> to vector<8x256xi32>
    %169 = arith.cmpi eq, %79, %168 : vector<8x256xi32>
    %cst_93 = arith.constant 0xFF800000 : f32
    %170 = vector.broadcast %cst_93 : f32 to vector<8x256xf32>
    %171 = arith.select %169, %170, %158 : vector<8x256xi1>, vector<8x256xf32>
    %cst_94 = arith.constant dense<0xFF800000> : vector<8xf32>
    %172 = vector.multi_reduction <maximumf>, %171, %cst_94 [1] : vector<8x256xf32> to vector<8xf32>
    %173 = vector.shape_cast %172 : vector<8xf32> to vector<8x1xf32>
    %174 = arith.addf %161, %173 : vector<8x1xf32>
    %175 = vector.broadcast %173 : vector<8x1xf32> to vector<8x256xf32>
    %176 = arith.cmpf oeq, %171, %175 : vector<8x256xf32>
    %c256_i32_95 = arith.constant 256 : i32
    %177 = vector.broadcast %c256_i32_95 : i32 to vector<8x256xi32>
    %178 = arith.select %176, %79, %177 : vector<8x256xi1>, vector<8x256xi32>
    %cst_96 = arith.constant dense<2147483647> : vector<8xi32>
    %179 = vector.multi_reduction <minsi>, %178, %cst_96 [1] : vector<8x256xi32> to vector<8xi32>
    %180 = vector.shape_cast %179 : vector<8xi32> to vector<8x1xi32>
    %181 = vector.broadcast %180 : vector<8x1xi32> to vector<8x256xi32>
    %182 = arith.cmpi eq, %79, %181 : vector<8x256xi32>
    %cst_97 = arith.constant 0xFF800000 : f32
    %183 = vector.broadcast %cst_97 : f32 to vector<8x256xf32>
    %184 = arith.select %182, %183, %171 : vector<8x256xi1>, vector<8x256xf32>
    %cst_98 = arith.constant dense<0xFF800000> : vector<8xf32>
    %185 = vector.multi_reduction <maximumf>, %184, %cst_98 [1] : vector<8x256xf32> to vector<8xf32>
    %186 = vector.shape_cast %185 : vector<8xf32> to vector<8x1xf32>
    %187 = arith.addf %174, %186 : vector<8x1xf32>
    %188 = vector.broadcast %186 : vector<8x1xf32> to vector<8x256xf32>
    %189 = arith.cmpf oeq, %184, %188 : vector<8x256xf32>
    %c256_i32_99 = arith.constant 256 : i32
    %190 = vector.broadcast %c256_i32_99 : i32 to vector<8x256xi32>
    %191 = arith.select %189, %79, %190 : vector<8x256xi1>, vector<8x256xi32>
    %cst_100 = arith.constant dense<2147483647> : vector<8xi32>
    %192 = vector.multi_reduction <minsi>, %191, %cst_100 [1] : vector<8x256xi32> to vector<8xi32>
    %193 = vector.shape_cast %192 : vector<8xi32> to vector<8x1xi32>
    %194 = vector.broadcast %193 : vector<8x1xi32> to vector<8x256xi32>
    %195 = arith.cmpi eq, %79, %194 : vector<8x256xi32>
    %cst_101 = arith.constant 0xFF800000 : f32
    %196 = vector.broadcast %cst_101 : f32 to vector<8x256xf32>
    %197 = arith.select %195, %196, %184 : vector<8x256xi1>, vector<8x256xf32>
    %cst_102 = arith.constant dense<0xFF800000> : vector<8xf32>
    %198 = vector.multi_reduction <maximumf>, %197, %cst_102 [1] : vector<8x256xf32> to vector<8xf32>
    %199 = vector.shape_cast %198 : vector<8xf32> to vector<8x1xf32>
    %200 = arith.addf %187, %199 : vector<8x1xf32>
    %201 = vector.broadcast %199 : vector<8x1xf32> to vector<8x256xf32>
    %202 = arith.cmpf oeq, %197, %201 : vector<8x256xf32>
    %c256_i32_103 = arith.constant 256 : i32
    %203 = vector.broadcast %c256_i32_103 : i32 to vector<8x256xi32>
    %204 = arith.select %202, %79, %203 : vector<8x256xi1>, vector<8x256xi32>
    %cst_104 = arith.constant dense<2147483647> : vector<8xi32>
    %205 = vector.multi_reduction <minsi>, %204, %cst_104 [1] : vector<8x256xi32> to vector<8xi32>
    %206 = vector.shape_cast %205 : vector<8xi32> to vector<8x1xi32>
    %207 = vector.broadcast %206 : vector<8x1xi32> to vector<8x256xi32>
    %208 = arith.cmpi eq, %79, %207 : vector<8x256xi32>
    %cst_105 = arith.constant 0xFF800000 : f32
    %209 = vector.broadcast %cst_105 : f32 to vector<8x256xf32>
    %210 = arith.select %208, %209, %197 : vector<8x256xi1>, vector<8x256xf32>
    %cst_106 = arith.constant dense<0xFF800000> : vector<8xf32>
    %211 = vector.multi_reduction <maximumf>, %210, %cst_106 [1] : vector<8x256xf32> to vector<8xf32>
    %212 = vector.shape_cast %211 : vector<8xf32> to vector<8x1xf32>
    %213 = arith.addf %200, %212 : vector<8x1xf32>
    %214 = vector.broadcast %212 : vector<8x1xf32> to vector<8x256xf32>
    %215 = arith.cmpf oeq, %210, %214 : vector<8x256xf32>
    %c256_i32_107 = arith.constant 256 : i32
    %216 = vector.broadcast %c256_i32_107 : i32 to vector<8x256xi32>
    %217 = arith.select %215, %79, %216 : vector<8x256xi1>, vector<8x256xi32>
    %cst_108 = arith.constant dense<2147483647> : vector<8xi32>
    %218 = vector.multi_reduction <minsi>, %217, %cst_108 [1] : vector<8x256xi32> to vector<8xi32>
    %219 = vector.shape_cast %218 : vector<8xi32> to vector<8x1xi32>
    %220 = vector.broadcast %219 : vector<8x1xi32> to vector<8x256xi32>
    %221 = arith.cmpi eq, %79, %220 : vector<8x256xi32>
    %cst_109 = arith.constant 0xFF800000 : f32
    %222 = vector.broadcast %cst_109 : f32 to vector<8x256xf32>
    %223 = arith.select %221, %222, %210 : vector<8x256xi1>, vector<8x256xf32>
    %cst_110 = arith.constant dense<0xFF800000> : vector<8xf32>
    %224 = vector.multi_reduction <maximumf>, %223, %cst_110 [1] : vector<8x256xf32> to vector<8xf32>
    %225 = vector.shape_cast %224 : vector<8xf32> to vector<8x1xf32>
    %226 = arith.addf %213, %225 : vector<8x1xf32>
    %227 = vector.broadcast %225 : vector<8x1xf32> to vector<8x256xf32>
    %228 = arith.cmpf oeq, %223, %227 : vector<8x256xf32>
    %c256_i32_111 = arith.constant 256 : i32
    %229 = vector.broadcast %c256_i32_111 : i32 to vector<8x256xi32>
    %230 = arith.select %228, %79, %229 : vector<8x256xi1>, vector<8x256xi32>
    %cst_112 = arith.constant dense<2147483647> : vector<8xi32>
    %231 = vector.multi_reduction <minsi>, %230, %cst_112 [1] : vector<8x256xi32> to vector<8xi32>
    %232 = vector.shape_cast %231 : vector<8xi32> to vector<8x1xi32>
    %233 = vector.broadcast %232 : vector<8x1xi32> to vector<8x256xi32>
    %234 = arith.cmpi eq, %79, %233 : vector<8x256xi32>
    %cst_113 = arith.constant 0xFF800000 : f32
    %235 = vector.broadcast %cst_113 : f32 to vector<8x256xf32>
    %236 = arith.select %234, %235, %223 : vector<8x256xi1>, vector<8x256xf32>
    %cst_114 = arith.constant dense<0xFF800000> : vector<8xf32>
    %237 = vector.multi_reduction <maximumf>, %236, %cst_114 [1] : vector<8x256xf32> to vector<8xf32>
    %238 = vector.shape_cast %237 : vector<8xf32> to vector<8x1xf32>
    %239 = arith.addf %226, %238 : vector<8x1xf32>
    %cst_115 = arith.constant 0.0769230798 : f32
    %240 = vector.broadcast %cst_115 : f32 to vector<8x1xf32>
    %241 = arith.mulf %239, %240 : vector<8x1xf32>
    %c0_116 = arith.constant 0 : index
    %c0_117 = arith.constant 0 : index
    %c0_118 = arith.constant 0 : index
    %242 = vector.load %arg10[%c0_116, %c0_117, %c0_118] : memref<1x8x1xf32, #tpu.memory_space<vmem>>, vector<1x8x1xf32>
    %243 = vector.shape_cast %242 : vector<1x8x1xf32> to vector<8x1xf32>
    %244 = vector.shape_cast %241 : vector<8x1xf32> to vector<1x8x1xf32>
    tpu.vector_store %arg10[%c0_116, %c0_117, %c0_118], %244 {strides = array<i32>} : memref<1x8x1xf32, #tpu.memory_space<vmem>>, vector<1x8x1xf32>,
    return
  }
  func.func @transform_0(%arg0: i32) -> (i32, i32) {
    %c0_i32 = arith.constant 0 : i32
    %c0_i32_0 = arith.constant 0 : i32
    %c0_i32_1 = arith.constant 0 : i32
    return %c0_i32, %c0_i32_0 : i32, i32
  }
  func.func @transform_1(%arg0: i32) -> (i32, i32, i32) {
    %c0_i32 = arith.constant 0 : i32
    %c0_i32_0 = arith.constant 0 : i32
    %c0_i32_1 = arith.constant 0 : i32
    return %arg0, %c0_i32, %c0_i32_0 : i32, i32, i32
  }
  func.func @transform_2(%arg0: i32) -> (i32, i32, i32) {
    %c0_i32 = arith.constant 0 : i32
    %c0_i32_0 = arith.constant 0 : i32
    %c0_i32_1 = arith.constant 0 : i32
    return %arg0, %c0_i32, %c0_i32_0 : i32, i32, i32
  }
  func.func @transform_3(%arg0: i32) -> (i32, i32) {
    %c0_i32 = arith.constant 0 : i32
    %c0_i32_0 = arith.constant 0 : i32
    %c0_i32_1 = arith.constant 0 : i32
    return %c0_i32, %c0_i32_0 : i32, i32
  }
  func.func @transform_4(%arg0: i32) -> (i32, i32, i32) {
    %c0_i32 = arith.constant 0 : i32
    %c0_i32_0 = arith.constant 0 : i32
    %c0_i32_1 = arith.constant 0 : i32
    %c0_i32_2 = arith.constant 0 : i32
    return %c0_i32, %c0_i32_0, %c0_i32_1 : i32, i32, i32
  }
  func.func @transform_5(%arg0: i32) -> (i32, i32) {
    %c0_i32 = arith.constant 0 : i32
    %c0_i32_0 = arith.constant 0 : i32
    %c0_i32_1 = arith.constant 0 : i32
    return %c0_i32, %c0_i32_0 : i32, i32
  }
  func.func @transform_6(%arg0: i32) -> (i32, i32) {
    %c0_i32 = arith.constant 0 : i32
    %c0_i32_0 = arith.constant 0 : i32
    %c0_i32_1 = arith.constant 0 : i32
    return %c0_i32, %c0_i32_0 : i32, i32
  }
  func.func @transform_7(%arg0: i32) -> (i32, i32) {
    %c0_i32 = arith.constant 0 : i32
    %c0_i32_0 = arith.constant 0 : i32
    %c0_i32_1 = arith.constant 0 : i32
    return %c0_i32, %c0_i32_0 : i32, i32
  }
  func.func @transform_8(%arg0: i32) -> (i32, i32, i32) {
    %c0_i32 = arith.constant 0 : i32
    %c0_i32_0 = arith.constant 0 : i32
    %c0_i32_1 = arith.constant 0 : i32
    return %arg0, %c0_i32, %c0_i32_0 : i32, i32, i32
  }
  func.func @transform_9(%arg0: i32) -> (i32, i32, i32) {
    %c0_i32 = arith.constant 0 : i32
    %c0_i32_0 = arith.constant 0 : i32
    %c0_i32_1 = arith.constant 0 : i32
    return %arg0, %c0_i32, %c0_i32_0 : i32, i32, i32
  }
}

module attributes {stable_mosaic.version = 11 : i64} {
  func.func @score_kernel(%arg0: i32, %arg1: memref<1x16x16xf32, #tpu.memory_space<vmem>>, %arg2: memref<16x2xf32, #tpu.memory_space<vmem>>, %arg3: memref<9x16x16xf32, #tpu.memory_space<vmem>>, %arg4: memref<1x16xf32, #tpu.memory_space<vmem>>, %arg5: memref<8x16xf32, #tpu.memory_space<vmem>>, %arg6: memref<8x1xf32, #tpu.memory_space<vmem>>, %arg7: memref<1x8x1xf32, #tpu.memory_space<vmem>>, %arg8: memref<26x16xf32, #tpu.memory_space<vmem>>) attributes {dimension_semantics = [#tpu.dimension_semantics<parallel>], iteration_bounds = array<i64: 2>, scalar_prefetch = 0 : i64, scratch_operands = 1 : i64, tpu.core_type = #tpu.core_type<tc>, window_params = [{transform_indices = @transform_0, window_bounds = array<i64: 1, 16, 16>}, {pipeline_mode = #tpu.pipeline_mode<synchronous>, transform_indices = @transform_1, window_bounds = array<i64: 16, 2>}, {pipeline_mode = #tpu.pipeline_mode<synchronous>, transform_indices = @transform_2, window_bounds = array<i64: 9, 16, 16>}, {pipeline_mode = #tpu.pipeline_mode<synchronous>, transform_indices = @transform_3, window_bounds = array<i64: 1, 16>}, {pipeline_mode = #tpu.pipeline_mode<synchronous>, transform_indices = @transform_4, window_bounds = array<i64: 8, 16>}, {pipeline_mode = #tpu.pipeline_mode<synchronous>, transform_indices = @transform_5, window_bounds = array<i64: 8, 1>}, {transform_indices = @transform_6, window_bounds = array<i64: 1, 8, 1>}]} {
    %c0 = arith.constant 0 : index
    %c0_0 = arith.constant 0 : index
    %c0_1 = arith.constant 0 : index
    %0 = vector.load %arg1[%c0, %c0_0, %c0_1] : memref<1x16x16xf32, #tpu.memory_space<vmem>>, vector<1x16x16xf32>
    %1 = vector.shape_cast %0 : vector<1x16x16xf32> to vector<16x16xf32>
    %cst = arith.constant 0.000000e+00 : f32
    %2 = vector.broadcast %cst : f32 to vector<26x16xf32>
    %c0_2 = arith.constant 0 : index
    %c0_3 = arith.constant 0 : index
    %3 = vector.load %arg8[%c0_2, %c0_3] : memref<26x16xf32, #tpu.memory_space<vmem>>, vector<26x16xf32>
    tpu.vector_store %arg8[%c0_2, %c0_3], %2 {strides = array<i32>} : memref<26x16xf32, #tpu.memory_space<vmem>>, vector<26x16xf32>,
    %c5 = arith.constant 5 : index
    %c0_4 = arith.constant 0 : index
    %4 = vector.load %arg8[%c5, %c0_4] : memref<26x16xf32, #tpu.memory_space<vmem>>, vector<16x16xf32>
    tpu.vector_store %arg8[%c5, %c0_4], %1 {strides = array<i32>} : memref<26x16xf32, #tpu.memory_space<vmem>>, vector<16x16xf32>,
    %c0_5 = arith.constant 0 : index
    %c0_6 = arith.constant 0 : index
    %5 = vector.load %arg2[%c0_5, %c0_6] : memref<16x2xf32, #tpu.memory_space<vmem>>, vector<16x1xf32>
    %c0_7 = arith.constant 0 : index
    %c1 = arith.constant 1 : index
    %6 = vector.load %arg2[%c0_7, %c1] : memref<16x2xf32, #tpu.memory_space<vmem>>, vector<16x1xf32>
    %c0_8 = arith.constant 0 : index
    %c0_9 = arith.constant 0 : index
    %7 = vector.load %arg8[%c0_8, %c0_9] : memref<26x16xf32, #tpu.memory_space<vmem>>, vector<16x16xf32>
    %8 = vector.broadcast %5 : vector<16x1xf32> to vector<16x16xf32>
    %9 = arith.mulf %7, %8 : vector<16x16xf32>
    %c0_10 = arith.constant 0 : index
    %c0_11 = arith.constant 0 : index
    %c0_12 = arith.constant 0 : index
    %10 = vector.load %arg3[%c0_10, %c0_11, %c0_12] : memref<9x16x16xf32, #tpu.memory_space<vmem>>, vector<1x16x16xf32>
    %11 = vector.shape_cast %10 : vector<1x16x16xf32> to vector<16x16xf32>
    %cst_13 = arith.constant dense<0.000000e+00> : vector<16x16xf32>
    %12 = tpu.matmul %9, %11, %cst_13 {dimension_numbers = #tpu.dot_dimension_numbers<[1], [0], [0], [1], [0, 0, 1, 1], [], []>} : vector<16x16xf32>, vector<16x16xf32>, vector<16x16xf32> -> vector<16x16xf32>
    %c1_14 = arith.constant 1 : index
    %c0_15 = arith.constant 0 : index
    %13 = vector.load %arg8[%c1_14, %c0_15] : memref<26x16xf32, #tpu.memory_space<vmem>>, vector<16x16xf32>
    %c1_16 = arith.constant 1 : index
    %c0_17 = arith.constant 0 : index
    %c0_18 = arith.constant 0 : index
    %14 = vector.load %arg3[%c1_16, %c0_17, %c0_18] : memref<9x16x16xf32, #tpu.memory_space<vmem>>, vector<1x16x16xf32>
    %15 = vector.shape_cast %14 : vector<1x16x16xf32> to vector<16x16xf32>
    %cst_19 = arith.constant dense<0.000000e+00> : vector<16x16xf32>
    %16 = tpu.matmul %13, %15, %cst_19 {dimension_numbers = #tpu.dot_dimension_numbers<[1], [0], [0], [1], [0, 0, 1, 1], [], []>} : vector<16x16xf32>, vector<16x16xf32>, vector<16x16xf32> -> vector<16x16xf32>
    %17 = arith.addf %12, %16 : vector<16x16xf32>
    %c2 = arith.constant 2 : index
    %c0_20 = arith.constant 0 : index
    %18 = vector.load %arg8[%c2, %c0_20] : memref<26x16xf32, #tpu.memory_space<vmem>>, vector<16x16xf32>
    %19 = vector.broadcast %6 : vector<16x1xf32> to vector<16x16xf32>
    %20 = arith.mulf %18, %19 : vector<16x16xf32>
    %c2_21 = arith.constant 2 : index
    %c0_22 = arith.constant 0 : index
    %c0_23 = arith.constant 0 : index
    %21 = vector.load %arg3[%c2_21, %c0_22, %c0_23] : memref<9x16x16xf32, #tpu.memory_space<vmem>>, vector<1x16x16xf32>
    %22 = vector.shape_cast %21 : vector<1x16x16xf32> to vector<16x16xf32>
    %cst_24 = arith.constant dense<0.000000e+00> : vector<16x16xf32>
    %23 = tpu.matmul %20, %22, %cst_24 {dimension_numbers = #tpu.dot_dimension_numbers<[1], [0], [0], [1], [0, 0, 1, 1], [], []>} : vector<16x16xf32>, vector<16x16xf32>, vector<16x16xf32> -> vector<16x16xf32>
    %24 = arith.addf %17, %23 : vector<16x16xf32>
    %c4 = arith.constant 4 : index
    %c0_25 = arith.constant 0 : index
    %25 = vector.load %arg8[%c4, %c0_25] : memref<26x16xf32, #tpu.memory_space<vmem>>, vector<16x16xf32>
    %26 = vector.broadcast %5 : vector<16x1xf32> to vector<16x16xf32>
    %27 = arith.mulf %25, %26 : vector<16x16xf32>
    %c3 = arith.constant 3 : index
    %c0_26 = arith.constant 0 : index
    %c0_27 = arith.constant 0 : index
    %28 = vector.load %arg3[%c3, %c0_26, %c0_27] : memref<9x16x16xf32, #tpu.memory_space<vmem>>, vector<1x16x16xf32>
    %29 = vector.shape_cast %28 : vector<1x16x16xf32> to vector<16x16xf32>
    %cst_28 = arith.constant dense<0.000000e+00> : vector<16x16xf32>
    %30 = tpu.matmul %27, %29, %cst_28 {dimension_numbers = #tpu.dot_dimension_numbers<[1], [0], [0], [1], [0, 0, 1, 1], [], []>} : vector<16x16xf32>, vector<16x16xf32>, vector<16x16xf32> -> vector<16x16xf32>
    %31 = arith.addf %24, %30 : vector<16x16xf32>
    %c5_29 = arith.constant 5 : index
    %c0_30 = arith.constant 0 : index
    %32 = vector.load %arg8[%c5_29, %c0_30] : memref<26x16xf32, #tpu.memory_space<vmem>>, vector<16x16xf32>
    %c4_31 = arith.constant 4 : index
    %c0_32 = arith.constant 0 : index
    %c0_33 = arith.constant 0 : index
    %33 = vector.load %arg3[%c4_31, %c0_32, %c0_33] : memref<9x16x16xf32, #tpu.memory_space<vmem>>, vector<1x16x16xf32>
    %34 = vector.shape_cast %33 : vector<1x16x16xf32> to vector<16x16xf32>
    %cst_34 = arith.constant dense<0.000000e+00> : vector<16x16xf32>
    %35 = tpu.matmul %32, %34, %cst_34 {dimension_numbers = #tpu.dot_dimension_numbers<[1], [0], [0], [1], [0, 0, 1, 1], [], []>} : vector<16x16xf32>, vector<16x16xf32>, vector<16x16xf32> -> vector<16x16xf32>
    %36 = arith.addf %31, %35 : vector<16x16xf32>
    %c6 = arith.constant 6 : index
    %c0_35 = arith.constant 0 : index
    %37 = vector.load %arg8[%c6, %c0_35] : memref<26x16xf32, #tpu.memory_space<vmem>>, vector<16x16xf32>
    %38 = vector.broadcast %6 : vector<16x1xf32> to vector<16x16xf32>
    %39 = arith.mulf %37, %38 : vector<16x16xf32>
    %c5_36 = arith.constant 5 : index
    %c0_37 = arith.constant 0 : index
    %c0_38 = arith.constant 0 : index
    %40 = vector.load %arg3[%c5_36, %c0_37, %c0_38] : memref<9x16x16xf32, #tpu.memory_space<vmem>>, vector<1x16x16xf32>
    %41 = vector.shape_cast %40 : vector<1x16x16xf32> to vector<16x16xf32>
    %cst_39 = arith.constant dense<0.000000e+00> : vector<16x16xf32>
    %42 = tpu.matmul %39, %41, %cst_39 {dimension_numbers = #tpu.dot_dimension_numbers<[1], [0], [0], [1], [0, 0, 1, 1], [], []>} : vector<16x16xf32>, vector<16x16xf32>, vector<16x16xf32> -> vector<16x16xf32>
    %43 = arith.addf %36, %42 : vector<16x16xf32>
    %c8 = arith.constant 8 : index
    %c0_40 = arith.constant 0 : index
    %44 = vector.load %arg8[%c8, %c0_40] : memref<26x16xf32, #tpu.memory_space<vmem>>, vector<16x16xf32>
    %45 = vector.broadcast %5 : vector<16x1xf32> to vector<16x16xf32>
    %46 = arith.mulf %44, %45 : vector<16x16xf32>
    %c6_41 = arith.constant 6 : index
    %c0_42 = arith.constant 0 : index
    %c0_43 = arith.constant 0 : index
    %47 = vector.load %arg3[%c6_41, %c0_42, %c0_43] : memref<9x16x16xf32, #tpu.memory_space<vmem>>, vector<1x16x16xf32>
    %48 = vector.shape_cast %47 : vector<1x16x16xf32> to vector<16x16xf32>
    %cst_44 = arith.constant dense<0.000000e+00> : vector<16x16xf32>
    %49 = tpu.matmul %46, %48, %cst_44 {dimension_numbers = #tpu.dot_dimension_numbers<[1], [0], [0], [1], [0, 0, 1, 1], [], []>} : vector<16x16xf32>, vector<16x16xf32>, vector<16x16xf32> -> vector<16x16xf32>
    %50 = arith.addf %43, %49 : vector<16x16xf32>
    %c9 = arith.constant 9 : index
    %c0_45 = arith.constant 0 : index
    %51 = vector.load %arg8[%c9, %c0_45] : memref<26x16xf32, #tpu.memory_space<vmem>>, vector<16x16xf32>
    %c7 = arith.constant 7 : index
    %c0_46 = arith.constant 0 : index
    %c0_47 = arith.constant 0 : index
    %52 = vector.load %arg3[%c7, %c0_46, %c0_47] : memref<9x16x16xf32, #tpu.memory_space<vmem>>, vector<1x16x16xf32>
    %53 = vector.shape_cast %52 : vector<1x16x16xf32> to vector<16x16xf32>
    %cst_48 = arith.constant dense<0.000000e+00> : vector<16x16xf32>
    %54 = tpu.matmul %51, %53, %cst_48 {dimension_numbers = #tpu.dot_dimension_numbers<[1], [0], [0], [1], [0, 0, 1, 1], [], []>} : vector<16x16xf32>, vector<16x16xf32>, vector<16x16xf32> -> vector<16x16xf32>
    %55 = arith.addf %50, %54 : vector<16x16xf32>
    %c10 = arith.constant 10 : index
    %c0_49 = arith.constant 0 : index
    %56 = vector.load %arg8[%c10, %c0_49] : memref<26x16xf32, #tpu.memory_space<vmem>>, vector<16x16xf32>
    %57 = vector.broadcast %6 : vector<16x1xf32> to vector<16x16xf32>
    %58 = arith.mulf %56, %57 : vector<16x16xf32>
    %c8_50 = arith.constant 8 : index
    %c0_51 = arith.constant 0 : index
    %c0_52 = arith.constant 0 : index
    %59 = vector.load %arg3[%c8_50, %c0_51, %c0_52] : memref<9x16x16xf32, #tpu.memory_space<vmem>>, vector<1x16x16xf32>
    %60 = vector.shape_cast %59 : vector<1x16x16xf32> to vector<16x16xf32>
    %cst_53 = arith.constant dense<0.000000e+00> : vector<16x16xf32>
    %61 = tpu.matmul %58, %60, %cst_53 {dimension_numbers = #tpu.dot_dimension_numbers<[1], [0], [0], [1], [0, 0, 1, 1], [], []>} : vector<16x16xf32>, vector<16x16xf32>, vector<16x16xf32> -> vector<16x16xf32>
    %62 = arith.addf %55, %61 : vector<16x16xf32>
    %c0_54 = arith.constant 0 : index
    %c0_55 = arith.constant 0 : index
    %63 = vector.load %arg4[%c0_54, %c0_55] : memref<1x16xf32, #tpu.memory_space<vmem>>, vector<1x16xf32>
    %64 = vector.broadcast %63 : vector<1x16xf32> to vector<16x16xf32>
    %65 = arith.addf %62, %64 : vector<16x16xf32>
    %c0_56 = arith.constant 0 : index
    %c0_57 = arith.constant 0 : index
    %66 = vector.load %arg5[%c0_56, %c0_57] : memref<8x16xf32, #tpu.memory_space<vmem>>, vector<8x16xf32>
    %cst_58 = arith.constant dense<0.000000e+00> : vector<8x16xf32>
    %67 = tpu.matmul %66, %65, %cst_58 {dimension_numbers = #tpu.dot_dimension_numbers<[1], [1], [0], [0], [0, 0, 1, 0], [], []>} : vector<8x16xf32>, vector<16x16xf32>, vector<8x16xf32> -> vector<8x16xf32>
    %c0_59 = arith.constant 0 : index
    %c0_60 = arith.constant 0 : index
    %68 = vector.load %arg6[%c0_59, %c0_60] : memref<8x1xf32, #tpu.memory_space<vmem>>, vector<8x1xf32>
    %69 = vector.broadcast %68 : vector<8x1xf32> to vector<8x16xf32>
    %70 = arith.addf %67, %69 : vector<8x16xf32>
    %cst_61 = arith.constant 0.000000e+00 : f32
    %71 = vector.broadcast %cst_61 : f32 to vector<8x1xf32>
    %cst_62 = arith.constant dense<0xFF800000> : vector<8xf32>
    %72 = vector.multi_reduction <maximumf>, %70, %cst_62 [1] : vector<8x16xf32> to vector<8xf32>
    %73 = vector.shape_cast %72 : vector<8xf32> to vector<8x1xf32>
    %74 = arith.addf %71, %73 : vector<8x1xf32>
    %cst_63 = arith.constant 1.000000e+00 : f32
    %75 = vector.broadcast %cst_63 : f32 to vector<8x1xf32>
    %76 = arith.mulf %74, %75 : vector<8x1xf32>
    %c0_64 = arith.constant 0 : index
    %c0_65 = arith.constant 0 : index
    %c0_66 = arith.constant 0 : index
    %77 = vector.load %arg7[%c0_64, %c0_65, %c0_66] : memref<1x8x1xf32, #tpu.memory_space<vmem>>, vector<1x8x1xf32>
    %78 = vector.shape_cast %77 : vector<1x8x1xf32> to vector<8x1xf32>
    %79 = vector.shape_cast %76 : vector<8x1xf32> to vector<1x8x1xf32>
    tpu.vector_store %arg7[%c0_64, %c0_65, %c0_66], %79 {strides = array<i32>} : memref<1x8x1xf32, #tpu.memory_space<vmem>>, vector<1x8x1xf32>,
    return
  }
  func.func @transform_0(%arg0: i32) -> (i32, i32, i32) {
    %c0_i32 = arith.constant 0 : i32
    %c0_i32_0 = arith.constant 0 : i32
    %c0_i32_1 = arith.constant 0 : i32
    return %arg0, %c0_i32, %c0_i32_0 : i32, i32, i32
  }
  func.func @transform_1(%arg0: i32) -> (i32, i32) {
    %c0_i32 = arith.constant 0 : i32
    %c0_i32_0 = arith.constant 0 : i32
    %c0_i32_1 = arith.constant 0 : i32
    return %c0_i32, %c0_i32_0 : i32, i32
  }
  func.func @transform_2(%arg0: i32) -> (i32, i32, i32) {
    %c0_i32 = arith.constant 0 : i32
    %c0_i32_0 = arith.constant 0 : i32
    %c0_i32_1 = arith.constant 0 : i32
    %c0_i32_2 = arith.constant 0 : i32
    return %c0_i32, %c0_i32_0, %c0_i32_1 : i32, i32, i32
  }
  func.func @transform_3(%arg0: i32) -> (i32, i32) {
    %c0_i32 = arith.constant 0 : i32
    %c0_i32_0 = arith.constant 0 : i32
    %c0_i32_1 = arith.constant 0 : i32
    return %c0_i32, %c0_i32_0 : i32, i32
  }
  func.func @transform_4(%arg0: i32) -> (i32, i32) {
    %c0_i32 = arith.constant 0 : i32
    %c0_i32_0 = arith.constant 0 : i32
    %c0_i32_1 = arith.constant 0 : i32
    return %c0_i32, %c0_i32_0 : i32, i32
  }
  func.func @transform_5(%arg0: i32) -> (i32, i32) {
    %c0_i32 = arith.constant 0 : i32
    %c0_i32_0 = arith.constant 0 : i32
    %c0_i32_1 = arith.constant 0 : i32
    return %c0_i32, %c0_i32_0 : i32, i32
  }
  func.func @transform_6(%arg0: i32) -> (i32, i32, i32) {
    %c0_i32 = arith.constant 0 : i32
    %c0_i32_0 = arith.constant 0 : i32
    %c0_i32_1 = arith.constant 0 : i32
    return %arg0, %c0_i32, %c0_i32_0 : i32, i32, i32
  }
}

</mosaic_0001>

<bundles_post_ra>
// kernel: feature_pyramid_forward.4
= control target key start
LH: loop header
LB: loop body
LE: loop exit
PB: predicated region body
PF: predicated region fallthrough
CT: control target
= control target key end

     0   :  { %s2869_s30 = smov 0   ;;  %s3350_s0 = inlined_call_operand.vmem [shape: f32[64,16], index: 0, kind: input, shape index: {}]   ;;  %s3351_s1 = inlined_call_operand.vmem [shape: f32[2,16,16], index: 1, kind: input, shape index: {}]   ;;  %s3352_s2 = inlined_call_operand.vmem [shape: f32[2,64,16], index: 2, kind: input, shape index: {}]   ;;  %s3353_s3 = inlined_call_operand.vmem [shape: f32[64,2], index: 3, kind: input, shape index: {}]   ;;  %s3354_s4 = inlined_call_operand.vmem [shape: f32[9,16,16], index: 4, kind: input, shape index: {}]   ;;  %s3355_s5 = inlined_call_operand.vmem [shape: f32[1,16], index: 5, kind: input, shape index: {}]   ;;  %s3356_s6 = inlined_call_operand.vmem [shape: f32[8,16], index: 6, kind: input, shape index: {}]   ;;  %s3357_s7 = inlined_call_operand.vmem [shape: f32[8,1], index: 7, kind: input, shape index: {}]   ;;  %s3358_s8 = inlined_call_operand.vmem [shape: f32[2,64,16], index: 8, kind: output, shape index: {0}]   ;;  %s3359_s9 = inlined_call_operand.vmem [shape: f32[2,8,1], index: 9, kind: output, shape index: {1}]  }
   0x1 LB: > { %s2256_s10 = sadd.s32 4294967295, %s2812_s30   ;;  %p2260_p0 = scmp.ge.s32.totalorder %s2812_s30, 1  ;;  %s2812_s30 = sphi %s2869_s30, %s20_s30  }
   0x2   : > { %p300_p1 = scmp.lt.s32.totalorder %s2812_s30, 3 }
   0x4   : > { %p301_p2 = pnand %p2260_p0, %p300_p1 }
   0x5   : > { %p345_p3 = scmp.lt.s32.totalorder (!%p301_p2), %s2256_s10, 1  ;;  %v364_v0 = vld [vmem:[%s3350_s0] sm:$0xff] (!%p301_p2)  ;;  %vm382_vm0 = vcmask (!%p301_p2), 130048   ;;  %v2814_v1 = vmov (!%p301_p2), 0   ;;  %v542_v2 = vld [vmem:[%s3353_s3 + $0x10] sm:$0xff] (!%p301_p2)  ;;  %v543_v4 = vld [vmem:[%s3353_s3 + $0x18] sm:$0xff] (!%p301_p2) }
   0x6   : > { %304 = sbr.rel (%p301_p2) target bundleno = 1826 (0x722), region = 52  ;;  %2492 = vmatprep.mubr.msk.f32.mxu0 (!%p301_p2), %vm382_vm0, %v364_v0  ;;  %2801 = vset.pattern.permute.xlu1 (!%p301_p2), %v2814_v1  ;;  %v540_v3 = vld [vmem:[%s3353_s3] sm:$0xff] (!%p301_p2)  ;;  %v2815_v5 = vmov (!%p301_p2), 0.0   ;;  %v541_v6 = vld [vmem:[%s3353_s3 + $0x8] sm:$0xff] (!%p301_p2)  ;;  %v366_v13 = vld [vmem:[%s3350_s0 + $0x10] sm:$0xff] (!%p301_p2)  ;;  %v2816_v20 = vmov (!%p301_p2), 1  }
   0x7   : > { %2800 = vset.pattern.permute.xlu0 (!%p301_p2), %v2814_v1  ;;  %568 = vperm.xlu1 (!%p301_p2), %2801, %v542_v2   ;;  %520 = vst.msk [vmem:[#allocation2] sm:$0xff] (!%p301_p2), %vm382_vm0, %v2815_v5  ;;  %521 = vst.msk [vmem:[#allocation2 + $0x8] sm:$0xff] (!%p301_p2), %vm382_vm0, %v2815_v5  ;;  %v545_v10 = vld [vmem:[%s3353_s3 + $0x28] sm:$0xff] (!%p301_p2)  ;;  %v544_v11 = vld [vmem:[%s3353_s3 + $0x20] sm:$0xff] (!%p301_p2)  ;;  %vm530_vm1 = vcmask (!%p301_p2), 123904   ;;  %vm2818_vm2 = vmmov (!%p301_p2), 0  }
   0x8   : > { %558 = vperm.xlu0 (!%p301_p2), %2800, %v540_v3   ;;  %522 = vst.msk [vmem:[#allocation2 + $0x10] sm:$0xff] (!%p301_p2), %vm382_vm0, %v2815_v5  ;;  %523 = vst.msk [vmem:[#allocation2 + $0x18] sm:$0xff] (!%p301_p2), %vm382_vm0, %v2815_v5  ;;  %v365_v12 = vld [vmem:[%s3350_s0 + $0x8] sm:$0xff] (!%p301_p2)  ;;  %v547_v14 = vld [vmem:[%s3353_s3 + $0x38] sm:$0xff] (!%p301_p2)  ;;  %vm2104_vm4 = vcmask (!%p301_p2), 523264   ;;  %vm2156_vm11 = vcmask (!%p301_p2), 7168  }
   0x9   : > { %524 = vst.msk [vmem:[#allocation2 + $0x20] sm:$0xff] (!%p301_p2), %vm382_vm0, %v2815_v5  ;;  %525 = vst.msk [vmem:[#allocation2 + $0x28] sm:$0xff] (!%p301_p2), %vm382_vm0, %v2815_v5  ;;  %v546_v15 = vld [vmem:[%s3353_s3 + $0x30] sm:$0xff] (!%p301_p2)  ;;  %v367_v16 = vld [vmem:[%s3350_s0 + $0x18] sm:$0xff] (!%p301_p2) }
   0xa   : > { %526 = vst.msk [vmem:[#allocation2 + $0x30] sm:$0xff] (!%p301_p2), %vm382_vm0, %v2815_v5  ;;  %527 = vst.msk [vmem:[#allocation2 + $0x38] sm:$0xff] (!%p301_p2), %vm382_vm0, %v2815_v5  ;;  %v368_v17 = vld [vmem:[%s3350_s0 + $0x20] sm:$0xff] (!%p301_p2)  ;;  %v369_v18 = vld [vmem:[%s3350_s0 + $0x28] sm:$0xff] (!%p301_p2) }
   0xb   : > { %528 = vst.msk [vmem:[#allocation2 + $0x40] sm:$0xff] (!%p301_p2), %vm382_vm0, %v2815_v5  ;;  %529 = vst.msk [vmem:[#allocation2 + $0x48] sm:$0xff] (!%p301_p2), %vm382_vm0, %v2815_v5  ;;  %573 = vperm.xlu1 (!%p301_p2), %2801, %v543_v4   ;;  %v370_v19 = vld [vmem:[%s3350_s0 + $0x30] sm:$0xff] (!%p301_p2)  ;;  %v371_v21 = vld [vmem:[%s3350_s0 + $0x38] sm:$0xff] (!%p301_p2) }
   0xc   : > { %563 = vperm.xlu0 (!%p301_p2), %2800, %v541_v6   ;;  %v2276_v22 = vld [vmem:[%s3354_s4 + $0x10] sm:$0xff] (!%p301_p2)  ;;  %v2277_v23 = vld [vmem:[%s3354_s4 + $0x18] sm:$0xff] (!%p301_p2)  ;;  %v2314_v29 = vld [vmem:[%s3354_s4 + $0x40] sm:$0xff] (!%p301_p2)  ;;  %531 = vst.msk [vmem:[#allocation2 + $0x50] sm:$0x3] (!%p301_p2), %vm530_vm1, %v2815_v5 }
   0xd   : > { %s3363_s10 = smov (!%p345_p3, %s2256_s10), 1  ;;  %v2671_v24 = vpack.c.bf16 %v2277_v23, %v2276_v22  ;;  %v2304_v25 = vld [vmem:[%s3354_s4 + $0x30] sm:$0xff]  ;;  %v2305_v26 = vld [vmem:[%s3354_s4 + $0x38] sm:$0xff]  ;;  %v2315_v30 = vld [vmem:[%s3354_s4 + $0x48] sm:$0xff] }
   0xe   : > { %s2376_s17 = sshll.u32 %s3363_s10, 4  ;;  %v2683_v27 = vpack.c.bf16 %v2305_v26, %v2304_v25  ;;  %v606_v28 = vld [vmem:[#allocation2 + $0x1] sm:$0xff]  ;;  %v2982_v31 = vpack.c.bf16 %v2315_v30, %v2314_v29  ;;  %s2377_s25 = sshll.u32 %s3363_s10, 6  ;;  %v2324_v62 = vld [vmem:[%s3354_s4 + $0x50] sm:$0xff]  ;;  %v2325_v63 = vld [vmem:[%s3354_s4 + $0x58] sm:$0xff] }
   0xf   : > { %s349_s22 = scalar_lea.vmem %s3351_s1, %s2376_s17  ;;  %583 = vperm.xlu1 %2801, %v545_v10   ;;  %v604_v32 = vld [vmem:[%s3354_s4] sm:$0xff]  ;;  %v605_v33 = vld [vmem:[%s3354_s4 + $0x8] sm:$0xff]  ;;  %s2996_s28 = scalar_lea.vmem %s3352_s2, %s2377_s25  ;;  %vm3322_vm3 = vmpackc.low %vm382_vm0, %vm382_vm0 }
  0x10   : > { %v372_v7 = vld [vmem:[%s349_s22] sm:$0xff]  ;;  %v373_v8 = vld [vmem:[%s349_s22 + $0x8] sm:$0xff]  ;;  %578 = vperm.xlu0 %2800, %v544_v11   ;;  %2684 = vmatprep.subr.bf16.mxu1 %v2683_v27  ;;  %v2675_v34 = vpack.c.bf16 %v605_v33, %v604_v32  ;;  %s3003_s12 = scalar_lea.vmem %s3358_s8, %s2377_s25  ;;  %v377_v41 = vld [vmem:[%s2996_s28 + $0x18] sm:$0xff]  ;;  %s2267_s20 = sshll.u32 %s3363_s10, 3 }
  0x11   : > { %v2667_v9 = vpack.c.bf16 %v373_v8, %v372_v7  ;;  %2686 = vmatpush3.bf16.msra.mxu1 %v2683_v27  ;;  %v375_v35 = vld [vmem:[%s2996_s28 + $0x8] sm:$0xff]  ;;  %v374_v36 = vld [vmem:[%s2996_s28] sm:$0xff]  ;;  %v376_v42 = vld [vmem:[%s2996_s28 + $0x10] sm:$0xff]  ;;  %s363_s23 = scalar_lea.vmem %s3359_s9, %s2267_s20 }
  0x12   : > { %2688 = vmatprep.subr.bf16.mxu1 %v2982_v31  ;;  %v379_v49 = vld [vmem:[%s2996_s28 + $0x28] sm:$0xff]  ;;  %v378_v50 = vld [vmem:[%s2996_s28 + $0x20] sm:$0xff]  ;;  %v381_v57 = vld [vmem:[%s2996_s28 + $0x38] sm:$0xff] }
  0x13   : > { %2668 = vmatprep.subr.bf16.mxu0 %v2667_v9  ;;  %593 = vperm.xlu1 %2801, %v547_v14   ;;  %v2294_v51 = vld [vmem:[%s3354_s4 + $0x20] sm:$0xff]  ;;  %v2295_v52 = vld [vmem:[%s3354_s4 + $0x28] sm:$0xff]  ;;  %v380_v58 = vld [vmem:[%s2996_s28 + $0x30] sm:$0xff] }
  0x14   : > { %2670 = vmatpush3.bf16.msra.mxu0 %v2667_v9  ;;  %588 = vperm.xlu0 %2800, %v546_v15   ;;  %v3033_v59 = vpack.c.bf16 %v2295_v52, %v2294_v51  ;;  %v548_v23 = vld [vmem:[#allocation2] sm:$0xff] }
  0x15   : > { %2672 = vmatprep.subr.bf16.mxu0 %v2671_v24 }
  0x17   : > { %2493 = vmatmul.mubr.msk.f32.vlgmr.msra.gmra.mrb[0].mxu0 %vm382_vm0, %v365_v12  ;;  %2803 = vset.pattern.permute.xlu1 %v2816_v20 }
  0x18   : > { %2495 = vmatprep.mubr.msk.f32.mxu0 %vm382_vm0, %v366_v13  ;;  %2802 = vset.pattern.permute.xlu0 %v2816_v20 }
  0x19   : > { %888 = vperm.xlu1 %2803, %v541_v6   ;;  %884 = vperm.xlu0 %2802, %v540_v3  }
  0x1a   : > { %2674 = vmatpush3.bf16.msra.mxu0 %v2671_v24 }
  0x1b   : > { %2496 = vmatmul.mubr.msk.f32.gmra.mrb[2].mxu0 %vm382_vm0, %v367_v16  ;;  %2676 = vmatprep.subr.bf16.mxu0 %v2675_v34 }
  0x1c   : > { %2498 = vmatprep.mubr.msk.f32.mxu0 %vm382_vm0, %v368_v17 }
  0x1d   : > { %892 = vperm.xlu1 %2803, %v542_v2   ;;  %896 = vperm.xlu0 %2802, %v543_v4  }
  0x1f   : > { %2499 = vmatmul.mubr.msk.f32.gmra.mrb[4].mxu0 %vm382_vm0, %v369_v18 }
  0x20   : > { %2501 = vmatprep.mubr.msk.f32.mxu0 %vm382_vm0, %v370_v19 }
  0x21   : > { %900 = vperm.xlu1 %2803, %v544_v11   ;;  %904 = vperm.xlu0 %2802, %v545_v10   ;;  %v2691_v11 = vpack.c.bf16 %v2325_v63, %v2324_v62  ;;  %v2344_v62 = vld [vmem:[%s3354_s4 + $0x70] sm:$0xff]  ;;  %v2345_v63 = vld [vmem:[%s3354_s4 + $0x78] sm:$0xff] }
  0x23   : > { %2502 = vmatmul.mubr.msk.f32.gmra.mrb[6].mxu0 %vm382_vm0, %v371_v21 }
  0x24   : > { %2508 = vmatprep.mubr.msk.f32.mxu0 %vm382_vm0, %v606_v28 }
  0x25   : > { %908 = vperm.xlu1 %2803, %v546_v15   ;;  %912 = vperm.xlu0 %2802, %v547_v14  }
  0x29   : > { %2804 = vset.pattern.permute.xlu1 %v2814_v1  ;;  %2805 = vset.pattern.permute.xlu0 %v2814_v1 }
  0x86   : > { %v3013_v44 = vpop.permute.xlu1 %568 }
  0x87   : > { %v3015_v47 = vpop.permute.xlu0 %558 }
  0x88   : > { %v596_v28 = vmul.f32 %v3015_v47, %v548_v23 }
  0x8a   : > { %v3035_v60 = vpop.permute.xlu1 %573 }
  0x8b   : > { %v3048_v0 = vpop.permute.xlu0 %563 }
  0x8e   : > { %v3086_v17 = vpop.permute.xlu1 %583 }
  0x8f   : > { %v3088_v18 = vpop.permute.xlu0 %578 }
  0x92   : > { %v3116_v29 = vpop.permute.xlu1 %593 }
  0x93   : > { %v3118_v30 = vpop.permute.xlu0 %588 }
  0xea   : > { %v2494_v37 = vpop.f32.mrb[0].mxu0 }
  0xeb   : > { %v479_v38 = vadd.f32 %v2494_v37, %v375_v35  ;;  %v473_v39 = vpop.f32.mrb[1].mxu0  ;;  %v2334_v37 = vld [vmem:[%s3354_s4 + $0x60] sm:$0xff] }
  0xec   : > { %v474_v40 = vadd.f32 %v473_v39, %v374_v36  ;;  %v3148_v39 = vpop.permute.xlu1 %888 }
  0xed   : > { %513 = vst.msk [vmem:[%s3003_s12 + $0x8] sm:$0xff] %vm382_vm0, %v479_v38  ;;  %533 = vst.msk [vmem:[#allocation2 + $0x11] sm:$0xff] %vm382_vm0, %v479_v38  ;;  %v2335_v38 = vld [vmem:[%s3354_s4 + $0x68] sm:$0xff] }
  0xee   : > { %512 = vst.msk [vmem:[%s3003_s12] sm:$0xff] %vm382_vm0, %v474_v40  ;;  %532 = vst.msk [vmem:[#allocation2 + $0x9] sm:$0xff] %vm382_vm0, %v474_v40  ;;  %v2497_v43 = vpop.f32.mrb[2].mxu0 }
  0xef   : > { %v489_v45 = vadd.f32 %v2497_v43, %v377_v41  ;;  %v483_v46 = vpop.f32.mrb[3].mxu0  ;;  %v2695_v41 = vpack.c.bf16 %v2335_v38, %v2334_v37  ;;  %v3157_v43 = vpop.permute.xlu0 %884 }
  0xf0   : > { %v484_v48 = vadd.f32 %v483_v46, %v376_v42 }
  0xf1   : > { %515 = vst.msk [vmem:[%s3003_s12 + $0x18] sm:$0xff] %vm382_vm0, %v489_v45  ;;  %535 = vst.msk [vmem:[#allocation2 + $0x21] sm:$0xff] %vm382_vm0, %v489_v45 }
  0xf2   : > { %514 = vst.msk [vmem:[%s3003_s12 + $0x10] sm:$0xff] %vm382_vm0, %v484_v48  ;;  %534 = vst.msk [vmem:[#allocation2 + $0x19] sm:$0xff] %vm382_vm0, %v484_v48  ;;  %v2500_v53 = vpop.f32.mrb[4].mxu0 }
  0xf3   : > { %v499_v54 = vadd.f32 %v2500_v53, %v379_v49  ;;  %v493_v55 = vpop.f32.mrb[5].mxu0  ;;  %v3168_v49 = vpop.permute.xlu1 %892 }
  0xf4   : > { %v494_v56 = vadd.f32 %v493_v55, %v378_v50  ;;  %v3055_v2 = vld [vmem:[#allocation2 + $0x11] sm:$0xff]  ;;  %v3177_v53 = vpop.permute.xlu0 %896 }
  0xf5   : > { %517 = vst.msk [vmem:[%s3003_s12 + $0x28] sm:$0xff] %vm382_vm0, %v499_v54  ;;  %537 = vst.msk [vmem:[#allocation2 + $0x31] sm:$0xff] %vm382_vm0, %v499_v54  ;;  %v3040_v61 = vld [vmem:[#allocation2 + $0x9] sm:$0xff] }
  0xf6   : > { %516 = vst.msk [vmem:[%s3003_s12 + $0x20] sm:$0xff] %vm382_vm0, %v494_v56  ;;  %536 = vst.msk [vmem:[#allocation2 + $0x29] sm:$0xff] %vm382_vm0, %v494_v56  ;;  %v2503_v1 = vpop.f32.mrb[6].mxu0  ;;  %2509 = vmatmul.mubr.msk.f32.vlgmr.msra.gmra.mrb[8].mxu0 %vm382_vm0, %v3040_v61  ;;  %v1063_v3 = vld [vmem:[#allocation2 + $0x8] sm:$0xff]  ;;  %v3057_v4 = vld [vmem:[#allocation2 + $0x10] sm:$0xff] }
  0xf7   : > { %v509_v6 = vadd.f32 %v2503_v1, %v381_v57  ;;  %v503_v7 = vpop.f32.mrb[7].mxu0  ;;  %2511 = vmatprep.mubr.msk.f32.mxu0 %vm382_vm0, %v3055_v2  ;;  %v1071_v8 = vmul.f32 %v1063_v3, %v3015_v47  ;;  %v1072_v9 = vmul.f32 %v3057_v4, %v3048_v0  ;;  %2678 = vmatpush3.bf16.msra.mxu0 %v2675_v34  ;;  %v875_v48 = vld [vmem:[#allocation2 + $0x2] sm:$0xff]  ;;  %v876_v51 = vld [vmem:[#allocation2 + $0xa] sm:$0xff]  ;;  %v3189_v57 = vpop.permute.xlu1 %900 }
  0xf8   : > { %v504_v10 = vadd.f32 %v503_v7, %v380_v58  ;;  %2680 = vmatprep.subr.bf16.mxu0 %v3033_v59  ;;  %v3082_v15 = vld [vmem:[#allocation2 + $0x21] sm:$0xff]  ;;  %v597_v35 = vmul.f32 %v1063_v3, %v3048_v0  ;;  %v598_v36 = vmul.f32 %v3057_v4, %v3013_v44  ;;  %v915_v52 = vmul.f32 %v3157_v43, %v875_v48 }
  0xf9   : > { %519 = vst.msk [vmem:[%s3003_s12 + $0x38] sm:$0xff] %vm382_vm0, %v509_v6  ;;  %539 = vst.msk [vmem:[#allocation2 + $0x41] sm:$0xff] %vm382_vm0, %v509_v6  ;;  %2556 = vmatprep.mubr.msk.f32.mxu1 %vm382_vm0, %v1071_v8  ;;  %v3069_v12 = vld [vmem:[#allocation2 + $0x19] sm:$0xff]  ;;  %v916_v55 = vmul.f32 %v3148_v39, %v876_v51  ;;  %v1375_v56 = vmul.f32 %v3157_v43, %v876_v51  ;;  %v3211_v6 = vpop.permute.xlu0 %904  ;;  %v2699_v8 = vpack.c.bf16 %v2345_v63, %v2344_v62 }
  0xfa   : > { %518 = vst.msk [vmem:[%s3003_s12 + $0x30] sm:$0xff] %vm382_vm0, %v504_v10  ;;  %538 = vst.msk [vmem:[#allocation2 + $0x39] sm:$0xff] %vm382_vm0, %v504_v10  ;;  %2557 = vmatmul.mubr.msk.f32.vlgmr.msra.gmra.mrb[0].mxu1 %vm382_vm0, %v1072_v9  ;;  %v3075_v13 = vld [vmem:[#allocation2 + $0x18] sm:$0xff]  ;;  %v3077_v14 = vld [vmem:[#allocation2 + $0x20] sm:$0xff]  ;;  %2512 = vmatmul.mubr.msk.f32.gmra.mrb[10].mxu0 %vm382_vm0, %v3069_v12 }
  0xfb   : > { %2690 = vmatpush3.bf16.msra.mxu1 %v2982_v31  ;;  %v1073_v16 = vmul.f32 %v3075_v13, %v3013_v44  ;;  %2514 = vmatprep.mubr.msk.f32.mxu0 %vm382_vm0, %v3082_v15  ;;  %v1074_v19 = vmul.f32 %v3077_v14, %v3035_v60  ;;  %v599_v40 = vmul.f32 %v3075_v13, %v3035_v60  ;;  %v3181_v54 = vld [vmem:[#allocation2 + $0x12] sm:$0xff] }
  0xfc   : > { %2692 = vmatprep.subr.bf16.mxu1 %v2691_v11  ;;  %v3104_v24 = vld [vmem:[#allocation2 + $0x31] sm:$0xff]  ;;  %v600_v42 = vmul.f32 %v3077_v14, %v3088_v18  ;;  %v1376_v3 = vmul.f32 %v3181_v54, %v3148_v39 }
  0xfd   : > { %2559 = vmatprep.mubr.msk.f32.mxu1 %vm382_vm0, %v1073_v16  ;;  %v3095_v20 = vld [vmem:[#allocation2 + $0x29] sm:$0xff] }
  0xfe   : > { %2560 = vmatmul.mubr.msk.f32.gmra.mrb[2].mxu1 %vm382_vm0, %v1074_v19  ;;  %v3098_v21 = vld [vmem:[#allocation2 + $0x28] sm:$0xff]  ;;  %v3100_v22 = vld [vmem:[#allocation2 + $0x30] sm:$0xff]  ;;  %2515 = vmatmul.mubr.msk.f32.gmra.mrb[12].mxu0 %vm382_vm0, %v3095_v20  ;;  %v3225_v19 = vpop.permute.xlu1 %908 }
  0xff   : > { %v1075_v25 = vmul.f32 %v3098_v21, %v3088_v18  ;;  %v1076_v26 = vmul.f32 %v3100_v22, %v3086_v17  ;;  %2517 = vmatprep.mubr.msk.f32.mxu0 %vm382_vm0, %v3104_v24  ;;  %v601_v45 = vmul.f32 %v3098_v21, %v3086_v17  ;;  %v602_v46 = vmul.f32 %v3100_v22, %v3118_v30  ;;  %v3205_v1 = vld [vmem:[#allocation2 + $0x22] sm:$0xff]  ;;  %v3218_v10 = vld [vmem:[#allocation2 + $0x2a] sm:$0xff] }
 0x100   : > { %v3191_v58 = vld [vmem:[#allocation2 + $0x41] sm:$0xff]  ;;  %v1378_v23 = vmul.f32 %v3205_v1, %v3177_v53 }
 0x101   : > { %2562 = vmatprep.mubr.msk.f32.mxu1 %vm382_vm0, %v1075_v25  ;;  %v3113_v27 = vld [vmem:[#allocation2 + $0x39] sm:$0xff]  ;;  %v1379_v25 = vmul.f32 %v3218_v10, %v3189_v57  ;;  %v1833_v37 = vld [vmem:[#allocation2 + $0x42] sm:$0xff] }
 0x102   : > { %2563 = vmatmul.mubr.msk.f32.gmra.mrb[4].mxu1 %vm382_vm0, %v1076_v26  ;;  %v3121_v31 = vld [vmem:[#allocation2 + $0x38] sm:$0xff]  ;;  %v3123_v32 = vld [vmem:[#allocation2 + $0x40] sm:$0xff]  ;;  %2518 = vmatmul.mubr.msk.f32.gmra.mrb[14].mxu0 %vm382_vm0, %v3113_v27  ;;  %v920_v26 = vmul.f32 %v3218_v10, %v3211_v6 }
 0x103   : > { %v1077_v33 = vmul.f32 %v3121_v31, %v3118_v30  ;;  %v1078_v34 = vmul.f32 %v3123_v32, %v3116_v29  ;;  %2524 = vmatprep.mubr.msk.f32.mxu0 %vm382_vm0, %v596_v28  ;;  %v603_v50 = vmul.f32 %v3121_v31, %v3116_v29  ;;  %v3223_v16 = vld [vmem:[#allocation2 + $0x32] sm:$0xff]  ;;  %v1832_v28 = vld [vmem:[#allocation2 + $0x3a] sm:$0xff] }
 0x105   : > { %2565 = vmatprep.mubr.msk.f32.mxu1 %vm382_vm0, %v1077_v33  ;;  %v921_v33 = vmul.f32 %v3223_v16, %v3225_v19 }
 0x106   : > { %2566 = vmatmul.mubr.msk.f32.gmra.mrb[6].mxu1 %vm382_vm0, %v1078_v34  ;;  %2525 = vmatmul.mubr.msk.f32.vlgmr.msra.gmra.mrb[8].mxu0 %vm382_vm0, %v597_v35  ;;  %v913_v34 = vpop.permute.xlu0 %912  ;;  %v1380_v35 = vmul.f32 %v3223_v16, %v3211_v6 }
 0x107   : > { %2572 = vmatprep.mubr.msk.f32.mxu1 %vm382_vm0, %v3040_v61  ;;  %2527 = vmatprep.mubr.msk.f32.mxu0 %vm382_vm0, %v598_v36  ;;  %v917_v61 = vmul.f32 %v3181_v54, %v3168_v49  ;;  %v1381_v36 = vmul.f32 %v1832_v28, %v3225_v19  ;;  %v922_v38 = vmul.f32 %v1832_v28, %v913_v34 }
 0x108   : > { %2682 = vmatpush3.bf16.msra.mxu0 %v3033_v59  ;;  %v3193_v59 = vld [vmem:[#allocation2 + $0x1a] sm:$0xff] }
 0x109   : > { %v918_v7 = vmul.f32 %v3193_v59, %v3177_v53  ;;  %v1377_v9 = vmul.f32 %v3193_v59, %v3168_v49 }
 0x10a   : > { %2573 = vmatmul.mubr.msk.f32.vlgmr.msra.gmra.mrb[0].mxu1 %vm382_vm0, %v3055_v2  ;;  %2528 = vmatmul.mubr.msk.f32.gmra.mrb[10].mxu0 %vm382_vm0, %v599_v40  ;;  %v1382_v40 = vmul.f32 %v1833_v37, %v913_v34 }
 0x10b   : > { %2694 = vmatpush3.bf16.msra.mxu1 %v2691_v11  ;;  %2575 = vmatprep.mubr.msk.f32.mxu1 %vm382_vm0, %v3069_v12  ;;  %v919_v11 = vmul.f32 %v3205_v1, %v3189_v57 }
 0x10c   : > { %2530 = vmatprep.mubr.msk.f32.mxu0 %vm382_vm0, %v600_v42  ;;  %2696 = vmatprep.subr.bf16.mxu1 %v2695_v41  ;;  %v2354_v42 = vld [vmem:[%s3354_s4 + $0x80] sm:$0xff] }
 0x10e   : > { %2576 = vmatmul.mubr.msk.f32.gmra.mrb[2].mxu1 %vm382_vm0, %v3082_v15  ;;  %2531 = vmatmul.mubr.msk.f32.gmra.mrb[12].mxu0 %vm382_vm0, %v601_v45  ;;  %v2355_v45 = vld [vmem:[%s3354_s4 + $0x88] sm:$0xff] }
 0x10f   : > { %2578 = vmatprep.mubr.msk.f32.mxu1 %vm382_vm0, %v3095_v20  ;;  %2533 = vmatprep.mubr.msk.f32.mxu0 %vm382_vm0, %v602_v46  ;;  %v1532_v46 = vmul.f32 %v3075_v13, %v3048_v0  ;;  %v2703_v48 = vpack.c.bf16 %v2355_v45, %v2354_v42  ;;  %v1536_v0 = vmul.f32 %v3121_v31, %v3086_v17  ;;  %v1530_v13 = vld [vmem:[#allocation2 + $0x48] sm:$0xff] }
 0x110   : > { %v1838_v17 = vmul.f32 %v3218_v10, %v3177_v53 }
 0x112   : > { %2579 = vmatmul.mubr.msk.f32.gmra.mrb[4].mxu1 %vm382_vm0, %v3104_v24  ;;  %2534 = vmatmul.mubr.msk.f32.gmra.mrb[14].mxu0 %vm382_vm0, %v603_v50  ;;  %v1533_v50 = vmul.f32 %v3077_v14, %v3013_v44  ;;  %v1537_v44 = vmul.f32 %v3123_v32, %v3118_v30  ;;  %v1836_v14 = vmul.f32 %v3193_v59, %v3148_v39 }
 0x113   : > { %2581 = vmatprep.mubr.msk.f32.mxu1 %vm382_vm0, %v3113_v27  ;;  %2540 = vmatprep.mubr.msk.f32.mxu0 %vm382_vm0, %v915_v52 }
 0x116   : > { %2582 = vmatmul.mubr.msk.f32.gmra.mrb[6].mxu1 %vm382_vm0, %v3191_v58  ;;  %2541 = vmatmul.mubr.msk.f32.vlgmr.msra.gmra.mrb[8].mxu0 %vm382_vm0, %v916_v55 }
 0x117   : > { %2588 = vmatprep.mubr.msk.f32.mxu1 %vm382_vm0, %v1375_v56  ;;  %2543 = vmatprep.mubr.msk.f32.mxu0 %vm382_vm0, %v917_v61 }
 0x11a   : > { %2589 = vmatmul.mubr.msk.f32.vlgmr.msra.gmra.mrb[0].mxu1 %vm382_vm0, %v1376_v3  ;;  %2544 = vmatmul.mubr.msk.f32.gmra.mrb[10].mxu0 %vm382_vm0, %v918_v7 }
 0x11b   : > { %2698 = vmatpush3.bf16.msra.mxu1 %v2695_v41  ;;  %2591 = vmatprep.mubr.msk.f32.mxu1 %vm382_vm0, %v1377_v9  ;;  %v1531_v41 = vmul.f32 %v3057_v4, %v3015_v47  ;;  %v1534_v47 = vmul.f32 %v3098_v21, %v3035_v60  ;;  %v1535_v4 = vmul.f32 %v3100_v22, %v3088_v18  ;;  %v1834_v22 = vld [vmem:[#allocation2 + $0x4a] sm:$0xff] }
 0x11c   : > { %2546 = vmatprep.mubr.msk.f32.mxu0 %vm382_vm0, %v919_v11  ;;  %2700 = vmatprep.subr.bf16.mxu1 %v2699_v8  ;;  %v1538_v60 = vmul.f32 %v1530_v13, %v3116_v29  ;;  %v1839_v18 = vmul.f32 %v3223_v16, %v3189_v57  ;;  %v1841_v21 = vmul.f32 %v1833_v37, %v3225_v19  ;;  %v1999_v29 = vld [vmem:[%s3357_s7] sm:$0xff] }
 0x11d   : > { %2002 = vperm.xlu1 %2804, %v1999_v29  }
 0x11e   : > { %2592 = vmatmul.mubr.msk.f32.gmra.mrb[2].mxu1 %vm382_vm0, %v1378_v23  ;;  %2547 = vmatmul.mubr.msk.f32.gmra.mrb[12].mxu0 %vm382_vm0, %v920_v26 }
 0x11f   : > { %2594 = vmatprep.mubr.msk.f32.mxu1 %vm382_vm0, %v1379_v25  ;;  %2549 = vmatprep.mubr.msk.f32.mxu0 %vm382_vm0, %v921_v33 }
 0x122   : > { %2595 = vmatmul.mubr.msk.f32.gmra.mrb[4].mxu1 %vm382_vm0, %v1380_v35  ;;  %2550 = vmatmul.mubr.msk.f32.gmra.mrb[14].mxu0 %vm382_vm0, %v922_v38  ;;  %v1998_v38 = vld [vmem:[%s3356_s6] sm:$0xff] }
 0x123   : > { %2597 = vmatprep.mubr.msk.f32.mxu1 %vm382_vm0, %v1381_v36  ;;  %2664 = vmatprep.mubr.msk.f32.mxu0 %vm2818_vm2, %v2815_v5 }
 0x126   : > { %2598 = vmatmul.mubr.msk.f32.gmra.mrb[6].mxu1 %vm382_vm0, %v1382_v40 }
 0x127   : > { %2604 = vmatprep.mubr.msk.f32.mxu1 %vm382_vm0, %v1531_v41 }
 0x12a   : > { %2605 = vmatmul.mubr.msk.f32.vlgmr.msra.gmra.mrb[0].mxu1 %vm382_vm0, %v1532_v46 }
 0x12b   : > { %2702 = vmatpush3.bf16.msra.mxu1 %v2699_v8  ;;  %2607 = vmatprep.mubr.msk.f32.mxu1 %vm382_vm0, %v1533_v50 }
 0x12c   : > { %2704 = vmatprep.subr.bf16.mxu1 %v2703_v48 }
 0x12e   : > { %2608 = vmatmul.mubr.msk.f32.gmra.mrb[2].mxu1 %vm382_vm0, %v1534_v47 }
 0x12f   : > { %2610 = vmatprep.mubr.msk.f32.mxu1 %vm382_vm0, %v1535_v4 }
 0x132   : > { %2611 = vmatmul.mubr.msk.f32.gmra.mrb[4].mxu1 %vm382_vm0, %v1536_v0 }
 0x133   : > { %2613 = vmatprep.mubr.msk.f32.mxu1 %vm382_vm0, %v1537_v44 }
 0x136   : > { %2614 = vmatmul.mubr.msk.f32.gmra.mrb[6].mxu1 %vm382_vm0, %v1538_v60 }
 0x137   : > { %2620 = vmatprep.mubr.msk.f32.mxu1 %vm382_vm0, %v3055_v2  ;;  %v1686_v2 = vld [vmem:[#allocation2 + $0x49] sm:$0xff] }
 0x13a   : > { %2621 = vmatmul.mubr.msk.f32.vlgmr.msra.gmra.mrb[0].mxu1 %vm382_vm0, %v3069_v12  ;;  %v1835_v12 = vmul.f32 %v3181_v54, %v3157_v43  ;;  %v2364_v54 = vld [vmem:[%s3355_s5] ss:$0 sm:$0xff] }
 0x13b   : > { %2706 = vmatpush3.bf16.msra.mxu1 %v2703_v48  ;;  %2623 = vmatprep.mubr.msk.f32.mxu1 %vm382_vm0, %v3082_v15  ;;  %v1837_v15 = vmul.f32 %v3205_v1, %v3168_v49  ;;  %v2102_v48 = vlaneseq }
 0x13d   : > { %v2103_v50 = vand.u32 127, %v2102_v48 }
 0x13e   : > { %2624 = vmatmul.mubr.msk.f32.gmra.mrb[2].mxu1 %vm382_vm0, %v3095_v20  ;;  %v1840_v20 = vmul.f32 %v1832_v28, %v3211_v6 }
 0x13f   : > { %2626 = vmatprep.mubr.msk.f32.mxu1 %vm382_vm0, %v3104_v24  ;;  %v1842_v24 = vmul.f32 %v1834_v22, %v913_v34 }
 0x142   : > { %2627 = vmatmul.mubr.msk.f32.gmra.mrb[4].mxu1 %vm382_vm0, %v3113_v27  ;;  %v2817_v27 = vmov 0.0|0.0  }
 0x143   : > { %2629 = vmatprep.mubr.msk.f32.mxu1 %vm382_vm0, %v3191_v58  ;;  %2707 = vmatprep.subr.bf16.mxu0 %v2817_v27 }
 0x146   : > { %2630 = vmatmul.mubr.msk.f32.gmra.mrb[6].mxu1 %vm382_vm0, %v1686_v2 }
 0x147   : > { %2636 = vmatprep.mubr.msk.f32.mxu1 %vm382_vm0, %v1835_v12 }
 0x14a   : > { %2637 = vmatmul.mubr.msk.f32.vlgmr.msra.gmra.mrb[0].mxu1 %vm382_vm0, %v1836_v14 }
 0x14b   : > { %2639 = vmatprep.mubr.msk.f32.mxu1 %vm382_vm0, %v1837_v15 }
 0x14e   : > { %2640 = vmatmul.mubr.msk.f32.gmra.mrb[2].mxu1 %vm382_vm0, %v1838_v17 }
 0x14f   : > { %2642 = vmatprep.mubr.msk.f32.mxu1 %vm382_vm0, %v1839_v18 }
 0x152   : > { %2643 = vmatmul.mubr.msk.f32.gmra.mrb[4].mxu1 %vm382_vm0, %v1840_v20 }
 0x153   : > { %2645 = vmatprep.mubr.msk.f32.mxu1 %vm382_vm0, %v1841_v21 }
 0x156   : > { %2646 = vmatmul.mubr.msk.f32.gmra.mrb[6].mxu1 %vm382_vm0, %v1842_v24 }
 0x19c   : > { %v2003_v40 = vpop.permute.xlu1 %2002 }
 0x1e9   : > { %v2542_v30 = vpop.f32.mrb[8].mxu0 }
 0x1ea   : > { %v1016_v31 = vpop.f32.mrb[9].mxu0 }
 0x1ed   : > { %v2545_v32 = vpop.f32.mrb[10].mxu0 }
 0x1ee   : > { %v1026_v39 = vpop.f32.mrb[11].mxu0 }
 0x1f1   : > { %v2548_v43 = vpop.f32.mrb[12].mxu0 }
 0x1f2   : > { %v1036_v49 = vpop.f32.mrb[13].mxu0 }
 0x1f5   : > { %v2551_v51 = vpop.f32.mrb[14].mxu0 }
 0x1f6   : > { %v1046_v52 = vpop.f32.mrb[15].mxu0 }
 0x21d   : > { %v2638_v53 = vpop.f32.mrb[0].mxu1 }
 0x21e   : > { %v2723_v55 = vadd.f32 %v2638_v53, %v2542_v30  ;;  %v1936_v5 = vpop.f32.mrb[1].mxu1 }
 0x21f   : > { %v2724_v56 = vadd.f32 %v1936_v5, %v1016_v31 }
 0x220   : > { %v1991_v57 = vadd.f32 %v2723_v55, %v2364_v54 }
 0x221   : > { %v1990_v58 = vadd.f32 %v2724_v56, %v2364_v54  ;;  %v2641_v59 = vpop.f32.mrb[2].mxu1 }
 0x222   : > { %v2725_v61 = vadd.f32 %v2641_v59, %v2545_v32  ;;  %v1946_v62 = vpop.f32.mrb[3].mxu1 }
 0x223   : > { %v2708_v1 = vpack.c.bf16 %v1991_v57, %v1990_v58  ;;  %v2726_v3 = vadd.f32 %v1946_v62, %v1026_v39 }
 0x224   : > { %v1993_v6 = vadd.f32 %v2725_v61, %v2364_v54 }
 0x225   : > { %v1992_v7 = vadd.f32 %v2726_v3, %v2364_v54  ;;  %v2644_v8 = vpop.f32.mrb[4].mxu1  ;;  %2710 = vmatpush3.bf16.xpose.msk.msra.mxu0 %vm3322_vm3, %v2708_v1 }
 0x226   : > { %v2727_v9 = vadd.f32 %v2644_v8, %v2548_v43  ;;  %v1956_v10 = vpop.f32.mrb[5].mxu1  ;;  %2711 = vmatprep.subr.bf16.mxu0 %v2817_v27 }
 0x227   : > { %v2712_v11 = vpack.c.bf16 %v1993_v6, %v1992_v7  ;;  %v2728_v16 = vadd.f32 %v1956_v10, %v1036_v49 }
 0x228   : > { %v1995_v19 = vadd.f32 %v2727_v9, %v2364_v54 }
 0x229   : > { %v1994_v23 = vadd.f32 %v2728_v16, %v2364_v54  ;;  %v2647_v25 = vpop.f32.mrb[6].mxu1 }
 0x22a   : > { %v2729_v26 = vadd.f32 %v2647_v25, %v2551_v51  ;;  %v1966_v28 = vpop.f32.mrb[7].mxu1 }
 0x22b   : > { %v2716_v33 = vpack.c.bf16 %v1995_v19, %v1994_v23  ;;  %v2730_v34 = vadd.f32 %v1966_v28, %v1046_v52 }
 0x22c   : > { %v1997_v35 = vadd.f32 %v2729_v26, %v2364_v54 }
 0x22d   : > { %v1996_v36 = vadd.f32 %v2730_v34, %v2364_v54  ;;  %2714 = vmatpush3.bf16.xpose.msk.msra.mxu0 %vm3322_vm3, %v2712_v11 }
 0x22e   : > { %2715 = vmatprep.subr.bf16.mxu0 %v2817_v27 }
 0x22f   : > { %v2720_v37 = vpack.c.bf16 %v1997_v35, %v1996_v36 }
 0x235   : > { %2718 = vmatpush3.bf16.xpose.msk.msra.mxu0 %vm3322_vm3, %v2716_v33 }
 0x236   : > { %2719 = vmatprep.subr.bf16.mxu0 %v2817_v27 }
 0x23d   : > { %2722 = vmatpush3.bf16.xpose.msk.msra.mxu0 %vm3322_vm3, %v2720_v37 }
 0x244   : > { %2665 = vmatmul.mubr.msk.f32.vlgmr.msra.gmra.mrb[16].mxu0 %vm382_vm0, %v1998_v38 }
 0x317   : > { %v2098_v41 = vpop.f32.mrb[16].mxu0 }
 0x318   : > { %v2099_v42 = vadd.f32 %v2098_v41, %v2003_v40  ;;  %v2666_v45 = vpop.f32.mrb[17].mxu0 }
 0x31a   : > { %v2105_v46 = vsel %vm2104_vm4, %v2099_v42, -inf }
 0x31b   : > { %2106 = vmax.xlane.f32.xlu0 %v2105_v46 }
 0x3a8   : > { %v2107_v47 = vpop.xlane.xlu0 %2106 }
 0x3a9   : > { %vm2109_vm5 = vcmp.eq.f32.partialorder %v2099_v42, %v2107_v47 }
 0x3aa   : > { %v2110_v4 = vsel %vm2109_vm5, %v2103_v50, 64 }
 0x3ab   : > { %v2111_v0 = vsel %vm2104_vm4, %v2110_v4, 2147483647 }
 0x3ac   : > { %v2113_v44 = vshra.s32 %v2111_v0, 16  ;;  %v2112_v60 = vand.u32 65535, %v2111_v0 }
 0x3ae   : > { %v2115_v13 = vcvt.s32.f32 %v2113_v44  ;;  %v2114_v12 = vcvt.s32.f32 %v2112_v60 }
 0x3b0   : > { %2116 = vmin.xlane.f32.xlu1 %v2115_v13 }
 0x43d   : > { %v2117_v2 = vpop.xlane.xlu1 %2116 }
 0x43e   : > { %vm2118_vm6 = vcmp.eq.f32.partialorder %v2115_v13, %v2117_v2  ;;  %v2123_v15 = vcvt.f32.s32 %v2117_v2 }
 0x43f   : > { %v2119_v14 = vsel %vm2118_vm6, %v2114_v12, inf }
 0x440   : > { %2120 = vmin.xlane.f32.xlu0 %v2119_v14  ;;  %v2124_v18 = vshll.u32 %v2123_v15, 16 }
 0x4cd   : > { %v2121_v17 = vpop.xlane.xlu0 %2120 }
 0x4ce   : > { %v2122_v20 = vcvt.f32.s32 %v2121_v17 }
 0x4d0   : > { %v2125_v21 = vadd.s32 %v2124_v18, %v2122_v20 }
 0x4d2   : > { %vm2126_vm7 = vcmp.eq.s32.totalorder %v2103_v50, %v2125_v21 }
 0x4d3   : > { %v2127_v22 = vsel %vm2126_vm7, -inf, %v2099_v42 }
 0x4d4   : > { %v2128_v24 = vsel %vm2104_vm4, %v2127_v22, -inf }
 0x4d5   : > { %2129 = vmax.xlane.f32.xlu0 %v2128_v24 }
 0x562   : > { %v2130_v27 = vpop.xlane.xlu0 %2129 }
 0x563   : > { %vm2132_vm8 = vcmp.eq.f32.partialorder %v2127_v22, %v2130_v27  ;;  %v2131_v58 = vadd.f32 %v2130_v27, %v2107_v47 }
 0x564   : > { %v2133_v29 = vsel %vm2132_vm8, %v2103_v50, 64 }
 0x565   : > { %v2134_v30 = vsel %vm2104_vm4, %v2133_v29, 2147483647 }
 0x566   : > { %v2136_v31 = vshra.s32 %v2134_v30, 16  ;;  %v2135_v39 = vand.u32 65535, %v2134_v30 }
 0x568   : > { %v2138_v32 = vcvt.s32.f32 %v2136_v31  ;;  %v2137_v49 = vcvt.s32.f32 %v2135_v39 }
 0x56a   : > { %2139 = vmin.xlane.f32.xlu1 %v2138_v32 }
 0x5f7   : > { %v2140_v43 = vpop.xlane.xlu1 %2139 }
 0x5f8   : > { %vm2141_vm9 = vcmp.eq.f32.partialorder %v2138_v32, %v2140_v43  ;;  %v2146_v52 = vcvt.f32.s32 %v2140_v43 }
 0x5f9   : > { %v2142_v51 = vsel %vm2141_vm9, %v2137_v49, inf }
 0x5fa   : > { %2143 = vmin.xlane.f32.xlu0 %v2142_v51  ;;  %v2147_v54 = vshll.u32 %v2146_v52, 16 }
 0x687   : > { %v2144_v53 = vpop.xlane.xlu0 %2143 }
 0x688   : > { %v2145_v55 = vcvt.f32.s32 %v2144_v53 }
 0x68a   : > { %v2148_v5 = vadd.s32 %v2147_v54, %v2145_v55 }
 0x68c   : > { %vm2149_vm10 = vcmp.eq.s32.totalorder %v2103_v50, %v2148_v5 }
 0x68d   : > { %v2150_v56 = vsel %vm2149_vm10, -inf, %v2127_v22 }
 0x68e   : > { %v2151_v57 = vsel %vm2104_vm4, %v2150_v56, -inf }
 0x68f   : > { %2152 = vmax.xlane.f32.xlu1 %v2151_v57 }
 0x71c   : > { %v2153_v59 = vpop.xlane.xlu1 %2152 }
 0x71d   : > { %v2154_v61 = vadd.f32 %v2153_v59, %v2131_v58 }
 0x71f   : > { %v2155_v62 = vmul.f32 0.33333334, %v2154_v61 }
 0x721   : > { %2157 = vst.msk [vmem:[%s363_s23] sm:$0xff] %vm2156_vm11, %v2155_v62 }
 0x722 PF: > { %s20_s30 = sadd.s32 1, %s2812_s30  }
 0x723   : > { %p17_p4 = scmp.ge.s32.totalorder %s20_s30, 4  }
 0x725   :  { %19 = sbr.rel (!%p17_p4) target bundleno = 1 (0x1), region = 105 }

// kernel: feature_pyramid_forward.3
= control target key start
LH: loop header
LB: loop body
LE: loop exit
PB: predicated region body
PF: predicated region fallthrough
CT: control target
= control target key end

     0   :  { %s1510_s21 = smov 0   ;;  %s1636_s0 = inlined_call_operand.vmem [shape: f32[2,16,16], index: 0, kind: input, shape index: {}]   ;;  %s1637_s1 = inlined_call_operand.vmem [shape: f32[16,2], index: 1, kind: input, shape index: {}]   ;;  %s1638_s2 = inlined_call_operand.vmem [shape: f32[9,16,16], index: 2, kind: input, shape index: {}]   ;;  %s1639_s3 = inlined_call_operand.vmem [shape: f32[1,16], index: 3, kind: input, shape index: {}]   ;;  %s1640_s4 = inlined_call_operand.vmem [shape: f32[8,16], index: 4, kind: input, shape index: {}]   ;;  %s1641_s5 = inlined_call_operand.vmem [shape: f32[8,1], index: 5, kind: input, shape index: {}]   ;;  %s1642_s6 = inlined_call_operand.vmem [shape: f32[2,8,1], index: 6, kind: output, shape index: {}]  }
   0x1 LB: > { %s1233_s22 = sadd.s32 4294967295, %s1468_s21   ;;  %p1237_p0 = scmp.ge.s32.totalorder %s1468_s21, 1  ;;  %s1468_s21 = sphi %s1510_s21, %s16_s21  }
   0x2   : > { %p212_p1 = scmp.lt.s32.totalorder %s1468_s21, 3 }
   0x4   : > { %p213_p2 = pnand %p1237_p0, %p212_p1 }
   0x5   : > { %v260_v0 = vld [vmem:[%s1637_s1] sm:$0xff] (!%p213_p2)  ;;  %p241_p3 = scmp.lt.s32.totalorder (!%p213_p2), %s1233_s22, 1  ;;  %v1470_v1 = vmov (!%p213_p2), 0   ;;  %v1471_v2 = vmov (!%p213_p2), 1   ;;  %v1241_v3 = vld [vmem:[%s1638_s2 + $0x10] sm:$0xff] (!%p213_p2)  ;;  %v1242_v4 = vld [vmem:[%s1638_s2 + $0x18] sm:$0xff] (!%p213_p2) }
   0x6   : > { %216 = sbr.rel (%p213_p2) target bundleno = 765 (0x2fd), region = 44  ;;  %1460 = vset.pattern.permute.xlu0 (!%p213_p2), %v1470_v1  ;;  %1461 = vset.pattern.permute.xlu1 (!%p213_p2), %v1471_v2  ;;  %vm252_vm0 = vcmask (!%p213_p2), 130048   ;;  %v1251_v5 = vld [vmem:[%s1638_s2 + $0x30] sm:$0xff] (!%p213_p2)  ;;  %v1391_v6 = vpack.c.bf16 (!%p213_p2), %v1242_v4, %v1241_v3  ;;  %v1472_v7 = vmov (!%p213_p2), 0.0   ;;  %v1252_v8 = vld [vmem:[%s1638_s2 + $0x38] sm:$0xff] (!%p213_p2)  ;;  %v276_v9 = vld [vmem:[%s1638_s2] sm:$0xff] (!%p213_p2) }
   0x7   : > { %266 = vperm.xlu0 (!%p213_p2), %1460, %v260_v0   ;;  %448 = vperm.xlu1 (!%p213_p2), %1461, %v260_v0   ;;  %253 = vst.msk [vmem:[#allocation2] sm:$0xff] (!%p213_p2), %vm252_vm0, %v1472_v7  ;;  %254 = vst.msk [vmem:[#allocation2 + $0x8] sm:$0xff] (!%p213_p2), %vm252_vm0, %v1472_v7  ;;  %v277_v10 = vld [vmem:[%s1638_s2 + $0x8] sm:$0xff] (!%p213_p2)  ;;  %v1403_v12 = vpack.c.bf16 (!%p213_p2), %v1252_v8, %v1251_v5  ;;  %v1255_v16 = vld [vmem:[%s1638_s2 + $0x40] sm:$0xff] (!%p213_p2)  ;;  %vm256_vm1 = vcmask (!%p213_p2), 123904   ;;  %v1473_v2 = vmov (!%p213_p2), 0.0|0.0  }
   0x8   : > { %255 = vst.msk [vmem:[#allocation2 + $0x10] sm:$0xff] (!%p213_p2), %vm252_vm0, %v1472_v7  ;;  %v261_v11 = vld [vmem:[%s1637_s1 + $0x8] sm:$0xff] (!%p213_p2)  ;;  %v1395_v13 = vpack.c.bf16 (!%p213_p2), %v277_v10, %v276_v9  ;;  %1392 = vmatprep.subr.bf16.mxu1 (!%p213_p2), %v1391_v6  ;;  %v1089_v17 = vld [vmem:[%s1641_s5] sm:$0xff] (!%p213_p2)  ;;  %v1259_v33 = vld [vmem:[%s1638_s2 + $0x50] sm:$0xff] (!%p213_p2)  ;;  %vm1474_vm2 = vmmov (!%p213_p2), 0   ;;  %vm1178_vm4 = vcmask (!%p213_p2), 7168  }
   0x9   : > { %1394 = vmatpush3.bf16.msra.mxu1 (!%p213_p2), %v1391_v6  ;;  %1404 = vmatprep.subr.bf16.mxu0 (!%p213_p2), %v1403_v12  ;;  %v1256_v18 = vld [vmem:[%s1638_s2 + $0x48] sm:$0xff] (!%p213_p2)  ;;  %257 = vst.msk [vmem:[#allocation2 + $0x18] sm:$0x3] (!%p213_p2), %vm256_vm1, %v1472_v7  ;;  %v1247_v20 = vld [vmem:[%s1638_s2 + $0x20] sm:$0xff] (!%p213_p2)  ;;  %v1260_v34 = vld [vmem:[%s1638_s2 + $0x58] sm:$0xff] (!%p213_p2) }
   0xa   : > { %1396 = vmatprep.subr.bf16.mxu1 (!%p213_p2), %v1395_v13  ;;  %1406 = vmatpush3.bf16.msra.mxu0 (!%p213_p2), %v1403_v12  ;;  %v1407_v19 = vpack.c.bf16 (!%p213_p2), %v1256_v18, %v1255_v16  ;;  %v1248_v21 = vld [vmem:[%s1638_s2 + $0x28] sm:$0xff] (!%p213_p2)  ;;  %v1411_v41 = vpack.c.bf16 (!%p213_p2), %v1260_v34, %v1259_v33  ;;  %v1263_v45 = vld [vmem:[%s1638_s2 + $0x60] sm:$0xff] (!%p213_p2)  ;;  %v1267_v52 = vld [vmem:[%s1638_s2 + $0x70] sm:$0xff] (!%p213_p2) }
   0xb   : > { %271 = vperm.xlu0 (!%p213_p2), %1460, %v261_v11   ;;  %452 = vperm.xlu1 (!%p213_p2), %1461, %v261_v11   ;;  %v1399_v24 = vpack.c.bf16 (!%p213_p2), %v1248_v21, %v1247_v20  ;;  %v1264_v46 = vld [vmem:[%s1638_s2 + $0x68] sm:$0xff] (!%p213_p2)  ;;  %v1268_v53 = vld [vmem:[%s1638_s2 + $0x78] sm:$0xff] (!%p213_p2)  ;;  %v1271_v58 = vld [vmem:[%s1638_s2 + $0x80] sm:$0xff] (!%p213_p2) }
   0xc   : > { %1408 = vmatprep.subr.bf16.mxu0 (!%p213_p2), %v1407_v19  ;;  %v1415_v50 = vpack.c.bf16 (!%p213_p2), %v1264_v46, %v1263_v45  ;;  %v1419_v55 = vpack.c.bf16 (!%p213_p2), %v1268_v53, %v1267_v52  ;;  %v1272_v59 = vld [vmem:[%s1638_s2 + $0x88] sm:$0xff] (!%p213_p2)  ;;  %v1275_v6 = vld [vmem:[%s1639_s3] ss:$0 sm:$0xff] (!%p213_p2)  ;;  %vm1429_vm3 = vmpackc.low (!%p213_p2), %vm252_vm0, %vm252_vm0 }
   0xd   : > { %s1644_s22 = smov (!%p241_p3, %s1233_s22), 1  ;;  %v1423_v61 = vpack.c.bf16 %v1272_v59, %v1271_v58 }
   0xe   : > { %s1281_s15 = sshll.u32 %s1644_s22, 4  ;;  %s1240_s29 = sshll.u32 %s1644_s22, 3 }
   0xf   : > { %s245_s18 = scalar_lea.vmem %s1636_s0, %s1281_s15  ;;  %1092 = vperm.xlu0 %1460, %v1089_v17   ;;  %s249_s8 = scalar_lea.vmem %s1642_s6, %s1240_s29 }
  0x10   : > { %v250_v14 = vld [vmem:[%s245_s18] sm:$0xff]  ;;  %v251_v15 = vld [vmem:[%s245_s18 + $0x8] sm:$0xff] }
  0x11   : > { %258 = vst.msk [vmem:[#allocation2 + $0x5] sm:$0xff] %vm252_vm0, %v250_v14  ;;  %259 = vst.msk [vmem:[#allocation2 + $0xd] sm:$0xff] %vm252_vm0, %v251_v15 }
  0x18   : > { %v278_v22 = vld [vmem:[#allocation2 + $0x1] sm:$0xff]  ;;  %v1572_v23 = vld [vmem:[#allocation2 + $0x9] sm:$0xff]  ;;  %v902_v62 = vld [vmem:[#allocation2 + $0x11] sm:$0xff] }
  0x19   : > { %1325 = vmatprep.mubr.msk.f32.mxu1 %vm252_vm0, %v278_v22  ;;  %v262_v25 = vld [vmem:[#allocation2] sm:$0xff]  ;;  %v544_v30 = vld [vmem:[#allocation2 + $0xc] sm:$0xff] }
  0x1a   : > { %1326 = vmatmul.mubr.msk.f32.vlgmr.msra.gmra.mrb[0].mxu1 %vm252_vm0, %v1572_v23  ;;  %v543_v26 = vld [vmem:[#allocation2 + $0x4] sm:$0xff]  ;;  %v634_v49 = vld [vmem:[#allocation2 + $0xd] sm:$0xff] }
  0x1b   : > { %1398 = vmatpush3.bf16.msra.mxu1 %v1395_v13  ;;  %v445_v32 = vld [vmem:[#allocation2 + $0x2] sm:$0xff]  ;;  %v989_v42 = vld [vmem:[#allocation2 + $0xa] sm:$0xff]  ;;  %v990_v0 = vld [vmem:[#allocation2 + $0x12] sm:$0xff] }
  0x1c   : > { %1400 = vmatprep.subr.bf16.mxu1 %v1399_v24  ;;  %v811_v35 = vld [vmem:[#allocation2 + $0x8] sm:$0xff]  ;;  %v812_v57 = vld [vmem:[#allocation2 + $0x10] sm:$0xff] }
  0x1d   : > { %v633_v40 = vld [vmem:[#allocation2 + $0x5] sm:$0xff]  ;;  %v722_v51 = vld [vmem:[#allocation2 + $0xe] sm:$0xff] }
  0x1e   : > { %v721_v44 = vld [vmem:[#allocation2 + $0x6] sm:$0xff] }
  0x86   : > { %v267_v27 = vpop.permute.xlu0 %266  ;;  %v449_v31 = vpop.permute.xlu1 %448 }
  0x87   : > { %v274_v28 = vmul.f32 %v267_v27, %v262_v25  ;;  %v545_v29 = vmul.f32 %v543_v26, %v267_v27  ;;  %v455_v39 = vmul.f32 %v449_v31, %v445_v32  ;;  %v723_v48 = vmul.f32 %v721_v44, %v449_v31 }
  0x88   : > { %v813_v56 = vmul.f32 %v811_v35, %v267_v27  ;;  %v991_v63 = vmul.f32 %v989_v42, %v449_v31 }
  0x89   : > { %1332 = vmatprep.mubr.msk.f32.mxu1 %vm252_vm0, %v274_v28  ;;  %1346 = vmatprep.mubr.msk.f32.mxu0 %vm252_vm0, %v545_v29 }
  0x8a   : > { %v272_v36 = vpop.permute.xlu0 %271  ;;  %v453_v43 = vpop.permute.xlu1 %452 }
  0x8b   : > { %v275_v37 = vmul.f32 %v811_v35, %v272_v36  ;;  %v546_v38 = vmul.f32 %v544_v30, %v272_v36  ;;  %v456_v47 = vmul.f32 %v989_v42, %v453_v43  ;;  %v724_v54 = vmul.f32 %v722_v51, %v453_v43 }
  0x8c   : > { %v814_v60 = vmul.f32 %v812_v57, %v272_v36  ;;  %v992_v1 = vmul.f32 %v990_v0, %v453_v43 }
  0x8d   : > { %1333 = vmatmul.mubr.msk.f32.vlgmr.msra.gmra.mrb[0].mxu1 %vm252_vm0, %v275_v37  ;;  %1347 = vmatmul.mubr.msk.f32.vlgmr.msra.gmra.mrb[0].mxu0 %vm252_vm0, %v546_v38 }
  0x8e   : > { %1410 = vmatpush3.bf16.msra.mxu0 %v1407_v19  ;;  %1402 = vmatpush3.bf16.msra.mxu1 %v1399_v24  ;;  %v1093_v14 = vpop.permute.xlu0 %1092 }
  0x8f   : > { %1339 = vmatprep.mubr.msk.f32.mxu1 %vm252_vm0, %v455_v39  ;;  %1353 = vmatprep.mubr.msk.f32.mxu0 %vm252_vm0, %v633_v40 }
  0x90   : > { %1412 = vmatprep.subr.bf16.mxu0 %v1411_v41  ;;  %1427 = vmatprep.subr.bf16.mxu1 %v1473_v2 }
  0x95   : > { %1340 = vmatmul.mubr.msk.f32.vlgmr.msra.gmra.mrb[0].mxu1 %vm252_vm0, %v456_v47  ;;  %1354 = vmatmul.mubr.msk.f32.vlgmr.msra.gmra.mrb[0].mxu0 %vm252_vm0, %v634_v49 }
  0x96   : > { %1414 = vmatpush3.bf16.msra.mxu0 %v1411_v41  ;;  %1360 = vmatprep.mubr.msk.f32.mxu0 %vm252_vm0, %v723_v48 }
  0x97   : > { %1416 = vmatprep.subr.bf16.mxu0 %v1415_v50  ;;  %1388 = vmatprep.mubr.msk.f32.mxu1 %vm1474_vm2, %v1472_v7  ;;  %v1088_v7 = vld [vmem:[%s1640_s4] sm:$0xff] }
  0x9d   : > { %1361 = vmatmul.mubr.msk.f32.vlgmr.msra.gmra.mrb[0].mxu0 %vm252_vm0, %v724_v54 }
  0x9e   : > { %1418 = vmatpush3.bf16.msra.mxu0 %v1415_v50  ;;  %1367 = vmatprep.mubr.msk.f32.mxu0 %vm252_vm0, %v813_v56 }
  0x9f   : > { %1420 = vmatprep.subr.bf16.mxu0 %v1419_v55 }
  0xa5   : > { %1368 = vmatmul.mubr.msk.f32.vlgmr.msra.gmra.mrb[0].mxu0 %vm252_vm0, %v814_v60 }
  0xa6   : > { %1422 = vmatpush3.bf16.msra.mxu0 %v1419_v55  ;;  %1374 = vmatprep.mubr.msk.f32.mxu0 %vm252_vm0, %v1572_v23 }
  0xa7   : > { %1424 = vmatprep.subr.bf16.mxu0 %v1423_v61 }
  0xad   : > { %1375 = vmatmul.mubr.msk.f32.vlgmr.msra.gmra.mrb[0].mxu0 %vm252_vm0, %v902_v62 }
  0xae   : > { %1426 = vmatpush3.bf16.msra.mxu0 %v1423_v61  ;;  %1381 = vmatprep.mubr.msk.f32.mxu0 %vm252_vm0, %v991_v63 }
  0xb5   : > { %1382 = vmatmul.mubr.msk.f32.vlgmr.msra.gmra.mrb[0].mxu0 %vm252_vm0, %v992_v1 }
 0x168   : > { %v1341_v3 = vpop.f32.mrb[0].mxu1 }
 0x169   : > { %v532_v4 = vpop.f32.mrb[1].mxu1 }
 0x188   : > { %v1383_v5 = vpop.f32.mrb[0].mxu0 }
 0x189   : > { %v1431_v8 = vadd.f32 %v1383_v5, %v1341_v3  ;;  %v1068_v9 = vpop.f32.mrb[1].mxu0 }
 0x18a   : > { %v1432_v10 = vadd.f32 %v1068_v9, %v532_v4 }
 0x18b   : > { %v1087_v11 = vadd.f32 %v1431_v8, %v1275_v6 }
 0x18c   : > { %v1086_v12 = vadd.f32 %v1432_v10, %v1275_v6 }
 0x18e   : > { %v1428_v13 = vpack.c.bf16 %v1087_v11, %v1086_v12 }
 0x190   : > { %1430 = vmatpush3.bf16.xpose.msk.msra.mxu1 %vm1429_vm3, %v1428_v13 }
 0x197   : > { %1389 = vmatmul.mubr.msk.f32.vlgmr.msra.gmra.mrb[2].mxu1 %vm252_vm0, %v1088_v7 }
 0x26a   : > { %v1170_v15 = vpop.f32.mrb[2].mxu1 }
 0x26b   : > { %v1171_v16 = vadd.f32 %v1170_v15, %v1093_v14  ;;  %v1390_v17 = vpop.f32.mrb[3].mxu1 }
 0x26d   : > { %v1174_v18 = vsel %vm252_vm0, %v1171_v16, -inf }
 0x26e   : > { %1175 = vmax.xlane.f32.xlu1 %v1174_v18 }
 0x2fb   : > { %v1176_v19 = vpop.xlane.xlu1 %1175 }
 0x2fc   : > { %1179 = vst.msk [vmem:[%s249_s8] sm:$0xff] %vm1178_vm4, %v1176_v19 }
 0x2fd PF: > { %s16_s21 = sadd.s32 1, %s1468_s21  }
 0x2fe   : > { %p13_p4 = scmp.ge.s32.totalorder %s16_s21, 4  }
 0x300   :  { %15 = sbr.rel (!%p13_p4) target bundleno = 1 (0x1), region = 82 }

// kernel: feature_pyramid_forward.5
= control target key start
LH: loop header
LB: loop body
LE: loop exit
PB: predicated region body
PF: predicated region fallthrough
CT: control target
= control target key end

     0   :  { %s7193_s30 = smov 0   ;;  %s9425_s0 = inlined_call_operand.vmem [shape: f32[256,64], index: 0, kind: input, shape index: {}]   ;;  %s9426_s1 = inlined_call_operand.vmem [shape: f32[2,64,16], index: 1, kind: input, shape index: {}]   ;;  %s9427_s2 = inlined_call_operand.vmem [shape: f32[2,256,16], index: 2, kind: input, shape index: {}]   ;;  %s9428_s3 = inlined_call_operand.vmem [shape: f32[256,2], index: 3, kind: input, shape index: {}]   ;;  %s9429_s4 = inlined_call_operand.vmem [shape: f32[9,16,16], index: 4, kind: input, shape index: {}]   ;;  %s9430_s5 = inlined_call_operand.vmem [shape: f32[1,16], index: 5, kind: input, shape index: {}]   ;;  %s9431_s6 = inlined_call_operand.vmem [shape: f32[8,16], index: 6, kind: input, shape index: {}]   ;;  %s9432_s7 = inlined_call_operand.vmem [shape: f32[8,1], index: 7, kind: input, shape index: {}]   ;;  %s9433_s8 = inlined_call_operand.vmem [shape: f32[2,256,16], index: 8, kind: output, shape index: {0}]   ;;  %s9434_s9 = inlined_call_operand.vmem [shape: f32[2,8,1], index: 9, kind: output, shape index: {1}]  }
   0x1 LB: > { %s5460_s10 = sadd.s32 4294967295, %s7138_s30   ;;  %p5464_p0 = scmp.ge.s32.totalorder %s7138_s30, 1  ;;  %s7138_s30 = sphi %s7193_s30, %s20_s30  }
   0x2   : > { %p300_p1 = scmp.lt.s32.totalorder %s7138_s30, 3 }
   0x4   : > { %p301_p2 = pnand %p5464_p0, %p300_p1 }
   0x6   : > { %304 = sbr.rel (%p301_p2) target bundleno = 6607 (0x19cf), region = 52 }
   0xd   : > { %p345_p3 = scmp.lt.s32.totalorder %s5460_s10, 1  ;;  %v364_v0 = vld [vmem:[%s9425_s0] sm:$0xff]  ;;  %vm436_vm0 = vcmask 523264   ;;  %v7140_v1 = vmov 1   ;;  %v7211_v2 = vld [vmem:[%s9428_s3 + $0x10] sm:$0xff]  ;;  %vm758_vm1 = vcmask 130048  }
   0xe   : > { %6243 = vmatprep.mubr.msk.f32.mxu0 %vm436_vm0, %v364_v0  ;;  %7129 = vset.pattern.permute.xlu1 %v7140_v1  ;;  %v7222_v3 = vld [vmem:[%s9428_s3] sm:$0xff]  ;;  %v7141_v7 = vmov 0.0   ;;  %v7306_v13 = vld [vmem:[%s9428_s3 + $0x18] sm:$0xff]  ;;  %v7312_v14 = vld [vmem:[%s9428_s3 + $0x8] sm:$0xff]  ;;  %vm827_vm2 = vcmask 123904  }
   0xf   : > { %s9800_s10 = smov (!%p345_p3, %s5460_s10), 1  ;;  %7128 = vset.pattern.permute.xlu0 %v7140_v1  ;;  %1837 = vperm.xlu1 %7129, %v7211_v2   ;;  %791 = vst.msk [vmem:[#allocation2] sm:$0xff] %vm758_vm1, %v7141_v7  ;;  %792 = vst.msk [vmem:[#allocation2 + $0x8] sm:$0xff] %vm758_vm1, %v7141_v7  ;;  %v7318_v15 = vld [vmem:[%s9428_s3 + $0x28] sm:$0xff]  ;;  %v7323_v17 = vld [vmem:[%s9428_s3 + $0x20] sm:$0xff] }
  0x10   : > { %s5844_s13 = sshll.u32 %s9800_s10, 6  ;;  %1829 = vperm.xlu0 %7128, %v7222_v3   ;;  %793 = vst.msk [vmem:[#allocation2 + $0x10] sm:$0xff] %vm758_vm1, %v7141_v7  ;;  %794 = vst.msk [vmem:[#allocation2 + $0x18] sm:$0xff] %vm758_vm1, %v7141_v7  ;;  %v7332_v20 = vld [vmem:[%s9428_s3 + $0x38] sm:$0xff]  ;;  %v7337_v22 = vld [vmem:[%s9428_s3 + $0x30] sm:$0xff]  ;;  %s5845_s24 = sshll.u32 %s9800_s10, 8 }
  0x11   : > { %s7216_s18 = scalar_lea.vmem %s9426_s1, %s5844_s13  ;;  %795 = vst.msk [vmem:[#allocation2 + $0x20] sm:$0xff] %vm758_vm1, %v7141_v7  ;;  %796 = vst.msk [vmem:[#allocation2 + $0x28] sm:$0xff] %vm758_vm1, %v7141_v7  ;;  %v7344_v23 = vld [vmem:[%s9428_s3 + $0x48] sm:$0xff]  ;;  %v7349_v24 = vld [vmem:[%s9428_s3 + $0x40] sm:$0xff]  ;;  %s7746_s27 = scalar_lea.vmem %s9427_s2, %s5845_s24 }
  0x12   : > { %v396_v4 = vld [vmem:[%s7216_s18] sm:$0xff]  ;;  %v397_v5 = vld [vmem:[%s7216_s18 + $0x8] sm:$0xff]  ;;  %v398_v6 = vld [vmem:[%s7216_s18 + $0x10] sm:$0xff]  ;;  %797 = vst.msk [vmem:[#allocation2 + $0x30] sm:$0xff] %vm758_vm1, %v7141_v7  ;;  %s7764_s15 = scalar_lea.vmem %s9433_s8, %s5845_s24  ;;  %s5471_s21 = sshll.u32 %s9800_s10, 3 }
  0x13   : > { %798 = vst.msk [vmem:[#allocation2 + $0x38] sm:$0xff] %vm758_vm1, %v7141_v7  ;;  %799 = vst.msk [vmem:[#allocation2 + $0x40] sm:$0xff] %vm758_vm1, %v7141_v7  ;;  %v6759_v8 = vpack.c.bf16 %v397_v5, %v396_v4  ;;  %v399_v9 = vld [vmem:[%s7216_s18 + $0x18] sm:$0xff]  ;;  %v400_v11 = vld [vmem:[%s7216_s18 + $0x20] sm:$0xff]  ;;  %1841 = vperm.xlu1 %7129, %v7306_v13   ;;  %s363_s24 = scalar_lea.vmem %s9434_s9, %s5471_s21 }
  0x14   : > { %800 = vst.msk [vmem:[#allocation2 + $0x48] sm:$0xff] %vm758_vm1, %v7141_v7  ;;  %801 = vst.msk [vmem:[#allocation2 + $0x50] sm:$0xff] %vm758_vm1, %v7141_v7  ;;  %v6763_v10 = vpack.c.bf16 %v399_v9, %v398_v6  ;;  %v401_v12 = vld [vmem:[%s7216_s18 + $0x28] sm:$0xff]  ;;  %1833 = vperm.xlu0 %7128, %v7312_v14   ;;  %v402_v18 = vld [vmem:[%s7216_s18 + $0x30] sm:$0xff] }
  0x15   : > { %802 = vst.msk [vmem:[#allocation2 + $0x58] sm:$0xff] %vm758_vm1, %v7141_v7  ;;  %803 = vst.msk [vmem:[#allocation2 + $0x60] sm:$0xff] %vm758_vm1, %v7141_v7  ;;  %6760 = vmatprep.subr.bf16.mxu0 %v6759_v8  ;;  %v6767_v16 = vpack.c.bf16 %v401_v12, %v400_v11  ;;  %v403_v19 = vld [vmem:[%s7216_s18 + $0x38] sm:$0xff]  ;;  %v365_v25 = vld [vmem:[%s9425_s0 + $0x8] sm:$0xff] }
  0x16   : > { %804 = vst.msk [vmem:[#allocation2 + $0x68] sm:$0xff] %vm758_vm1, %v7141_v7  ;;  %805 = vst.msk [vmem:[#allocation2 + $0x70] sm:$0xff] %vm758_vm1, %v7141_v7  ;;  %6762 = vmatpush3.bf16.msra.mxu0 %v6759_v8  ;;  %v6771_v21 = vpack.c.bf16 %v403_v19, %v402_v18  ;;  %v7359_v26 = vld [vmem:[%s9428_s3 + $0x58] sm:$0xff]  ;;  %v366_v27 = vld [vmem:[%s9425_s0 + $0x10] sm:$0xff] }
  0x17   : > { %806 = vst.msk [vmem:[#allocation2 + $0x78] sm:$0xff] %vm758_vm1, %v7141_v7  ;;  %807 = vst.msk [vmem:[#allocation2 + $0x80] sm:$0xff] %vm758_vm1, %v7141_v7  ;;  %6764 = vmatprep.subr.bf16.mxu0 %v6763_v10  ;;  %1849 = vperm.xlu1 %7129, %v7318_v15   ;;  %v7367_v28 = vld [vmem:[%s9428_s3 + $0x50] sm:$0xff]  ;;  %v367_v29 = vld [vmem:[%s9425_s0 + $0x18] sm:$0xff] }
  0x18   : > { %808 = vst.msk [vmem:[#allocation2 + $0x88] sm:$0xff] %vm758_vm1, %v7141_v7  ;;  %809 = vst.msk [vmem:[#allocation2 + $0x90] sm:$0xff] %vm758_vm1, %v7141_v7  ;;  %1845 = vperm.xlu0 %7128, %v7323_v17   ;;  %v7379_v30 = vld [vmem:[%s9428_s3 + $0x68] sm:$0xff]  ;;  %v368_v31 = vld [vmem:[%s9425_s0 + $0x20] sm:$0xff] }
  0x19   : > { %810 = vst.msk [vmem:[#allocation2 + $0x98] sm:$0xff] %vm758_vm1, %v7141_v7  ;;  %811 = vst.msk [vmem:[#allocation2 + $0xa0] sm:$0xff] %vm758_vm1, %v7141_v7  ;;  %v7387_v32 = vld [vmem:[%s9428_s3 + $0x60] sm:$0xff]  ;;  %v369_v33 = vld [vmem:[%s9425_s0 + $0x28] sm:$0xff] }
  0x1a   : > { %812 = vst.msk [vmem:[#allocation2 + $0xa8] sm:$0xff] %vm758_vm1, %v7141_v7  ;;  %813 = vst.msk [vmem:[#allocation2 + $0xb0] sm:$0xff] %vm758_vm1, %v7141_v7  ;;  %6766 = vmatpush3.bf16.msra.mxu0 %v6763_v10  ;;  %v7399_v34 = vld [vmem:[%s9428_s3 + $0x78] sm:$0xff]  ;;  %v370_v35 = vld [vmem:[%s9425_s0 + $0x30] sm:$0xff]  ;;  %v7142_v10 = vmov 0  }
  0x1b   : > { %814 = vst.msk [vmem:[#allocation2 + $0xb8] sm:$0xff] %vm758_vm1, %v7141_v7  ;;  %815 = vst.msk [vmem:[#allocation2 + $0xc0] sm:$0xff] %vm758_vm1, %v7141_v7  ;;  %6768 = vmatprep.subr.bf16.mxu0 %v6767_v16  ;;  %1857 = vperm.xlu1 %7129, %v7332_v20   ;;  %v7407_v36 = vld [vmem:[%s9428_s3 + $0x70] sm:$0xff]  ;;  %v371_v37 = vld [vmem:[%s9425_s0 + $0x38] sm:$0xff] }
  0x1c   : > { %816 = vst.msk [vmem:[#allocation2 + $0xc8] sm:$0xff] %vm758_vm1, %v7141_v7  ;;  %817 = vst.msk [vmem:[#allocation2 + $0xd0] sm:$0xff] %vm758_vm1, %v7141_v7  ;;  %1853 = vperm.xlu0 %7128, %v7337_v22   ;;  %v7419_v38 = vld [vmem:[%s9428_s3 + $0x88] sm:$0xff]  ;;  %v372_v39 = vld [vmem:[%s9425_s0 + $0x40] sm:$0xff] }
  0x1d   : > { %818 = vst.msk [vmem:[#allocation2 + $0xd8] sm:$0xff] %vm758_vm1, %v7141_v7  ;;  %819 = vst.msk [vmem:[#allocation2 + $0xe0] sm:$0xff] %vm758_vm1, %v7141_v7  ;;  %v7427_v40 = vld [vmem:[%s9428_s3 + $0x80] sm:$0xff]  ;;  %v373_v41 = vld [vmem:[%s9425_s0 + $0x48] sm:$0xff] }
  0x1e   : > { %820 = vst.msk [vmem:[#allocation2 + $0xe8] sm:$0xff] %vm758_vm1, %v7141_v7  ;;  %821 = vst.msk [vmem:[#allocation2 + $0xf0] sm:$0xff] %vm758_vm1, %v7141_v7  ;;  %6770 = vmatpush3.bf16.msra.mxu0 %v6767_v16  ;;  %v7439_v42 = vld [vmem:[%s9428_s3 + $0x98] sm:$0xff]  ;;  %v374_v43 = vld [vmem:[%s9425_s0 + $0x50] sm:$0xff] }
  0x1f   : > { %822 = vst.msk [vmem:[#allocation2 + $0xf8] sm:$0xff] %vm758_vm1, %v7141_v7  ;;  %823 = vst.msk [vmem:[#allocation2 + $0x100] sm:$0xff] %vm758_vm1, %v7141_v7  ;;  %6772 = vmatprep.subr.bf16.mxu0 %v6771_v21  ;;  %1865 = vperm.xlu1 %7129, %v7344_v23   ;;  %v7447_v44 = vld [vmem:[%s9428_s3 + $0x90] sm:$0xff]  ;;  %v375_v45 = vld [vmem:[%s9425_s0 + $0x58] sm:$0xff] }
  0x20   : > { %824 = vst.msk [vmem:[#allocation2 + $0x108] sm:$0xff] %vm758_vm1, %v7141_v7  ;;  %825 = vst.msk [vmem:[#allocation2 + $0x110] sm:$0xff] %vm758_vm1, %v7141_v7  ;;  %1861 = vperm.xlu0 %7128, %v7349_v24   ;;  %v7459_v46 = vld [vmem:[%s9428_s3 + $0xa8] sm:$0xff]  ;;  %v376_v47 = vld [vmem:[%s9425_s0 + $0x60] sm:$0xff] }
  0x21   : > { %826 = vst.msk [vmem:[#allocation2 + $0x118] sm:$0xff] %vm758_vm1, %v7141_v7  ;;  %v7467_v48 = vld [vmem:[%s9428_s3 + $0xa0] sm:$0xff]  ;;  %v377_v49 = vld [vmem:[%s9425_s0 + $0x68] sm:$0xff]  ;;  %v7479_v50 = vld [vmem:[%s9428_s3 + $0xb8] sm:$0xff] }
  0x22   : > { %6774 = vmatpush3.bf16.msra.mxu0 %v6771_v21  ;;  %v378_v51 = vld [vmem:[%s9425_s0 + $0x70] sm:$0xff]  ;;  %v379_v53 = vld [vmem:[%s9425_s0 + $0x78] sm:$0xff]  ;;  %v7499_v54 = vld [vmem:[%s9428_s3 + $0xc8] sm:$0xff]  ;;  %828 = vst.msk [vmem:[#allocation2 + $0x120] sm:$0x3] %vm827_vm2, %v7141_v7 }
  0x23   : > { %1873 = vperm.xlu1 %7129, %v7359_v26   ;;  %v7487_v52 = vld [vmem:[%s9428_s3 + $0xb0] sm:$0xff]  ;;  %v380_v55 = vld [vmem:[%s9425_s0 + $0x80] sm:$0xff]  ;;  %v381_v57 = vld [vmem:[%s9425_s0 + $0x88] sm:$0xff] }
  0x24   : > { %1869 = vperm.xlu0 %7128, %v7367_v28   ;;  %v7507_v56 = vld [vmem:[%s9428_s3 + $0xc0] sm:$0xff]  ;;  %v7519_v58 = vld [vmem:[%s9428_s3 + $0xd8] sm:$0xff]  ;;  %v382_v59 = vld [vmem:[%s9425_s0 + $0x90] sm:$0xff] }
  0x25   : > { %6244 = vmatmul.mubr.msk.f32.vlgmr.msra.gmra.mrb[0].mxu0 %vm436_vm0, %v365_v25  ;;  %v7527_v60 = vld [vmem:[%s9428_s3 + $0xd0] sm:$0xff]  ;;  %v383_v61 = vld [vmem:[%s9425_s0 + $0x98] sm:$0xff]  ;;  %v7539_v62 = vld [vmem:[%s9428_s3 + $0xe8] sm:$0xff] }
  0x26   : > { %6246 = vmatprep.mubr.msk.f32.mxu0 %vm436_vm0, %v366_v27  ;;  %v384_v63 = vld [vmem:[%s9425_s0 + $0xa0] sm:$0xff]  ;;  %v385_v1 = vld [vmem:[%s9425_s0 + $0xa8] sm:$0xff]  ;;  %v7559_v4 = vld [vmem:[%s9428_s3 + $0xf8] sm:$0xff] }
  0x27   : > { %1881 = vperm.xlu1 %7129, %v7379_v30   ;;  %v7547_v0 = vld [vmem:[%s9428_s3 + $0xe0] sm:$0xff]  ;;  %v386_v5 = vld [vmem:[%s9425_s0 + $0xb0] sm:$0xff]  ;;  %v387_v8 = vld [vmem:[%s9425_s0 + $0xb8] sm:$0xff] }
  0x28   : > { %1877 = vperm.xlu0 %7128, %v7387_v32   ;;  %v7567_v6 = vld [vmem:[%s9428_s3 + $0xf0] sm:$0xff]  ;;  %v388_v9 = vld [vmem:[%s9425_s0 + $0xc0] sm:$0xff]  ;;  %v389_v11 = vld [vmem:[%s9425_s0 + $0xc8] sm:$0xff] }
  0x29   : > { %6247 = vmatmul.mubr.msk.f32.gmra.mrb[2].mxu0 %vm436_vm0, %v367_v29  ;;  %v390_v12 = vld [vmem:[%s9425_s0 + $0xd0] sm:$0xff]  ;;  %v391_v16 = vld [vmem:[%s9425_s0 + $0xd8] sm:$0xff]  ;;  %v392_v18 = vld [vmem:[%s9425_s0 + $0xe0] sm:$0xff] }
  0x2a   : > { %6249 = vmatprep.mubr.msk.f32.mxu0 %vm436_vm0, %v368_v31  ;;  %v1119_v19 = vld [vmem:[#allocation2 + $0x1] sm:$0xff]  ;;  %vm9221_vm3 = vmpackc.low %vm758_vm1, %vm758_vm1 }
  0x2b   : > { %1889 = vperm.xlu1 %7129, %v7399_v34  }
  0x2c   : > { %1885 = vperm.xlu0 %7128, %v7407_v36  }
  0x2d   : > { %6250 = vmatmul.mubr.msk.f32.gmra.mrb[4].mxu0 %vm436_vm0, %v369_v33 }
  0x2e   : > { %6252 = vmatprep.mubr.msk.f32.mxu0 %vm436_vm0, %v370_v35 }
  0x2f   : > { %1897 = vperm.xlu1 %7129, %v7419_v38  }
  0x30   : > { %1893 = vperm.xlu0 %7128, %v7427_v40  }
  0x31   : > { %6253 = vmatmul.mubr.msk.f32.gmra.mrb[6].mxu0 %vm436_vm0, %v371_v37  ;;  %v1118_v37 = vld [vmem:[%s9429_s4 + $0x8] sm:$0xff] }
  0x32   : > { %6255 = vmatprep.mubr.msk.f32.mxu0 %vm436_vm0, %v372_v39 }
  0x33   : > { %1905 = vperm.xlu1 %7129, %v7439_v42  }
  0x34   : > { %1901 = vperm.xlu0 %7128, %v7447_v44  }
  0x35   : > { %6256 = vmatmul.mubr.msk.f32.gmra.mrb[8].mxu0 %vm436_vm0, %v373_v41  ;;  %v5638_v41 = vld [vmem:[%s9429_s4 + $0x40] sm:$0xff] }
  0x36   : > { %6258 = vmatprep.mubr.msk.f32.mxu0 %vm436_vm0, %v374_v43 }
  0x37   : > { %1913 = vperm.xlu1 %7129, %v7459_v46  }
  0x38   : > { %1909 = vperm.xlu0 %7128, %v7467_v48  }
  0x39   : > { %6259 = vmatmul.mubr.msk.f32.gmra.mrb[10].mxu0 %vm436_vm0, %v375_v45 }
  0x3a   : > { %6261 = vmatprep.mubr.msk.f32.mxu0 %vm436_vm0, %v376_v47 }
  0x3b   : > { %1921 = vperm.xlu1 %7129, %v7479_v50  }
  0x3c   : > { %1917 = vperm.xlu0 %7128, %v7487_v52  }
  0x3d   : > { %6262 = vmatmul.mubr.msk.f32.gmra.mrb[12].mxu0 %vm436_vm0, %v377_v49 }
  0x3e   : > { %6264 = vmatprep.mubr.msk.f32.mxu0 %vm436_vm0, %v378_v51 }
  0x3f   : > { %1929 = vperm.xlu1 %7129, %v7499_v54  }
  0x40   : > { %1925 = vperm.xlu0 %7128, %v7507_v56  }
  0x41   : > { %6265 = vmatmul.mubr.msk.f32.gmra.mrb[14].mxu0 %vm436_vm0, %v379_v53 }
  0x42   : > { %6267 = vmatprep.mubr.msk.f32.mxu0 %vm436_vm0, %v380_v55 }
  0x43   : > { %1937 = vperm.xlu1 %7129, %v7519_v58  }
  0x44   : > { %1933 = vperm.xlu0 %7128, %v7527_v60  }
  0x45   : > { %6268 = vmatmul.mubr.msk.f32.gmra.mrb[16].mxu0 %vm436_vm0, %v381_v57 }
  0x46   : > { %6270 = vmatprep.mubr.msk.f32.mxu0 %vm436_vm0, %v382_v59 }
  0x47   : > { %1945 = vperm.xlu1 %7129, %v7539_v62  }
  0x48   : > { %1941 = vperm.xlu0 %7128, %v7547_v0  }
  0x49   : > { %6271 = vmatmul.mubr.msk.f32.gmra.mrb[18].mxu0 %vm436_vm0, %v383_v61 }
  0x4a   : > { %6273 = vmatprep.mubr.msk.f32.mxu0 %vm436_vm0, %v384_v63 }
  0x4b   : > { %1953 = vperm.xlu1 %7129, %v7559_v4  }
  0x4c   : > { %1949 = vperm.xlu0 %7128, %v7567_v6  }
  0x4d   : > { %6274 = vmatmul.mubr.msk.f32.gmra.mrb[20].mxu0 %vm436_vm0, %v385_v1  ;;  %v5570_v1 = vld [vmem:[%s9429_s4 + $0x20] sm:$0xff] }
  0x4e   : > { %6276 = vmatprep.mubr.msk.f32.mxu0 %vm436_vm0, %v386_v5 }
  0x4f   : > { %7131 = vset.pattern.permute.xlu1 %v7142_v10 }
  0x50   : > { %7130 = vset.pattern.permute.xlu0 %v7142_v10  ;;  %932 = vperm.xlu1 %7131, %v7312_v14   ;;  %v394_v14 = vld [vmem:[%s9425_s0 + $0xf0] sm:$0xff] }
  0x51   : > { %6277 = vmatmul.mubr.msk.f32.gmra.mrb[22].mxu0 %vm436_vm0, %v387_v8  ;;  %927 = vperm.xlu0 %7130, %v7222_v3   ;;  %v393_v3 = vld [vmem:[%s9425_s0 + $0xe8] sm:$0xff]  ;;  %v404_v8 = vld [vmem:[%s7746_s27] sm:$0xff] }
  0x52   : > { %6279 = vmatprep.mubr.msk.f32.mxu0 %vm436_vm0, %v388_v9 }
  0x54   : > { %937 = vperm.xlu1 %7131, %v7211_v2   ;;  %v395_v2 = vld [vmem:[%s9425_s0 + $0xf8] sm:$0xff] }
  0x55   : > { %6280 = vmatmul.mubr.msk.f32.gmra.mrb[24].mxu0 %vm436_vm0, %v389_v11  ;;  %942 = vperm.xlu0 %7130, %v7306_v13   ;;  %v5504_v13 = vld [vmem:[%s9429_s4 + $0x10] sm:$0xff] }
  0x56   : > { %6282 = vmatprep.mubr.msk.f32.mxu0 %vm436_vm0, %v390_v12 }
  0x58   : > { %947 = vperm.xlu1 %7131, %v7323_v17  }
  0x59   : > { %6283 = vmatmul.mubr.msk.f32.gmra.mrb[26].mxu0 %vm436_vm0, %v391_v16  ;;  %952 = vperm.xlu0 %7130, %v7318_v15   ;;  %v5505_v15 = vld [vmem:[%s9429_s4 + $0x18] sm:$0xff] }
  0x5a   : > { %6285 = vmatprep.mubr.msk.f32.mxu0 %vm436_vm0, %v392_v18  ;;  %v6775_v17 = vpack.c.bf16 %v5505_v15, %v5504_v13 }
  0x5c   : > { %957 = vperm.xlu1 %7131, %v7337_v22   ;;  %6776 = vmatprep.subr.bf16.mxu0 %v6775_v17 }
  0x5d   : > { %6286 = vmatmul.mubr.msk.f32.gmra.mrb[28].mxu0 %vm436_vm0, %v393_v3  ;;  %962 = vperm.xlu0 %7130, %v7332_v20   ;;  %v1120_v20 = vld [vmem:[#allocation2 + $0x9] sm:$0xff]  ;;  %v407_v3 = vld [vmem:[%s7746_s27 + $0x18] sm:$0xff] }
  0x5e   : > { %6288 = vmatprep.mubr.msk.f32.mxu0 %vm436_vm0, %v394_v14  ;;  %6859 = vmatprep.subr.bf16.mxu1 %v6775_v17  ;;  %v406_v14 = vld [vmem:[%s7746_s27 + $0x10] sm:$0xff] }
  0x5f   : > { %6778 = vmatpush3.bf16.msra.mxu0 %v6775_v17  ;;  %6860 = vmatpush3.bf16.msra.mxu1 %v6775_v17 }
  0x60   : > { %967 = vperm.xlu1 %7131, %v7349_v24  }
  0x61   : > { %6289 = vmatmul.mubr.msk.f32.gmra.mrb[30].mxu0 %vm436_vm0, %v395_v2  ;;  %972 = vperm.xlu0 %7130, %v7344_v23  }
  0x62   : > { %6295 = vmatprep.mubr.msk.f32.mxu0 %vm758_vm1, %v1119_v19  ;;  %v409_v19 = vld [vmem:[%s7746_s27 + $0x28] sm:$0xff] }
  0x64   : > { %977 = vperm.xlu1 %7131, %v7367_v28  }
  0x65   : > { %982 = vperm.xlu0 %7130, %v7359_v26   ;;  %6296 = vmatmul.mubr.msk.f32.vlgmr.msra.gmra.mrb[32].mxu0 %vm758_vm1, %v1120_v20 }
  0x68   : > { %987 = vperm.xlu1 %7131, %v7387_v32  }
  0x69   : > { %992 = vperm.xlu0 %7130, %v7379_v30  }
  0x6c   : > { %997 = vperm.xlu1 %7131, %v7407_v36   ;;  %v1117_v36 = vld [vmem:[%s9429_s4] sm:$0xff] }
  0x6d   : > { %1002 = vperm.xlu0 %7130, %v7399_v34  }
  0x70   : > { %1007 = vperm.xlu1 %7131, %v7427_v40  }
  0x71   : > { %1012 = vperm.xlu0 %7130, %v7419_v38   ;;  %v6779_v38 = vpack.c.bf16 %v1118_v37, %v1117_v36  ;;  %v408_v36 = vld [vmem:[%s7746_s27 + $0x20] sm:$0xff] }
  0x73   : > { %6780 = vmatprep.subr.bf16.mxu0 %v6779_v38 }
  0x74   : > { %1017 = vperm.xlu1 %7131, %v7447_v44   ;;  %6782 = vmatpush3.bf16.msra.mxu0 %v6779_v38 }
  0x75   : > { %1022 = vperm.xlu0 %7130, %v7439_v42   ;;  %v5639_v42 = vld [vmem:[%s9429_s4 + $0x48] sm:$0xff] }
  0x76   : > { %v7700_v44 = vpack.c.bf16 %v5639_v42, %v5638_v41 }
  0x78   : > { %1027 = vperm.xlu1 %7131, %v7467_v48   ;;  %6792 = vmatprep.subr.bf16.mxu1 %v7700_v44 }
  0x79   : > { %1032 = vperm.xlu0 %7130, %v7459_v46   ;;  %v4840_v46 = vld [vmem:[%s9432_s7] sm:$0xff] }
  0x7c   : > { %1037 = vperm.xlu1 %7131, %v7487_v52  }
  0x7d   : > { %1042 = vperm.xlu0 %7130, %v7479_v50  }
  0x80   : > { %1047 = vperm.xlu1 %7131, %v7507_v56  }
  0x81   : > { %1052 = vperm.xlu0 %7130, %v7499_v54  }
  0x84   : > { %1057 = vperm.xlu1 %7131, %v7527_v60  }
  0x85   : > { %1062 = vperm.xlu0 %7130, %v7519_v58  }
  0x88   : > { %1067 = vperm.xlu1 %7131, %v7547_v0  }
  0x89   : > { %1072 = vperm.xlu0 %7130, %v7539_v62  }
  0x8c   : > { %1077 = vperm.xlu1 %7131, %v7567_v6   ;;  %v405_v6 = vld [vmem:[%s7746_s27 + $0x8] sm:$0xff] }
  0x8d   : > { %1082 = vperm.xlu0 %7130, %v7559_v4   ;;  %v5571_v4 = vld [vmem:[%s9429_s4 + $0x28] sm:$0xff] }
  0x8e   : > { %v7650_v7 = vpop.permute.xlu1 %1837  ;;  %v7756_v5 = vpack.c.bf16 %v5571_v4, %v5570_v1  ;;  %v411_v1 = vld [vmem:[%s7746_s27 + $0x38] sm:$0xff]  ;;  %v410_v4 = vld [vmem:[%s7746_s27 + $0x30] sm:$0xff] }
  0x8f   : > { %9528 = vst [vmem:[#allocation3_spill] sm:$0xff] %v7650_v7  ;;  %v7652_v21 = vpop.permute.xlu0 %1829 }
  0x90   : > { %9529 = vst [vmem:[#allocation4_spill] sm:$0xff] %v7652_v21  ;;  %4843 = vperm.xlu1 %7131, %v4840_v46   ;;  %6784 = vmatprep.subr.bf16.mxu0 %v7756_v5  ;;  %v426_v21 = vld [vmem:[%s7746_s27 + $0xb0] sm:$0xff] }
  0x92   : > { %v7654_v22 = vpop.permute.xlu1 %1841 }
  0x93   : > { %9530 = vst [vmem:[#allocation5_spill] sm:$0xff] %v7654_v22  ;;  %v7656_v23 = vpop.permute.xlu0 %1833 }
  0x94   : > { %9531 = vst [vmem:[#allocation6_spill] sm:$0xff] %v7656_v23  ;;  %v427_v23 = vld [vmem:[%s7746_s27 + $0xb8] sm:$0xff] }
  0x96   : > { %v7658_v24 = vpop.permute.xlu1 %1849 }
  0x97   : > { %9532 = vst [vmem:[#allocation7_spill] sm:$0xff] %v7658_v24  ;;  %v7660_v25 = vpop.permute.xlu0 %1845  ;;  %v424_v24 = vld [vmem:[%s7746_s27 + $0xa0] sm:$0xff] }
  0x98   : > { %9533 = vst [vmem:[#allocation8_spill] sm:$0xff] %v7660_v25 }
  0x9a   : > { %v7662_v26 = vpop.permute.xlu1 %1857 }
  0x9b   : > { %9534 = vst [vmem:[#allocation9_spill] sm:$0xff] %v7662_v26  ;;  %v7664_v27 = vpop.permute.xlu0 %1853 }
  0x9c   : > { %9535 = vst [vmem:[#allocation10_spill] sm:$0xff] %v7664_v27  ;;  %v425_v27 = vld [vmem:[%s7746_s27 + $0xa8] sm:$0xff] }
  0x9e   : > { %v7666_v28 = vpop.permute.xlu1 %1865 }
  0x9f   : > { %9536 = vst [vmem:[#allocation11_spill] sm:$0xff] %v7666_v28  ;;  %v7668_v29 = vpop.permute.xlu0 %1861 }
  0xa0   : > { %9537 = vst [vmem:[#allocation12_spill] sm:$0xff] %v7668_v29 }
  0xa2   : > { %v7670_v30 = vpop.permute.xlu1 %1873 }
  0xa3   : > { %9538 = vst [vmem:[#allocation13_spill] sm:$0xff] %v7670_v30  ;;  %v7672_v31 = vpop.permute.xlu0 %1869  ;;  %v423_v30 = vld [vmem:[%s7746_s27 + $0x98] sm:$0xff] }
  0xa4   : > { %9539 = vst [vmem:[#allocation14_spill] sm:$0xff] %v7672_v31  ;;  %v422_v31 = vld [vmem:[%s7746_s27 + $0x90] sm:$0xff] }
  0xa6   : > { %v7674_v32 = vpop.permute.xlu1 %1881 }
  0xa7   : > { %9540 = vst [vmem:[#allocation15_spill] sm:$0xff] %v7674_v32  ;;  %v7676_v33 = vpop.permute.xlu0 %1877 }
  0xa8   : > { %9541 = vst [vmem:[#allocation16_spill] sm:$0xff] %v7676_v33 }
  0xaa   : > { %v7678_v34 = vpop.permute.xlu1 %1889 }
  0xab   : > { %9542 = vst [vmem:[#allocation17_spill] sm:$0xff] %v7678_v34  ;;  %v7680_v35 = vpop.permute.xlu0 %1885 }
  0xac   : > { %9543 = vst [vmem:[#allocation18_spill] sm:$0xff] %v7680_v35 }
  0xae   : > { %v7688_v39 = vpop.permute.xlu1 %1897 }
  0xaf   : > { %9544 = vst [vmem:[#allocation19_spill] sm:$0xff] %v7688_v39  ;;  %v7690_v40 = vpop.permute.xlu0 %1893  ;;  %v421_v39 = vld [vmem:[%s7746_s27 + $0x88] sm:$0xff] }
  0xb0   : > { %9545 = vst [vmem:[#allocation20_spill] sm:$0xff] %v7690_v40  ;;  %v420_v40 = vld [vmem:[%s7746_s27 + $0x80] sm:$0xff] }
  0xb2   : > { %v7698_v43 = vpop.permute.xlu1 %1905 }
  0xb3   : > { %9546 = vst [vmem:[#allocation21_spill] sm:$0xff] %v7698_v43  ;;  %v7702_v45 = vpop.permute.xlu0 %1901 }
  0xb4   : > { %9547 = vst [vmem:[#allocation22_spill] sm:$0xff] %v7702_v45 }
  0xb6   : > { %v7708_v47 = vpop.permute.xlu1 %1913 }
  0xb7   : > { %9548 = vst [vmem:[#allocation23_spill] sm:$0xff] %v7708_v47  ;;  %v7710_v48 = vpop.permute.xlu0 %1909  ;;  %v418_v47 = vld [vmem:[%s7746_s27 + $0x70] sm:$0xff] }
  0xb8   : > { %9549 = vst [vmem:[#allocation24_spill] sm:$0xff] %v7710_v48 }
  0xba   : > { %v7712_v49 = vpop.permute.xlu1 %1921 }
  0xbb   : > { %9550 = vst [vmem:[#allocation25_spill] sm:$0xff] %v7712_v49  ;;  %v7714_v50 = vpop.permute.xlu0 %1917 }
  0xbc   : > { %9551 = vst [vmem:[#allocation26_spill] sm:$0xff] %v7714_v50  ;;  %v419_v50 = vld [vmem:[%s7746_s27 + $0x78] sm:$0xff] }
  0xbe   : > { %v7716_v51 = vpop.permute.xlu1 %1929 }
  0xbf   : > { %9552 = vst [vmem:[#allocation27_spill] sm:$0xff] %v7716_v51  ;;  %v7718_v52 = vpop.permute.xlu0 %1925 }
  0xc0   : > { %9553 = vst [vmem:[#allocation28_spill] sm:$0xff] %v7718_v52 }
  0xc2   : > { %v7720_v53 = vpop.permute.xlu1 %1937 }
  0xc3   : > { %9554 = vst [vmem:[#allocation29_spill] sm:$0xff] %v7720_v53  ;;  %v7722_v54 = vpop.permute.xlu0 %1933  ;;  %v417_v53 = vld [vmem:[%s7746_s27 + $0x68] sm:$0xff] }
  0xc4   : > { %9555 = vst [vmem:[#allocation30_spill] sm:$0xff] %v7722_v54  ;;  %v416_v54 = vld [vmem:[%s7746_s27 + $0x60] sm:$0xff] }
  0xc6   : > { %v7724_v55 = vpop.permute.xlu1 %1945 }
  0xc7   : > { %9556 = vst [vmem:[#allocation31_spill] sm:$0xff] %v7724_v55  ;;  %v7726_v56 = vpop.permute.xlu0 %1941 }
  0xc8   : > { %9557 = vst [vmem:[#allocation32_spill] sm:$0xff] %v7726_v56 }
  0xca   : > { %v7728_v57 = vpop.permute.xlu1 %1953 }
  0xcb   : > { %9558 = vst [vmem:[#allocation33_spill] sm:$0xff] %v7728_v57  ;;  %v7730_v58 = vpop.permute.xlu0 %1949 }
  0xcc   : > { %9559 = vst [vmem:[#allocation34_spill] sm:$0xff] %v7730_v58 }
  0xcf   : > { %v7732_v59 = vpop.permute.xlu1 %932 }
  0xd0   : > { %v7734_v60 = vpop.permute.xlu0 %927 }
  0xd3   : > { %v7736_v61 = vpop.permute.xlu1 %937 }
  0xd4   : > { %v7738_v62 = vpop.permute.xlu0 %942 }
  0xd7   : > { %v7741_v63 = vpop.permute.xlu1 %947 }
  0xd8   : > { %v7748_v0 = vpop.permute.xlu0 %952 }
  0xdb   : > { %v7766_v10 = vpop.permute.xlu1 %957 }
  0xdc   : > { %v7768_v16 = vpop.permute.xlu0 %962 }
  0xdf   : > { %v7779_v20 = vpop.permute.xlu1 %967 }
  0xe0   : > { %v7785_v37 = vpop.permute.xlu0 %972 }
  0xf8   : > { %v6245_v9 = vpop.f32.mrb[0].mxu0 }
  0xf9   : > { %v605_v11 = vadd.f32 %v6245_v9, %v405_v6  ;;  %v599_v12 = vpop.f32.mrb[1].mxu0 }
  0xfa   : > { %v600_v18 = vadd.f32 %v599_v12, %v404_v8 }
  0xfb   : > { %760 = vst.msk [vmem:[%s7764_s15 + $0x8] sm:$0xff] %vm758_vm1, %v605_v11  ;;  %830 = vst.msk [vmem:[#allocation2 + $0x19] sm:$0xff] %vm758_vm1, %v605_v11 }
  0xfc   : > { %759 = vst.msk [vmem:[%s7764_s15] sm:$0xff] %vm758_vm1, %v600_v18  ;;  %829 = vst.msk [vmem:[#allocation2 + $0x11] sm:$0xff] %vm758_vm1, %v600_v18  ;;  %v6248_v2 = vpop.f32.mrb[2].mxu0 }
  0xfd   : > { %v615_v13 = vadd.f32 %v6248_v2, %v407_v3  ;;  %v609_v15 = vpop.f32.mrb[3].mxu0 }
  0xfe   : > { %v610_v17 = vadd.f32 %v609_v15, %v406_v14  ;;  %v7816_v14 = vpop.permute.xlu1 %977  ;;  %v7820_v15 = vpop.permute.xlu0 %982 }
  0xff   : > { %762 = vst.msk [vmem:[%s7764_s15 + $0x18] sm:$0xff] %vm758_vm1, %v615_v13  ;;  %832 = vst.msk [vmem:[#allocation2 + $0x29] sm:$0xff] %vm758_vm1, %v615_v13 }
 0x100   : > { %761 = vst.msk [vmem:[%s7764_s15 + $0x10] sm:$0xff] %vm758_vm1, %v610_v17  ;;  %831 = vst.msk [vmem:[#allocation2 + $0x21] sm:$0xff] %vm758_vm1, %v610_v17  ;;  %v6251_v38 = vpop.f32.mrb[4].mxu0 }
 0x101   : > { %v625_v41 = vadd.f32 %v6251_v38, %v409_v19  ;;  %v619_v42 = vpop.f32.mrb[5].mxu0  ;;  %v413_v19 = vld [vmem:[%s7746_s27 + $0x48] sm:$0xff] }
 0x102   : > { %v620_v46 = vadd.f32 %v619_v42, %v408_v36  ;;  %v7814_v3 = vld [vmem:[#allocation2 + $0x19] sm:$0xff] }
 0x103   : > { %v7792_v6 = vld [vmem:[#allocation2 + $0x18] sm:$0xff]  ;;  %v7794_v8 = vld [vmem:[#allocation2 + $0x10] sm:$0xff]  ;;  %764 = vst.msk [vmem:[%s7764_s15 + $0x28] sm:$0xff] %vm758_vm1, %v625_v41  ;;  %834 = vst.msk [vmem:[#allocation2 + $0x39] sm:$0xff] %vm758_vm1, %v625_v41 }
 0x104   : > { %v7799_v9 = vld [vmem:[#allocation2 + $0x11] sm:$0xff]  ;;  %v7803_v11 = vmul.f32 %v7792_v6, %v7732_v59  ;;  %v7807_v12 = vmul.f32 %v7794_v8, %v7734_v60  ;;  %763 = vst.msk [vmem:[%s7764_s15 + $0x20] sm:$0xff] %vm758_vm1, %v620_v46  ;;  %833 = vst.msk [vmem:[#allocation2 + $0x31] sm:$0xff] %vm758_vm1, %v620_v46  ;;  %v6254_v18 = vpop.f32.mrb[6].mxu0  ;;  %v412_v36 = vld [vmem:[%s7746_s27 + $0x40] sm:$0xff] }
 0x105   : > { %6298 = vmatprep.mubr.msk.f32.mxu0 %vm758_vm1, %v7799_v9  ;;  %v635_v2 = vadd.f32 %v6254_v18, %v411_v1  ;;  %v629_v13 = vpop.f32.mrb[7].mxu0 }
 0x106   : > { %9560 = vst [vmem:[#allocation35_spill] sm:$0xff] %v7803_v11  ;;  %9561 = vst [vmem:[#allocation36_spill] sm:$0xff] %v7807_v12  ;;  %6299 = vmatmul.mubr.msk.f32.gmra.mrb[34].mxu0 %vm758_vm1, %v7814_v3  ;;  %v630_v17 = vadd.f32 %v629_v13, %v410_v4  ;;  %v7854_v13 = vld [vmem:[#allocation2 + $0x29] sm:$0xff]  ;;  %v415_v11 = vld [vmem:[%s7746_s27 + $0x58] sm:$0xff] }
 0x107   : > { %v7824_v38 = vld [vmem:[#allocation2 + $0x28] sm:$0xff]  ;;  %v7826_v41 = vld [vmem:[#allocation2 + $0x20] sm:$0xff]  ;;  %766 = vst.msk [vmem:[%s7764_s15 + $0x38] sm:$0xff] %vm758_vm1, %v635_v2  ;;  %836 = vst.msk [vmem:[#allocation2 + $0x49] sm:$0xff] %vm758_vm1, %v635_v2 }
 0x108   : > { %v7831_v42 = vld [vmem:[#allocation2 + $0x21] sm:$0xff]  ;;  %v7835_v46 = vmul.f32 %v7824_v38, %v7732_v59  ;;  %v7839_v1 = vmul.f32 %v7826_v41, %v7734_v60  ;;  %v7843_v4 = vmul.f32 %v7826_v41, %v7736_v61  ;;  %v7847_v18 = vmul.f32 %v7824_v38, %v7738_v62  ;;  %765 = vst.msk [vmem:[%s7764_s15 + $0x30] sm:$0xff] %vm758_vm1, %v630_v17  ;;  %v6257_v2 = vpop.f32.mrb[8].mxu0  ;;  %v414_v12 = vld [vmem:[%s7746_s27 + $0x50] sm:$0xff] }
 0x109   : > { %835 = vst.msk [vmem:[#allocation2 + $0x41] sm:$0xff] %vm758_vm1, %v630_v17  ;;  %6301 = vmatprep.mubr.msk.f32.mxu0 %vm758_vm1, %v7831_v42 }
 0x10a   : > { %9562 = vst [vmem:[#allocation37_spill] sm:$0xff] %v7835_v46  ;;  %9563 = vst [vmem:[#allocation38_spill] sm:$0xff] %v7839_v1  ;;  %v645_v46 = vadd.f32 %v6257_v2, %v413_v19  ;;  %v639_v1 = vpop.f32.mrb[9].mxu0  ;;  %6302 = vmatmul.mubr.msk.f32.gmra.mrb[36].mxu0 %vm758_vm1, %v7854_v13  ;;  %v7871_v2 = vpop.permute.xlu0 %992 }
 0x10b   : > { %9564 = vst [vmem:[#allocation39_spill] sm:$0xff] %v7843_v4  ;;  %9565 = vst [vmem:[#allocation40_spill] sm:$0xff] %v7847_v18  ;;  %v640_v4 = vadd.f32 %v639_v1, %v412_v36  ;;  %v7860_v18 = vpop.permute.xlu1 %987  ;;  %v7862_v57 = vld [vmem:[#allocation2 + $0x30] sm:$0xff]  ;;  %v7864_v17 = vld [vmem:[#allocation2 + $0x38] sm:$0xff] }
 0x10c   : > { %768 = vst.msk [vmem:[%s7764_s15 + $0x48] sm:$0xff] %vm758_vm1, %v645_v46  ;;  %838 = vst.msk [vmem:[#allocation2 + $0x59] sm:$0xff] %vm758_vm1, %v645_v46  ;;  %v7869_v19 = vld [vmem:[#allocation2 + $0x31] sm:$0xff]  ;;  %v7875_v36 = vmul.f32 %v7862_v57, %v7736_v61  ;;  %v7879_v1 = vmul.f32 %v7864_v17, %v7738_v62  ;;  %v7883_v58 = vmul.f32 %v7862_v57, %v7741_v63  ;;  %v6260_v55 = vpop.f32.mrb[10].mxu0 }
 0x10d   : > { %v7887_v46 = vmul.f32 %v7864_v17, %v7748_v0  ;;  %767 = vst.msk [vmem:[%s7764_s15 + $0x40] sm:$0xff] %vm758_vm1, %v640_v4  ;;  %837 = vst.msk [vmem:[#allocation2 + $0x51] sm:$0xff] %vm758_vm1, %v640_v4  ;;  %6304 = vmatprep.mubr.msk.f32.mxu0 %vm758_vm1, %v7869_v19  ;;  %v649_v56 = vpop.f32.mrb[11].mxu0 }
 0x10e   : > { %9566 = vst [vmem:[#allocation41_spill] sm:$0xff] %v7875_v36  ;;  %9567 = vst [vmem:[#allocation42_spill] sm:$0xff] %v7879_v1  ;;  %v7894_v36 = vld [vmem:[#allocation2 + $0x39] sm:$0xff]  ;;  %v655_v1 = vadd.f32 %v6260_v55, %v415_v11 }
 0x10f   : > { %9568 = vst [vmem:[#allocation43_spill] sm:$0xff] %v7883_v58  ;;  %9569 = vst [vmem:[#allocation44_spill] sm:$0xff] %v7887_v46  ;;  %6305 = vmatmul.mubr.msk.f32.gmra.mrb[38].mxu0 %vm758_vm1, %v7894_v36  ;;  %v650_v58 = vadd.f32 %v649_v56, %v414_v12 }
 0x110   : > { %v7900_v46 = vld [vmem:[#allocation2 + $0x40] sm:$0xff]  ;;  %v7902_v51 = vld [vmem:[#allocation2 + $0x48] sm:$0xff]  ;;  %770 = vst.msk [vmem:[%s7764_s15 + $0x58] sm:$0xff] %vm758_vm1, %v655_v1  ;;  %840 = vst.msk [vmem:[#allocation2 + $0x69] sm:$0xff] %vm758_vm1, %v655_v1  ;;  %v6263_v1 = vpop.f32.mrb[12].mxu0 }
 0x111   : > { %v7907_v4 = vld [vmem:[#allocation2 + $0x41] sm:$0xff]  ;;  %v7911_v55 = vmul.f32 %v7900_v46, %v7741_v63  ;;  %v7915_v56 = vmul.f32 %v7902_v51, %v7748_v0  ;;  %v7919_v11 = vmul.f32 %v7900_v46, %v7766_v10  ;;  %v7923_v12 = vmul.f32 %v7902_v51, %v7768_v16  ;;  %769 = vst.msk [vmem:[%s7764_s15 + $0x50] sm:$0xff] %vm758_vm1, %v650_v58 }
 0x112   : > { %839 = vst.msk [vmem:[#allocation2 + $0x61] sm:$0xff] %vm758_vm1, %v650_v58  ;;  %6307 = vmatprep.mubr.msk.f32.mxu0 %vm758_vm1, %v7907_v4  ;;  %v665_v52 = vadd.f32 %v6263_v1, %v417_v53 }
 0x113   : > { %9570 = vst [vmem:[#allocation45_spill] sm:$0xff] %v7911_v55  ;;  %9571 = vst [vmem:[#allocation46_spill] sm:$0xff] %v7915_v56  ;;  %v7930_v55 = vld [vmem:[#allocation2 + $0x49] sm:$0xff]  ;;  %v7932_v56 = vpop.permute.xlu1 %997 }
 0x114   : > { %9572 = vst [vmem:[#allocation47_spill] sm:$0xff] %v7919_v11  ;;  %9573 = vst [vmem:[#allocation48_spill] sm:$0xff] %v7923_v12  ;;  %v659_v11 = vpop.f32.mrb[13].mxu0  ;;  %6308 = vmatmul.mubr.msk.f32.gmra.mrb[40].mxu0 %vm758_vm1, %v7930_v55  ;;  %v7936_v12 = vpop.permute.xlu0 %1002  ;;  %v7940_v58 = vld [vmem:[#allocation2 + $0x50] sm:$0xff]  ;;  %v7942_v48 = vld [vmem:[#allocation2 + $0x58] sm:$0xff] }
 0x115   : > { %v660_v49 = vadd.f32 %v659_v11, %v416_v54  ;;  %772 = vst.msk [vmem:[%s7764_s15 + $0x68] sm:$0xff] %vm758_vm1, %v665_v52  ;;  %842 = vst.msk [vmem:[#allocation2 + $0x79] sm:$0xff] %vm758_vm1, %v665_v52  ;;  %v7947_v53 = vld [vmem:[#allocation2 + $0x51] sm:$0xff]  ;;  %v7951_v1 = vmul.f32 %v7940_v58, %v7766_v10  ;;  %v7955_v54 = vmul.f32 %v7942_v48, %v7768_v16  ;;  %v6266_v52 = vpop.f32.mrb[14].mxu0 }
 0x116   : > { %v7959_v11 = vmul.f32 %v7940_v58, %v7779_v20  ;;  %v7963_v43 = vmul.f32 %v7942_v48, %v7785_v37  ;;  %6310 = vmatprep.mubr.msk.f32.mxu0 %vm758_vm1, %v7947_v53  ;;  %v669_v45 = vpop.f32.mrb[15].mxu0 }
 0x117   : > { %9574 = vst [vmem:[#allocation49_spill] sm:$0xff] %v7951_v1  ;;  %9575 = vst [vmem:[#allocation50_spill] sm:$0xff] %v7955_v54  ;;  %v7970_v1 = vld [vmem:[#allocation2 + $0x59] sm:$0xff]  ;;  %v675_v54 = vadd.f32 %v6266_v52, %v419_v50 }
 0x118   : > { %9576 = vst [vmem:[#allocation51_spill] sm:$0xff] %v7959_v11  ;;  %9577 = vst [vmem:[#allocation52_spill] sm:$0xff] %v7963_v43  ;;  %6311 = vmatmul.mubr.msk.f32.gmra.mrb[42].mxu0 %vm758_vm1, %v7970_v1  ;;  %v670_v11 = vadd.f32 %v669_v45, %v418_v47  ;;  %v7976_v43 = vpop.permute.xlu1 %1007  ;;  %v7987_v52 = vpop.permute.xlu0 %1012 }
 0x119   : > { %771 = vst.msk [vmem:[%s7764_s15 + $0x60] sm:$0xff] %vm758_vm1, %v660_v49  ;;  %841 = vst.msk [vmem:[#allocation2 + $0x71] sm:$0xff] %vm758_vm1, %v660_v49  ;;  %v7978_v34 = vld [vmem:[#allocation2 + $0x60] sm:$0xff]  ;;  %v7980_v49 = vld [vmem:[#allocation2 + $0x68] sm:$0xff]  ;;  %v6269_v32 = vpop.f32.mrb[16].mxu0 }
 0x11a   : > { %774 = vst.msk [vmem:[%s7764_s15 + $0x78] sm:$0xff] %vm758_vm1, %v675_v54  ;;  %844 = vst.msk [vmem:[#allocation2 + $0x89] sm:$0xff] %vm758_vm1, %v675_v54  ;;  %v7985_v50 = vld [vmem:[#allocation2 + $0x61] sm:$0xff]  ;;  %v7991_v45 = vmul.f32 %v7978_v34, %v7779_v20  ;;  %v7995_v47 = vmul.f32 %v7980_v49, %v7785_v37  ;;  %v7999_v35 = vmul.f32 %v7978_v34, %v7816_v14  ;;  %v679_v33 = vpop.f32.mrb[17].mxu0 }
 0x11b   : > { %9578 = vst [vmem:[#allocation53_spill] sm:$0xff] %v7987_v52  ;;  %v8003_v54 = vmul.f32 %v7980_v49, %v7820_v15  ;;  %773 = vst.msk [vmem:[%s7764_s15 + $0x70] sm:$0xff] %vm758_vm1, %v670_v11  ;;  %6313 = vmatprep.mubr.msk.f32.mxu0 %vm758_vm1, %v7985_v50 }
 0x11c   : > { %9579 = vst [vmem:[#allocation54_spill] sm:$0xff] %v7991_v45  ;;  %9580 = vst [vmem:[#allocation55_spill] sm:$0xff] %v7995_v47  ;;  %v8010_v45 = vld [vmem:[#allocation2 + $0x69] sm:$0xff]  ;;  %v685_v47 = vadd.f32 %v6269_v32, %v421_v39 }
 0x11d   : > { %9581 = vst [vmem:[#allocation56_spill] sm:$0xff] %v7999_v35  ;;  %9582 = vst [vmem:[#allocation57_spill] sm:$0xff] %v8003_v54  ;;  %6314 = vmatmul.mubr.msk.f32.gmra.mrb[44].mxu0 %vm758_vm1, %v8010_v45  ;;  %v680_v35 = vadd.f32 %v679_v33, %v420_v40 }
 0x11e   : > { %843 = vst.msk [vmem:[#allocation2 + $0x81] sm:$0xff] %vm758_vm1, %v670_v11  ;;  %9583 = vst [vmem:[#allocation58_spill] sm:$0xff] %v8010_v45 }
 0x11f   : > { %776 = vst.msk [vmem:[%s7764_s15 + $0x88] sm:$0xff] %vm758_vm1, %v685_v47  ;;  %846 = vst.msk [vmem:[#allocation2 + $0x99] sm:$0xff] %vm758_vm1, %v685_v47  ;;  %v6272_v47 = vpop.f32.mrb[18].mxu0 }
 0x120   : > { %v8016_v54 = vld [vmem:[#allocation2 + $0x70] sm:$0xff]  ;;  %v8018_v28 = vld [vmem:[#allocation2 + $0x78] sm:$0xff]  ;;  %775 = vst.msk [vmem:[%s7764_s15 + $0x80] sm:$0xff] %vm758_vm1, %v680_v35  ;;  %845 = vst.msk [vmem:[#allocation2 + $0x91] sm:$0xff] %vm758_vm1, %v680_v35  ;;  %v695_v29 = vadd.f32 %v6272_v47, %v423_v30 }
 0x121   : > { %v8023_v11 = vld [vmem:[#allocation2 + $0x71] sm:$0xff]  ;;  %v8027_v32 = vmul.f32 %v8016_v54, %v7816_v14  ;;  %v8031_v33 = vmul.f32 %v8018_v28, %v7820_v15  ;;  %v8035_v39 = vmul.f32 %v8016_v54, %v7860_v18  ;;  %v8039_v40 = vmul.f32 %v8018_v28, %v7871_v2 }
 0x122   : > { %9584 = vst [vmem:[#allocation59_spill] sm:$0xff] %v8023_v11  ;;  %6316 = vmatprep.mubr.msk.f32.mxu0 %vm758_vm1, %v8023_v11  ;;  %778 = vst.msk [vmem:[%s7764_s15 + $0x98] sm:$0xff] %vm758_vm1, %v695_v29 }
 0x123   : > { %9585 = vst [vmem:[#allocation60_spill] sm:$0xff] %v8027_v32  ;;  %9586 = vst [vmem:[#allocation61_spill] sm:$0xff] %v8031_v33  ;;  %v8046_v32 = vld [vmem:[#allocation2 + $0x79] sm:$0xff]  ;;  %v8048_v33 = vpop.permute.xlu1 %1017 }
 0x124   : > { %9587 = vst [vmem:[#allocation62_spill] sm:$0xff] %v8035_v39  ;;  %9588 = vst [vmem:[#allocation63_spill] sm:$0xff] %v8039_v40  ;;  %v689_v39 = vpop.f32.mrb[19].mxu0  ;;  %6317 = vmatmul.mubr.msk.f32.gmra.mrb[46].mxu0 %vm758_vm1, %v8046_v32  ;;  %v8052_v40 = vpop.permute.xlu0 %1022 }
 0x125   : > { %9589 = vst [vmem:[#allocation64_spill] sm:$0xff] %v8046_v32  ;;  %9590 = vst [vmem:[#allocation65_spill] sm:$0xff] %v8048_v33  ;;  %v690_v26 = vadd.f32 %v689_v39, %v422_v31  ;;  %v8056_v35 = vld [vmem:[#allocation2 + $0x80] sm:$0xff]  ;;  %v8058_v25 = vld [vmem:[#allocation2 + $0x88] sm:$0xff] }
 0x126   : > { %9591 = vst [vmem:[#allocation66_spill] sm:$0xff] %v8052_v40  ;;  %9592 = vst [vmem:[#allocation67_spill] sm:$0xff] %v8058_v25  ;;  %v8063_v30 = vld [vmem:[#allocation2 + $0x81] sm:$0xff]  ;;  %v8067_v47 = vmul.f32 %v8056_v35, %v7860_v18  ;;  %v8071_v31 = vmul.f32 %v8058_v25, %v7871_v2  ;;  %v8075_v39 = vmul.f32 %v8056_v35, %v7932_v56 }
 0x127   : > { %848 = vst.msk [vmem:[#allocation2 + $0xa9] sm:$0xff] %vm758_vm1, %v695_v29  ;;  %9593 = vst [vmem:[#allocation68_spill] sm:$0xff] %v8063_v30  ;;  %v8079_v22 = vmul.f32 %v8058_v25, %v7936_v12  ;;  %v6275_v29 = vpop.f32.mrb[20].mxu0  ;;  %6319 = vmatprep.mubr.msk.f32.mxu0 %vm758_vm1, %v8063_v30  ;;  %v8094_v32 = vld [vmem:[#allocation2 + $0x90] sm:$0xff] }
 0x128   : > { %9594 = vst [vmem:[#allocation69_spill] sm:$0xff] %v8067_v47  ;;  %9595 = vst [vmem:[#allocation70_spill] sm:$0xff] %v8071_v31  ;;  %v8086_v47 = vld [vmem:[#allocation2 + $0x89] sm:$0xff]  ;;  %v705_v31 = vadd.f32 %v6275_v29, %v425_v27  ;;  %v699_v7 = vpop.f32.mrb[21].mxu0  ;;  %v8101_v27 = vld [vmem:[#allocation2 + $0x91] sm:$0xff]  ;;  %v8103_v29 = vpop.permute.xlu0 %1032 }
 0x129   : > { %9596 = vst [vmem:[#allocation71_spill] sm:$0xff] %v8075_v39  ;;  %9597 = vst [vmem:[#allocation72_spill] sm:$0xff] %v8079_v22  ;;  %6320 = vmatmul.mubr.msk.f32.gmra.mrb[48].mxu0 %vm758_vm1, %v8086_v47  ;;  %v700_v39 = vadd.f32 %v699_v7, %v424_v24  ;;  %v8092_v22 = vpop.permute.xlu1 %1027  ;;  %v8107_v7 = vmul.f32 %v8094_v32, %v7932_v56  ;;  %v6278_v30 = vpop.f32.mrb[22].mxu0 }
 0x12a   : > { %777 = vst.msk [vmem:[%s7764_s15 + $0x90] sm:$0xff] %vm758_vm1, %v690_v26  ;;  %847 = vst.msk [vmem:[#allocation2 + $0xa1] sm:$0xff] %vm758_vm1, %v690_v26  ;;  %v8096_v26 = vld [vmem:[#allocation2 + $0x98] sm:$0xff]  ;;  %6322 = vmatprep.mubr.msk.f32.mxu0 %vm758_vm1, %v8101_v27  ;;  %v709_v25 = vpop.f32.mrb[23].mxu0 }
 0x12b   : > { %9598 = vst [vmem:[#allocation73_spill] sm:$0xff] %v8086_v47  ;;  %9599 = vst [vmem:[#allocation74_spill] sm:$0xff] %v8092_v22  ;;  %v8111_v24 = vmul.f32 %v8096_v26, %v7936_v12  ;;  %v8115_v47 = vmul.f32 %v8094_v32, %v7976_v43 }
 0x12c   : > { %9600 = vst [vmem:[#allocation75_spill] sm:$0xff] %v8094_v32  ;;  %9601 = vst [vmem:[#allocation76_spill] sm:$0xff] %v8096_v26  ;;  %v429_v32 = vld [vmem:[%s7746_s27 + $0xc8] sm:$0xff] }
 0x12d   : > { %780 = vst.msk [vmem:[%s7764_s15 + $0xa8] sm:$0xff] %vm758_vm1, %v705_v31  ;;  %850 = vst.msk [vmem:[#allocation2 + $0xb9] sm:$0xff] %vm758_vm1, %v705_v31  ;;  %v8119_v31 = vmul.f32 %v8096_v26, %v7987_v52  ;;  %v428_v26 = vld [vmem:[%s7746_s27 + $0xc0] sm:$0xff] }
 0x12e   : > { %9602 = vst [vmem:[#allocation77_spill] sm:$0xff] %v8101_v27  ;;  %9603 = vst [vmem:[#allocation78_spill] sm:$0xff] %v8103_v29  ;;  %v431_v27 = vld [vmem:[%s7746_s27 + $0xd8] sm:$0xff] }
 0x12f   : > { %9604 = vst [vmem:[#allocation79_spill] sm:$0xff] %v8107_v7  ;;  %9605 = vst [vmem:[#allocation80_spill] sm:$0xff] %v8111_v24  ;;  %v8126_v7 = vld [vmem:[#allocation2 + $0x99] sm:$0xff]  ;;  %v715_v24 = vadd.f32 %v6278_v30, %v427_v23 }
 0x130   : > { %9606 = vst [vmem:[#allocation81_spill] sm:$0xff] %v8115_v47  ;;  %9607 = vst [vmem:[#allocation82_spill] sm:$0xff] %v8119_v31  ;;  %6323 = vmatmul.mubr.msk.f32.gmra.mrb[50].mxu0 %vm758_vm1, %v8126_v7  ;;  %v710_v47 = vadd.f32 %v709_v25, %v426_v21 }
 0x131   : > { %779 = vst.msk [vmem:[%s7764_s15 + $0xa0] sm:$0xff] %vm758_vm1, %v700_v39  ;;  %849 = vst.msk [vmem:[#allocation2 + $0xb1] sm:$0xff] %vm758_vm1, %v700_v39  ;;  %v8132_v31 = vld [vmem:[#allocation2 + $0xa0] sm:$0xff]  ;;  %v8134_v11 = vld [vmem:[#allocation2 + $0xa8] sm:$0xff] }
 0x132   : > { %9608 = vst [vmem:[#allocation83_spill] sm:$0xff] %v8126_v7  ;;  %9609 = vst [vmem:[#allocation84_spill] sm:$0xff] %v8132_v31  ;;  %v8139_v39 = vld [vmem:[#allocation2 + $0xa1] sm:$0xff]  ;;  %v8143_v23 = vmul.f32 %v8132_v31, %v7976_v43  ;;  %v8147_v21 = vmul.f32 %v8134_v11, %v7987_v52  ;;  %v8151_v25 = vmul.f32 %v8132_v31, %v8048_v33  ;;  %v430_v31 = vld [vmem:[%s7746_s27 + $0xd0] sm:$0xff] }
 0x133   : > { %9610 = vst [vmem:[#allocation85_spill] sm:$0xff] %v8134_v11  ;;  %782 = vst.msk [vmem:[%s7764_s15 + $0xb8] sm:$0xff] %vm758_vm1, %v715_v24  ;;  %v8155_v30 = vmul.f32 %v8134_v11, %v8052_v40  ;;  %6325 = vmatprep.mubr.msk.f32.mxu0 %vm758_vm1, %v8139_v39 }
 0x134   : > { %852 = vst.msk [vmem:[#allocation2 + $0xc9] sm:$0xff] %vm758_vm1, %v715_v24  ;;  %9611 = vst [vmem:[#allocation86_spill] sm:$0xff] %v8139_v39  ;;  %v6281_v24 = vpop.f32.mrb[24].mxu0 }
 0x135   : > { %9612 = vst [vmem:[#allocation87_spill] sm:$0xff] %v8143_v23  ;;  %9613 = vst [vmem:[#allocation88_spill] sm:$0xff] %v8147_v21  ;;  %v8162_v23 = vld [vmem:[#allocation2 + $0xa9] sm:$0xff]  ;;  %v8164_v21 = vpop.permute.xlu1 %1037  ;;  %v725_v7 = vadd.f32 %v6281_v24, %v429_v32 }
 0x136   : > { %9614 = vst [vmem:[#allocation89_spill] sm:$0xff] %v8151_v25  ;;  %9615 = vst [vmem:[#allocation90_spill] sm:$0xff] %v8155_v30  ;;  %v719_v25 = vpop.f32.mrb[25].mxu0  ;;  %6326 = vmatmul.mubr.msk.f32.gmra.mrb[52].mxu0 %vm758_vm1, %v8162_v23  ;;  %v8168_v30 = vpop.permute.xlu0 %1042 }
 0x137   : > { %781 = vst.msk [vmem:[%s7764_s15 + $0xb0] sm:$0xff] %vm758_vm1, %v710_v47  ;;  %851 = vst.msk [vmem:[#allocation2 + $0xc1] sm:$0xff] %vm758_vm1, %v710_v47  ;;  %v720_v11 = vadd.f32 %v719_v25, %v428_v26 }
 0x138   : > { %9616 = vst [vmem:[#allocation91_spill] sm:$0xff] %v8162_v23  ;;  %9617 = vst [vmem:[#allocation92_spill] sm:$0xff] %v8168_v30  ;;  %v8172_v47 = vld [vmem:[#allocation2 + $0xb0] sm:$0xff]  ;;  %v8174_v52 = vld [vmem:[#allocation2 + $0xb8] sm:$0xff] }
 0x139   : > { %9618 = vst [vmem:[#allocation93_spill] sm:$0xff] %v8172_v47  ;;  %9619 = vst [vmem:[#allocation94_spill] sm:$0xff] %v8174_v52  ;;  %v8179_v39 = vld [vmem:[#allocation2 + $0xb1] sm:$0xff]  ;;  %v8183_v32 = vmul.f32 %v8172_v47, %v8048_v33  ;;  %v8187_v26 = vmul.f32 %v8174_v52, %v8052_v40  ;;  %v8191_v25 = vmul.f32 %v8172_v47, %v8092_v22  ;;  %v433_v47 = vld [vmem:[%s7746_s27 + $0xe8] sm:$0xff] }
 0x13a   : > { %784 = vst.msk [vmem:[%s7764_s15 + $0xc8] sm:$0xff] %vm758_vm1, %v725_v7  ;;  %854 = vst.msk [vmem:[#allocation2 + $0xd9] sm:$0xff] %vm758_vm1, %v725_v7  ;;  %v8195_v24 = vmul.f32 %v8174_v52, %v8103_v29  ;;  %v6284_v7 = vpop.f32.mrb[26].mxu0  ;;  %6328 = vmatprep.mubr.msk.f32.mxu0 %vm758_vm1, %v8179_v39  ;;  %v432_v40 = vld [vmem:[%s7746_s27 + $0xe0] sm:$0xff] }
 0x13b   : > { %9620 = vst [vmem:[#allocation95_spill] sm:$0xff] %v8179_v39  ;;  %9621 = vst [vmem:[#allocation96_spill] sm:$0xff] %v8183_v32  ;;  %v8202_v32 = vld [vmem:[#allocation2 + $0xb9] sm:$0xff]  ;;  %v729_v23 = vpop.f32.mrb[27].mxu0 }
 0x13c   : > { %9622 = vst [vmem:[#allocation97_spill] sm:$0xff] %v8187_v26  ;;  %9623 = vst [vmem:[#allocation98_spill] sm:$0xff] %v8191_v25  ;;  %v735_v26 = vadd.f32 %v6284_v7, %v431_v27  ;;  %6329 = vmatmul.mubr.msk.f32.gmra.mrb[54].mxu0 %vm758_vm1, %v8202_v32  ;;  %v893_v25 = vld [vmem:[#allocation2] sm:$0xff]  ;;  %v730_v52 = vadd.f32 %v729_v23, %v430_v31  ;;  %v8217_v27 = vpop.permute.xlu0 %1052  ;;  %v6287_v39 = vpop.f32.mrb[28].mxu0 }
 0x13d   : > { %9624 = vst [vmem:[#allocation99_spill] sm:$0xff] %v8195_v24  ;;  %783 = vst.msk [vmem:[%s7764_s15 + $0xc0] sm:$0xff] %vm758_vm1, %v720_v11  ;;  %v8206_v24 = vpop.permute.xlu1 %1047 }
 0x13e   : > { %853 = vst.msk [vmem:[#allocation2 + $0xd1] sm:$0xff] %vm758_vm1, %v720_v11  ;;  %9625 = vst [vmem:[#allocation100_spill] sm:$0xff] %v8202_v32  ;;  %v8210_v33 = vld [vmem:[#allocation2 + $0xc0] sm:$0xff]  ;;  %v8212_v11 = vld [vmem:[#allocation2 + $0xc8] sm:$0xff] }
 0x13f   : > { %9626 = vst [vmem:[#allocation101_spill] sm:$0xff] %v8210_v33  ;;  %9627 = vst [vmem:[#allocation102_spill] sm:$0xff] %v8212_v11  ;;  %v8219_v7 = vld [vmem:[#allocation2 + $0xc1] sm:$0xff]  ;;  %v8223_v31 = vmul.f32 %v8210_v33, %v8092_v22  ;;  %v8227_v23 = vmul.f32 %v8212_v11, %v8103_v29  ;;  %v8231_v32 = vmul.f32 %v8210_v33, %v8164_v21  ;;  %v739_v29 = vpop.f32.mrb[29].mxu0  ;;  %v435_v33 = vld [vmem:[%s7746_s27 + $0xf8] sm:$0xff] }
 0x140   : > { %786 = vst.msk [vmem:[%s7764_s15 + $0xd8] sm:$0xff] %vm758_vm1, %v735_v26  ;;  %856 = vst.msk [vmem:[#allocation2 + $0xe9] sm:$0xff] %vm758_vm1, %v735_v26  ;;  %v8235_v26 = vmul.f32 %v8212_v11, %v8168_v30  ;;  %6331 = vmatprep.mubr.msk.f32.mxu0 %vm758_vm1, %v8219_v7  ;;  %v740_v11 = vadd.f32 %v739_v29, %v432_v40  ;;  %v434_v22 = vld [vmem:[%s7746_s27 + $0xf0] sm:$0xff] }
 0x141   : > { %9628 = vst [vmem:[#allocation103_spill] sm:$0xff] %v8219_v7  ;;  %9629 = vst [vmem:[#allocation104_spill] sm:$0xff] %v8223_v31  ;;  %v8242_v31 = vld [vmem:[#allocation2 + $0xc9] sm:$0xff]  ;;  %v1087_v7 = vmul.f32 %v7794_v8, %v7736_v61 }
 0x142   : > { %9630 = vst [vmem:[#allocation105_spill] sm:$0xff] %v8227_v23  ;;  %9631 = vst [vmem:[#allocation106_spill] sm:$0xff] %v8231_v32  ;;  %v745_v23 = vadd.f32 %v6287_v39, %v433_v47  ;;  %6332 = vmatmul.mubr.msk.f32.gmra.mrb[56].mxu0 %vm758_vm1, %v8242_v31  ;;  %v894_v32 = vld [vmem:[#allocation2 + $0x8] sm:$0xff] }
 0x143   : > { %9632 = vst [vmem:[#allocation107_spill] sm:$0xff] %v8235_v26  ;;  %785 = vst.msk [vmem:[%s7764_s15 + $0xd0] sm:$0xff] %vm758_vm1, %v730_v52  ;;  %v1085_v26 = vmul.f32 %v7734_v60, %v893_v25  ;;  %v8277_v25 = vpop.permute.xlu1 %1057 }
 0x144   : > { %855 = vst.msk [vmem:[#allocation2 + $0xe1] sm:$0xff] %vm758_vm1, %v730_v52  ;;  %9633 = vst [vmem:[#allocation108_spill] sm:$0xff] %v8242_v31 }
 0x145   : > { %v8249_v45 = vld [vmem:[#allocation2 + $0xd0] sm:$0xff]  ;;  %v8251_v52 = vld [vmem:[#allocation2 + $0xd8] sm:$0xff]  ;;  %788 = vst.msk [vmem:[%s7764_s15 + $0xe8] sm:$0xff] %vm758_vm1, %v745_v23  ;;  %858 = vst.msk [vmem:[#allocation2 + $0xf9] sm:$0xff] %vm758_vm1, %v745_v23  ;;  %v6290_v23 = vpop.f32.mrb[30].mxu0 }
 0x146   : > { %9634 = vst [vmem:[#allocation109_spill] sm:$0xff] %v8249_v45  ;;  %9635 = vst [vmem:[#allocation110_spill] sm:$0xff] %v8251_v52  ;;  %v8256_v39 = vld [vmem:[#allocation2 + $0xd1] sm:$0xff]  ;;  %v8260_v47 = vmul.f32 %v8249_v45, %v8164_v21  ;;  %v8264_v60 = vmul.f32 %v8251_v52, %v8168_v30  ;;  %v8268_v40 = vmul.f32 %v8249_v45, %v8206_v24 }
 0x147   : > { %9636 = vst [vmem:[#allocation111_spill] sm:$0xff] %v8256_v39  ;;  %v8272_v29 = vmul.f32 %v8251_v52, %v8217_v27  ;;  %787 = vst.msk [vmem:[%s7764_s15 + $0xe0] sm:$0xff] %vm758_vm1, %v740_v11  ;;  %6334 = vmatprep.mubr.msk.f32.mxu0 %vm758_vm1, %v8256_v39  ;;  %v755_v31 = vadd.f32 %v6290_v23, %v435_v33  ;;  %v749_v52 = vpop.f32.mrb[31].mxu0 }
 0x148   : > { %9637 = vst [vmem:[#allocation112_spill] sm:$0xff] %v8260_v47  ;;  %9638 = vst [vmem:[#allocation113_spill] sm:$0xff] %v8264_v60  ;;  %v8281_v60 = vld [vmem:[#allocation2 + $0xd9] sm:$0xff]  ;;  %v5672_v47 = vld [vmem:[%s9429_s4 + $0x50] sm:$0xff]  ;;  %v750_v39 = vadd.f32 %v749_v52, %v434_v22 }
 0x149   : > { %9639 = vst [vmem:[#allocation114_spill] sm:$0xff] %v8268_v40  ;;  %9640 = vst [vmem:[#allocation115_spill] sm:$0xff] %v8272_v29  ;;  %v5673_v29 = vld [vmem:[%s9429_s4 + $0x58] sm:$0xff]  ;;  %v1086_v40 = vmul.f32 %v7732_v59, %v894_v32  ;;  %6335 = vmatmul.mubr.msk.f32.gmra.mrb[58].mxu0 %vm758_vm1, %v8281_v60 }
 0x14a   : > { %857 = vst.msk [vmem:[#allocation2 + $0xf1] sm:$0xff] %vm758_vm1, %v740_v11  ;;  %v8290_v11 = vpop.permute.xlu0 %1062  ;;  %6347 = vmatprep.mubr.msk.f32.mxu0 %vm758_vm1, %v1085_v26  ;;  %790 = vst.msk [vmem:[%s7764_s15 + $0xf8] sm:$0xff] %vm758_vm1, %v755_v31  ;;  %v6795_v33 = vpack.c.bf16 %v5673_v29, %v5672_v47  ;;  %v5604_v26 = vld [vmem:[%s9429_s4 + $0x30] sm:$0xff]  ;;  %v5605_v52 = vld [vmem:[%s9429_s4 + $0x38] sm:$0xff]  ;;  %v1089_v47 = vmul.f32 %v7826_v41, %v7741_v63 }
 0x14b   : > { %v8297_v45 = vld [vmem:[#allocation2 + $0xe0] sm:$0xff]  ;;  %v8299_v30 = vld [vmem:[#allocation2 + $0xe8] sm:$0xff]  ;;  %860 = vst.msk [vmem:[#allocation2 + $0x109] sm:$0xff] %vm758_vm1, %v755_v31  ;;  %789 = vst.msk [vmem:[%s7764_s15 + $0xf0] sm:$0xff] %vm758_vm1, %v750_v39 }
 0x14c   : > { %v8304_v59 = vld [vmem:[#allocation2 + $0xe1] sm:$0xff]  ;;  %v8308_v32 = vmul.f32 %v8297_v45, %v8206_v24  ;;  %v8312_v22 = vmul.f32 %v8299_v30, %v8217_v27  ;;  %v8316_v61 = vmul.f32 %v8297_v45, %v8277_v25  ;;  %v8320_v8 = vmul.f32 %v8299_v30, %v8290_v11  ;;  %859 = vst.msk [vmem:[#allocation2 + $0x101] sm:$0xff] %vm758_vm1, %v750_v39  ;;  %v8327_v31 = vld [vmem:[#allocation2 + $0xe9] sm:$0xff] }
 0x14d   : > { %6337 = vmatprep.mubr.msk.f32.mxu1 %vm758_vm1, %v8304_v59  ;;  %6348 = vmatmul.mubr.msk.f32.vlgmr.msra.gmra.mrb[32].mxu0 %vm758_vm1, %v1086_v40  ;;  %v1088_v39 = vmul.f32 %v7792_v6, %v7738_v62  ;;  %v5707_v40 = vld [vmem:[%s9429_s4 + $0x68] sm:$0xff] }
 0x14e   : > { %9641 = vst [vmem:[#allocation116_spill] sm:$0xff] %v8308_v32  ;;  %9642 = vst [vmem:[#allocation117_spill] sm:$0xff] %v8312_v22  ;;  %6338 = vmatmul.mubr.msk.f32.vlgmr.msra.gmra.mrb[0].mxu1 %vm758_vm1, %v8327_v31  ;;  %6350 = vmatprep.mubr.msk.f32.mxu0 %vm758_vm1, %v1087_v7  ;;  %v8348_v22 = vpop.permute.xlu1 %1067  ;;  %v8350_v32 = vpop.permute.xlu0 %1072  ;;  %v5706_v7 = vld [vmem:[%s9429_s4 + $0x60] sm:$0xff] }
 0x14f   : > { %9643 = vst [vmem:[#allocation118_spill] sm:$0xff] %v8320_v8  ;;  %6794 = vmatpush3.bf16.msra.mxu1 %v7700_v44  ;;  %6786 = vmatpush3.bf16.msra.mxu0 %v7756_v5  ;;  %v8355_v44 = vpack.c.bf16 %v5605_v52, %v5604_v26  ;;  %v8375_v5 = vld [vmem:[#allocation2 + $0xf9] sm:$0xff]  ;;  %v1090_v26 = vmul.f32 %v7824_v38, %v7748_v0  ;;  %v9647_v38 = vld [vmem:[#allocation67_spill] sm:$0xff] }
 0x150   : > { %6796 = vmatprep.subr.bf16.mxu1 %v6795_v33  ;;  %v1091_v52 = vmul.f32 %v7862_v57, %v7766_v10  ;;  %v1092_v0 = vmul.f32 %v7864_v17, %v7768_v16  ;;  %v1094_v57 = vmul.f32 %v7902_v51, %v7785_v37  ;;  %v1095_v10 = vmul.f32 %v7940_v58, %v7816_v14  ;;  %v9645_v14 = vld [vmem:[#allocation59_spill] sm:$0xff]  ;;  %v9658_v58 = vld [vmem:[#allocation78_spill] sm:$0xff] }
 0x151   : > { %v8344_v29 = vld [vmem:[#allocation2 + $0xf0] sm:$0xff]  ;;  %v8346_v23 = vld [vmem:[#allocation2 + $0xf8] sm:$0xff]  ;;  %6351 = vmatmul.mubr.msk.f32.gmra.mrb[34].mxu0 %vm758_vm1, %v1088_v39  ;;  %6788 = vmatprep.subr.bf16.mxu0 %v8355_v44  ;;  %v8394_v39 = vpack.c.bf16 %v5707_v40, %v5706_v7  ;;  %v1096_v16 = vmul.f32 %v7942_v48, %v7820_v15  ;;  %v1098_v51 = vmul.f32 %v7980_v49, %v7871_v2 }
 0x152   : > { %v8352_v8 = vld [vmem:[#allocation2 + $0xf1] sm:$0xff]  ;;  %v8359_v62 = vmul.f32 %v8344_v29, %v8277_v25  ;;  %v8363_v63 = vmul.f32 %v8346_v23, %v8290_v11  ;;  %v8367_v6 = vmul.f32 %v8344_v29, %v8348_v22  ;;  %v8371_v41 = vmul.f32 %v8346_v23, %v8350_v32  ;;  %6353 = vmatprep.mubr.msk.f32.mxu0 %vm758_vm1, %v1089_v47  ;;  %v9664_v47 = vld [vmem:[#allocation94_spill] sm:$0xff] }
 0x153   : > { %6340 = vmatprep.mubr.msk.f32.mxu1 %vm758_vm1, %v8352_v8  ;;  %v1099_v37 = vmul.f32 %v8016_v54, %v7932_v56  ;;  %v1101_v48 = vmul.f32 %v8056_v35, %v7976_v43  ;;  %v9646_v15 = vld [vmem:[#allocation53_spill] sm:$0xff]  ;;  %v9651_v43 = vld [vmem:[#allocation68_spill] sm:$0xff]  ;;  %v9661_v54 = vld [vmem:[#allocation83_spill] sm:$0xff] }
 0x154   : > { %6341 = vmatmul.mubr.msk.f32.gmra.mrb[2].mxu1 %vm758_vm1, %v8375_v5  ;;  %v9653_v2 = vld [vmem:[#allocation76_spill] sm:$0xff]  ;;  %v9656_v56 = vld [vmem:[#allocation73_spill] sm:$0xff]  ;;  %v9662_v35 = vld [vmem:[#allocation86_spill] sm:$0xff] }
 0x155   : > { %6503 = vmatprep.mubr.msk.f32.mxu1 %vm758_vm1, %v7799_v9  ;;  %6354 = vmatmul.mubr.msk.f32.gmra.mrb[36].mxu0 %vm758_vm1, %v1090_v26  ;;  %v1093_v9 = vmul.f32 %v7900_v46, %v7779_v20  ;;  %v1097_v20 = vmul.f32 %v7978_v34, %v7860_v18  ;;  %v1100_v34 = vmul.f32 %v8018_v28, %v7936_v12  ;;  %v9648_v18 = vld [vmem:[#allocation65_spill] sm:$0xff]  ;;  %v9650_v28 = vld [vmem:[#allocation64_spill] sm:$0xff]  ;;  %v9654_v46 = vld [vmem:[#allocation74_spill] sm:$0xff] }
 0x156   : > { %6356 = vmatprep.mubr.msk.f32.mxu0 %vm758_vm1, %v1091_v52  ;;  %v9657_v12 = vld [vmem:[#allocation77_spill] sm:$0xff]  ;;  %v9666_v52 = vld [vmem:[#allocation91_spill] sm:$0xff] }
 0x157   : > { %v9660_v49 = vld [vmem:[#allocation93_spill] sm:$0xff] }
 0x158   : > { %6504 = vmatmul.mubr.msk.f32.vlgmr.msra.gmra.mrb[4].mxu1 %vm758_vm1, %v7814_v3  ;;  %v9644_v3 = vld [vmem:[#allocation58_spill] sm:$0xff]  ;;  %v9665_v40 = vld [vmem:[#allocation101_spill] sm:$0xff] }
 0x159   : > { %6506 = vmatprep.mubr.msk.f32.mxu1 %vm758_vm1, %v7831_v42  ;;  %6798 = vmatpush3.bf16.msra.mxu1 %v6795_v33  ;;  %v1102_v42 = vmul.f32 %v9647_v38, %v9646_v15  ;;  %v9663_v33 = vld [vmem:[#allocation92_spill] sm:$0xff]  ;;  %v1109_v26 = vmul.f32 %v9665_v40, %v8206_v24  ;;  %v9671_v24 = vld [vmem:[#allocation103_spill] sm:$0xff]  ;;  %v9682_v40 = vld [vmem:[#allocation9_spill] sm:$0xff] }
 0x15a   : > { %6800 = vmatprep.subr.bf16.mxu1 %v8394_v39  ;;  %6357 = vmatmul.mubr.msk.f32.gmra.mrb[38].mxu0 %vm758_vm1, %v1092_v0  ;;  %v1108_v7 = vmul.f32 %v9664_v47, %v9663_v33  ;;  %v9668_v0 = vld [vmem:[#allocation102_spill] sm:$0xff]  ;;  %v1797_v38 = vld [vmem:[#allocation2 + $0xa] sm:$0xff] }
 0x15b   : > { %6359 = vmatprep.mubr.msk.f32.mxu0 %vm758_vm1, %v1093_v9  ;;  %v1110_v9 = vmul.f32 %v9668_v0, %v8217_v27  ;;  %v8507_v27 = vpop.permute.xlu1 %1077  ;;  %v8577_v33 = vld [vmem:[#allocation2 + $0x3a] sm:$0xff] }
 0x15c   : > { %6507 = vmatmul.mubr.msk.f32.gmra.mrb[6].mxu1 %vm758_vm1, %v7854_v13  ;;  %v9649_v13 = vld [vmem:[#allocation75_spill] sm:$0xff] }
 0x15d   : > { %6509 = vmatprep.mubr.msk.f32.mxu1 %vm758_vm1, %v7869_v19  ;;  %v1103_v17 = vmul.f32 %v9649_v13, %v9648_v18  ;;  %v9652_v19 = vld [vmem:[#allocation66_spill] sm:$0xff] }
 0x15e   : > { %6360 = vmatmul.mubr.msk.f32.gmra.mrb[40].mxu0 %vm758_vm1, %v1094_v57  ;;  %v9669_v57 = vld [vmem:[#allocation109_spill] sm:$0xff]  ;;  %v8537_v13 = vld [vmem:[#allocation2 + $0x101] sm:$0xff] }
 0x15f   : > { %6362 = vmatprep.mubr.msk.f32.mxu0 %vm758_vm1, %v1095_v10  ;;  %v1111_v10 = vmul.f32 %v9669_v57, %v8277_v25  ;;  %v9673_v25 = vld [vmem:[#allocation108_spill] sm:$0xff] }
 0x160   : > { %6510 = vmatmul.mubr.msk.f32.gmra.mrb[8].mxu1 %vm758_vm1, %v7894_v36  ;;  %v1104_v36 = vmul.f32 %v9653_v2, %v9652_v19  ;;  %v9678_v19 = vld [vmem:[#allocation5_spill] sm:$0xff]  ;;  %v8596_v57 = vld [vmem:[#allocation2 + $0x4a] sm:$0xff] }
 0x161   : > { %6512 = vmatprep.mubr.msk.f32.mxu1 %vm758_vm1, %v7907_v4  ;;  %v9655_v4 = vld [vmem:[#allocation84_spill] sm:$0xff] }
 0x162   : > { %6363 = vmatmul.mubr.msk.f32.gmra.mrb[42].mxu0 %vm758_vm1, %v1096_v16  ;;  %v9670_v16 = vld [vmem:[#allocation100_spill] sm:$0xff] }
 0x163   : > { %6365 = vmatprep.mubr.msk.f32.mxu0 %vm758_vm1, %v1097_v20  ;;  %v9672_v20 = vld [vmem:[#allocation110_spill] sm:$0xff] }
 0x164   : > { %6513 = vmatmul.mubr.msk.f32.gmra.mrb[10].mxu1 %vm758_vm1, %v7930_v55  ;;  %v1105_v55 = vmul.f32 %v9655_v4, %v9654_v46  ;;  %v9679_v46 = vld [vmem:[#allocation8_spill] sm:$0xff] }
 0x165   : > { %6515 = vmatprep.mubr.msk.f32.mxu1 %vm758_vm1, %v7947_v53  ;;  %v9659_v53 = vld [vmem:[#allocation85_spill] sm:$0xff] }
 0x166   : > { %6366 = vmatmul.mubr.msk.f32.gmra.mrb[44].mxu0 %vm758_vm1, %v1098_v51  ;;  %v1112_v51 = vmul.f32 %v9672_v20, %v8290_v11  ;;  %v1115_v11 = vmul.f32 %v8344_v29, %v8507_v27  ;;  %v1798_v29 = vld [vmem:[#allocation2 + $0x12] sm:$0xff] }
 0x167   : > { %6368 = vmatprep.mubr.msk.f32.mxu0 %vm758_vm1, %v1099_v37  ;;  %v1113_v37 = vmul.f32 %v8297_v45, %v8348_v22  ;;  %v8519_v45 = vpop.permute.xlu0 %1082 }
 0x168   : > { %6516 = vmatmul.mubr.msk.f32.gmra.mrb[12].mxu1 %vm758_vm1, %v7970_v1  ;;  %v1106_v1 = vmul.f32 %v9659_v53, %v9658_v58  ;;  %v5741_v58 = vld [vmem:[%s9429_s4 + $0x78] sm:$0xff]  ;;  %v9680_v53 = vld [vmem:[#allocation7_spill] sm:$0xff] }
 0x169   : > { %6518 = vmatprep.mubr.msk.f32.mxu1 %vm758_vm1, %v7985_v50  ;;  %v1107_v50 = vmul.f32 %v9660_v49, %v8164_v21  ;;  %v9667_v21 = vld [vmem:[#allocation95_spill] sm:$0xff]  ;;  %v3189_v20 = vmul.f32 %v9680_v53, %v8577_v33 }
 0x16a   : > { %6369 = vmatmul.mubr.msk.f32.gmra.mrb[46].mxu0 %vm758_vm1, %v1100_v34  ;;  %v9674_v34 = vld [vmem:[#allocation111_spill] sm:$0xff] }
 0x16b   : > { %6371 = vmatprep.mubr.msk.f32.mxu0 %vm758_vm1, %v1101_v48  ;;  %v1796_v48 = vld [vmem:[#allocation2 + $0x2] sm:$0xff] }
 0x16c   : > { %6519 = vmatmul.mubr.msk.f32.gmra.mrb[14].mxu1 %vm758_vm1, %v9644_v3  ;;  %v1114_v3 = vmul.f32 %v8299_v30, %v8350_v32  ;;  %v1116_v30 = vmul.f32 %v8346_v23, %v8519_v45  ;;  %v8543_v23 = vld [vmem:[#allocation2 + $0x22] sm:$0xff] }
 0x16d   : > { %6521 = vmatprep.mubr.msk.f32.mxu1 %vm758_vm1, %v9645_v14  ;;  %v9675_v14 = vld [vmem:[#allocation4_spill] sm:$0xff]  ;;  %v1960_v4 = vmul.f32 %v9679_v46, %v8543_v23 }
 0x16e   : > { %6372 = vmatmul.mubr.msk.f32.gmra.mrb[48].mxu0 %vm758_vm1, %v1102_v42  ;;  %v1956_v15 = vmul.f32 %v9675_v14, %v1796_v48  ;;  %v9676_v42 = vld [vmem:[#allocation6_spill] sm:$0xff] }
 0x16f   : > { %6374 = vmatprep.mubr.msk.f32.mxu0 %vm758_vm1, %v1103_v17  ;;  %v1957_v18 = vmul.f32 %v9676_v42, %v1797_v38  ;;  %v9677_v17 = vld [vmem:[#allocation3_spill] sm:$0xff]  ;;  %v3191_v38 = vmul.f32 %v9682_v40, %v8596_v57 }
 0x170   : > { %6522 = vmatmul.mubr.msk.f32.gmra.mrb[16].mxu1 %vm758_vm1, %v9650_v28  ;;  %v1958_v28 = vmul.f32 %v9677_v17, %v1798_v29 }
 0x171   : > { %6524 = vmatprep.mubr.msk.f32.mxu1 %vm758_vm1, %v9651_v43  ;;  %v1799_v43 = vld [vmem:[#allocation2 + $0x1a] sm:$0xff] }
 0x172   : > { %6375 = vmatmul.mubr.msk.f32.gmra.mrb[50].mxu0 %vm758_vm1, %v1104_v36  ;;  %v1959_v2 = vmul.f32 %v9678_v19, %v1799_v43  ;;  %v8550_v36 = vld [vmem:[#allocation2 + $0x109] sm:$0xff]  ;;  %v3185_v49 = vmul.f32 %v9676_v42, %v1799_v43 }
 0x173   : > { %6377 = vmatprep.mubr.msk.f32.mxu0 %vm758_vm1, %v1105_v55  ;;  %v3184_v55 = vmul.f32 %v9675_v14, %v1798_v29  ;;  %v9687_v29 = vld [vmem:[#allocation16_spill] sm:$0xff] }
 0x174   : > { %6525 = vmatmul.mubr.msk.f32.gmra.mrb[18].mxu1 %vm758_vm1, %v9656_v56  ;;  %v8555_v56 = vld [vmem:[#allocation2 + $0x2a] sm:$0xff] }
 0x175   : > { %6527 = vmatprep.mubr.msk.f32.mxu1 %vm758_vm1, %v9657_v12  ;;  %v8560_v12 = vld [vmem:[#allocation2 + $0x32] sm:$0xff]  ;;  %v8629_v43 = vld [vmem:[#allocation2 + $0x6a] sm:$0xff] }
 0x176   : > { %6378 = vmatmul.mubr.msk.f32.gmra.mrb[52].mxu0 %vm758_vm1, %v1106_v1  ;;  %v1961_v1 = vmul.f32 %v9680_v53, %v8555_v56 }
 0x177   : > { %6380 = vmatprep.mubr.msk.f32.mxu0 %vm758_vm1, %v1107_v50  ;;  %v9681_v50 = vld [vmem:[#allocation10_spill] sm:$0xff] }
 0x178   : > { %6528 = vmatmul.mubr.msk.f32.gmra.mrb[20].mxu1 %vm758_vm1, %v9661_v54  ;;  %v1962_v54 = vmul.f32 %v9681_v50, %v8560_v12 }
 0x179   : > { %6530 = vmatprep.mubr.msk.f32.mxu1 %vm758_vm1, %v9662_v35  ;;  %v3186_v35 = vmul.f32 %v9677_v17, %v8543_v23 }
 0x17a   : > { %6381 = vmatmul.mubr.msk.f32.gmra.mrb[54].mxu0 %vm758_vm1, %v1108_v7  ;;  %v8583_v7 = vld [vmem:[#allocation2 + $0x42] sm:$0xff] }
 0x17b   : > { %6383 = vmatprep.mubr.msk.f32.mxu0 %vm758_vm1, %v1109_v26  ;;  %v1963_v26 = vmul.f32 %v9682_v40, %v8577_v33  ;;  %v3190_v48 = vmul.f32 %v9681_v50, %v8583_v7 }
 0x17c   : > { %6531 = vmatmul.mubr.msk.f32.gmra.mrb[22].mxu1 %vm758_vm1, %v9666_v52  ;;  %v3187_v52 = vmul.f32 %v9678_v19, %v8555_v56 }
 0x17d   : > { %6533 = vmatprep.mubr.msk.f32.mxu1 %vm758_vm1, %v9667_v21  ;;  %v9683_v21 = vld [vmem:[#allocation12_spill] sm:$0xff] }
 0x17e   : > { %6384 = vmatmul.mubr.msk.f32.gmra.mrb[56].mxu0 %vm758_vm1, %v1110_v9  ;;  %v1964_v0 = vmul.f32 %v9683_v21, %v8583_v7  ;;  %v3188_v9 = vmul.f32 %v9679_v46, %v8560_v12 }
 0x17f   : > { %6386 = vmatprep.mubr.msk.f32.mxu0 %vm758_vm1, %v1111_v10  ;;  %v9684_v10 = vld [vmem:[#allocation11_spill] sm:$0xff] }
 0x180   : > { %6534 = vmatmul.mubr.msk.f32.gmra.mrb[24].mxu1 %vm758_vm1, %v9670_v16  ;;  %v1965_v16 = vmul.f32 %v9684_v10, %v8596_v57 }
 0x181   : > { %6536 = vmatprep.mubr.msk.f32.mxu1 %vm758_vm1, %v9671_v24 }
 0x182   : > { %6387 = vmatmul.mubr.msk.f32.gmra.mrb[58].mxu0 %vm758_vm1, %v1112_v51  ;;  %v9685_v51 = vld [vmem:[#allocation14_spill] sm:$0xff] }
 0x183   : > { %6389 = vmatprep.mubr.msk.f32.mxu0 %vm758_vm1, %v1113_v37 }
 0x184   : > { %6537 = vmatmul.mubr.msk.f32.gmra.mrb[26].mxu1 %vm758_vm1, %v9673_v25 }
 0x185   : > { %6539 = vmatprep.mubr.msk.f32.mxu1 %vm758_vm1, %v9674_v34 }
 0x186   : > { %6390 = vmatmul.mubr.msk.f32.gmra.mrb[60].mxu0 %vm758_vm1, %v1114_v3  ;;  %v8613_v3 = vld [vmem:[#allocation2 + $0x5a] sm:$0xff] }
 0x187   : > { %6392 = vmatprep.mubr.msk.f32.mxu0 %vm758_vm1, %v1115_v11  ;;  %v8617_v11 = vld [vmem:[#allocation2 + $0x62] sm:$0xff] }
 0x188   : > { %6540 = vmatmul.mubr.msk.f32.gmra.mrb[28].mxu1 %vm758_vm1, %v8281_v60 }
 0x189   : > { %6542 = vmatprep.mubr.msk.f32.mxu1 %vm758_vm1, %v8304_v59 }
 0x18a   : > { %6393 = vmatmul.mubr.msk.f32.gmra.mrb[62].mxu0 %vm758_vm1, %v1116_v30 }
 0x18b   : > { %6399 = vmatprep.mubr.msk.f32.mxu0 %vm758_vm1, %v1956_v15  ;;  %v9686_v15 = vld [vmem:[#allocation13_spill] sm:$0xff] }
 0x18c   : > { %6543 = vmatmul.mubr.msk.f32.gmra.mrb[30].mxu1 %vm758_vm1, %v8327_v31  ;;  %v1967_v30 = vmul.f32 %v9686_v15, %v8613_v3 }
 0x18d   : > { %6545 = vmatprep.mubr.msk.f32.mxu1 %vm758_vm1, %v8352_v8 }
 0x18e   : > { %6400 = vmatmul.mubr.msk.f32.vlgmr.msra.gmra.mrb[32].mxu0 %vm758_vm1, %v1957_v18  ;;  %v1968_v18 = vmul.f32 %v9687_v29, %v8617_v11 }
 0x18f   : > { %6402 = vmatprep.mubr.msk.f32.mxu0 %vm758_vm1, %v1958_v28  ;;  %6790 = vmatpush3.bf16.msra.mxu0 %v8355_v44  ;;  %v5740_v44 = vld [vmem:[%s9429_s4 + $0x70] sm:$0xff] }
 0x190   : > { %6546 = vmatmul.mubr.msk.f32.gmra.mrb[32].mxu1 %vm758_vm1, %v8375_v5  ;;  %v8579_v47 = vpack.c.bf16 %v5741_v58, %v5740_v44  ;;  %v3193_v44 = vmul.f32 %v9684_v10, %v8613_v3  ;;  %v9689_v58 = vld [vmem:[#allocation18_spill] sm:$0xff] }
 0x191   : > { %6548 = vmatprep.mubr.msk.f32.mxu1 %vm758_vm1, %v8537_v13 }
 0x192   : > { %6403 = vmatmul.mubr.msk.f32.gmra.mrb[34].mxu0 %vm758_vm1, %v1959_v2  ;;  %v8633_v2 = vld [vmem:[#allocation2 + $0x72] sm:$0xff] }
 0x193   : > { %6405 = vmatprep.mubr.msk.f32.mxu0 %vm758_vm1, %v1960_v4  ;;  %v9688_v4 = vld [vmem:[#allocation15_spill] sm:$0xff] }
 0x194   : > { %6549 = vmatmul.mubr.msk.f32.gmra.mrb[34].mxu1 %vm758_vm1, %v8550_v36 }
 0x195   : > { %6555 = vmatprep.mubr.msk.f32.mxu1 %vm758_vm1, %v3184_v55  ;;  %v1969_v55 = vmul.f32 %v9688_v4, %v8629_v43 }
 0x196   : > { %6406 = vmatmul.mubr.msk.f32.gmra.mrb[36].mxu0 %vm758_vm1, %v1961_v1  ;;  %v1970_v1 = vmul.f32 %v9689_v58, %v8633_v2 }
 0x197   : > { %6408 = vmatprep.mubr.msk.f32.mxu0 %vm758_vm1, %v1962_v54  ;;  %v8645_v54 = vld [vmem:[#allocation2 + $0x7a] sm:$0xff] }
 0x198   : > { %6556 = vmatmul.mubr.msk.f32.vlgmr.msra.gmra.mrb[4].mxu1 %vm758_vm1, %v3185_v49  ;;  %v3194_v49 = vmul.f32 %v9685_v51, %v8617_v11 }
 0x199   : > { %6558 = vmatprep.mubr.msk.f32.mxu1 %vm758_vm1, %v3186_v35  ;;  %6802 = vmatpush3.bf16.msra.mxu1 %v8394_v39  ;;  %v8601_v39 = vld [vmem:[#allocation2 + $0x52] sm:$0xff]  ;;  %v8649_v35 = vld [vmem:[#allocation2 + $0x82] sm:$0xff] }
 0x19a   : > { %6804 = vmatprep.subr.bf16.mxu1 %v8579_v47  ;;  %6409 = vmatmul.mubr.msk.f32.gmra.mrb[38].mxu0 %vm758_vm1, %v1963_v26  ;;  %v1966_v37 = vmul.f32 %v9685_v51, %v8601_v39  ;;  %v3192_v28 = vmul.f32 %v9683_v21, %v8601_v39  ;;  %v9690_v26 = vld [vmem:[#allocation17_spill] sm:$0xff] }
 0x19b   : > { %6411 = vmatprep.mubr.msk.f32.mxu0 %vm758_vm1, %v1964_v0  ;;  %v3195_v0 = vmul.f32 %v9686_v15, %v8629_v43 }
 0x19c   : > { %6559 = vmatmul.mubr.msk.f32.gmra.mrb[6].mxu1 %vm758_vm1, %v3187_v52  ;;  %v1971_v52 = vmul.f32 %v9690_v26, %v8645_v54 }
 0x19d   : > { %6561 = vmatprep.mubr.msk.f32.mxu1 %vm758_vm1, %v3188_v9  ;;  %v9691_v9 = vld [vmem:[#allocation20_spill] sm:$0xff] }
 0x19e   : > { %6412 = vmatmul.mubr.msk.f32.gmra.mrb[40].mxu0 %vm758_vm1, %v1965_v16  ;;  %v1972_v16 = vmul.f32 %v9691_v9, %v8649_v35 }
 0x19f   : > { %6414 = vmatprep.mubr.msk.f32.mxu0 %vm758_vm1, %v1966_v37  ;;  %v8661_v37 = vld [vmem:[#allocation2 + $0x8a] sm:$0xff] }
 0x1a0   : > { %6562 = vmatmul.mubr.msk.f32.gmra.mrb[8].mxu1 %vm758_vm1, %v3189_v20  ;;  %v3196_v20 = vmul.f32 %v9687_v29, %v8633_v2  ;;  %9692 = vst [vmem:[#allocation58_spill] sm:$0xff] %v8661_v37 }
 0x1a1   : > { %6564 = vmatprep.mubr.msk.f32.mxu1 %vm758_vm1, %v3190_v48  ;;  %v8665_v48 = vld [vmem:[#allocation2 + $0x92] sm:$0xff] }
 0x1a2   : > { %6415 = vmatmul.mubr.msk.f32.gmra.mrb[42].mxu0 %vm758_vm1, %v1967_v30  ;;  %9693 = vst [vmem:[#allocation59_spill] sm:$0xff] %v8665_v48  ;;  %v9694_v30 = vld [vmem:[#allocation19_spill] sm:$0xff] }
 0x1a3   : > { %6417 = vmatprep.mubr.msk.f32.mxu0 %vm758_vm1, %v1968_v18  ;;  %v3197_v18 = vmul.f32 %v9688_v4, %v8645_v54  ;;  %v8693_v4 = vld [vmem:[#allocation2 + $0xaa] sm:$0xff] }
 0x1a4   : > { %6565 = vmatmul.mubr.msk.f32.gmra.mrb[10].mxu1 %vm758_vm1, %v3191_v38  ;;  %v1973_v38 = vmul.f32 %v9694_v30, %v8661_v37  ;;  %9700 = vst [vmem:[#allocation65_spill] sm:$0xff] %v8693_v4 }
 0x1a5   : > { %6567 = vmatprep.mubr.msk.f32.mxu1 %vm758_vm1, %v3192_v28  ;;  %v9695_v28 = vld [vmem:[#allocation22_spill] sm:$0xff] }
 0x1a6   : > { %6418 = vmatmul.mubr.msk.f32.gmra.mrb[44].mxu0 %vm758_vm1, %v1969_v55  ;;  %v1974_v55 = vmul.f32 %v9695_v28, %v8665_v48 }
 0x1a7   : > { %6420 = vmatprep.mubr.msk.f32.mxu0 %vm758_vm1, %v1970_v1  ;;  %v8677_v1 = vld [vmem:[#allocation2 + $0x9a] sm:$0xff] }
 0x1a8   : > { %6568 = vmatmul.mubr.msk.f32.gmra.mrb[12].mxu1 %vm758_vm1, %v3193_v44  ;;  %v3198_v44 = vmul.f32 %v9689_v58, %v8649_v35  ;;  %9696 = vst [vmem:[#allocation53_spill] sm:$0xff] %v8677_v1 }
 0x1a9   : > { %6570 = vmatprep.mubr.msk.f32.mxu1 %vm758_vm1, %v3194_v49  ;;  %v8681_v49 = vld [vmem:[#allocation2 + $0xa2] sm:$0xff] }
 0x1aa   : > { %6421 = vmatmul.mubr.msk.f32.gmra.mrb[46].mxu0 %vm758_vm1, %v1971_v52  ;;  %9697 = vst [vmem:[#allocation67_spill] sm:$0xff] %v8681_v49  ;;  %v9698_v52 = vld [vmem:[#allocation21_spill] sm:$0xff] }
 0x1ab   : > { %6423 = vmatprep.mubr.msk.f32.mxu0 %vm758_vm1, %v1972_v16  ;;  %v3199_v16 = vmul.f32 %v9690_v26, %v8661_v37  ;;  %v3201_v26 = vmul.f32 %v9694_v30, %v8677_v1  ;;  %v8709_v37 = vld [vmem:[#allocation2 + $0xba] sm:$0xff]  ;;  %v3203_v30 = vmul.f32 %v9698_v52, %v8693_v4 }
 0x1ac   : > { %6571 = vmatmul.mubr.msk.f32.gmra.mrb[14].mxu1 %vm758_vm1, %v3195_v0  ;;  %v1975_v0 = vmul.f32 %v9698_v52, %v8677_v1  ;;  %9704 = vst [vmem:[#allocation64_spill] sm:$0xff] %v8709_v37  ;;  %v8725_v1 = vld [vmem:[#allocation2 + $0xca] sm:$0xff] }
 0x1ad   : > { %6573 = vmatprep.mubr.msk.f32.mxu1 %vm758_vm1, %v3196_v20  ;;  %v9699_v20 = vld [vmem:[#allocation24_spill] sm:$0xff]  ;;  %9708 = vst [vmem:[#allocation66_spill] sm:$0xff] %v8725_v1 }
 0x1ae   : > { %6424 = vmatmul.mubr.msk.f32.gmra.mrb[48].mxu0 %vm758_vm1, %v1973_v38  ;;  %v1976_v58 = vmul.f32 %v9699_v20, %v8681_v49  ;;  %v3200_v38 = vmul.f32 %v9691_v9, %v8665_v48  ;;  %v9703_v9 = vld [vmem:[#allocation26_spill] sm:$0xff] }
 0x1af   : > { %6426 = vmatprep.mubr.msk.f32.mxu0 %vm758_vm1, %v1974_v55  ;;  %v9702_v55 = vld [vmem:[#allocation23_spill] sm:$0xff] }
 0x1b0   : > { %6574 = vmatmul.mubr.msk.f32.gmra.mrb[16].mxu1 %vm758_vm1, %v3197_v18  ;;  %v8697_v18 = vld [vmem:[#allocation2 + $0xb2] sm:$0xff]  ;;  %v3205_v52 = vmul.f32 %v9702_v55, %v8709_v37 }
 0x1b1   : > { %6576 = vmatprep.mubr.msk.f32.mxu1 %vm758_vm1, %v3198_v44  ;;  %9701 = vst [vmem:[#allocation75_spill] sm:$0xff] %v8697_v18  ;;  %v1977_v44 = vmul.f32 %v9702_v55, %v8693_v4  ;;  %v1978_v48 = vmul.f32 %v9703_v9, %v8697_v18  ;;  %v8741_v4 = vld [vmem:[#allocation2 + $0xda] sm:$0xff] }
 0x1b2   : > { %6427 = vmatmul.mubr.msk.f32.gmra.mrb[50].mxu0 %vm758_vm1, %v1975_v0  ;;  %v3202_v0 = vmul.f32 %v9695_v28, %v8681_v49  ;;  %v9707_v28 = vld [vmem:[#allocation28_spill] sm:$0xff] }
 0x1b3   : > { %6429 = vmatprep.mubr.msk.f32.mxu0 %vm758_vm1, %v1976_v58  ;;  %v8713_v58 = vld [vmem:[#allocation2 + $0xc2] sm:$0xff] }
 0x1b4   : > { %6577 = vmatmul.mubr.msk.f32.gmra.mrb[18].mxu1 %vm758_vm1, %v3199_v16  ;;  %9705 = vst [vmem:[#allocation68_spill] sm:$0xff] %v8713_v58  ;;  %v9706_v16 = vld [vmem:[#allocation25_spill] sm:$0xff]  ;;  %v1980_v49 = vmul.f32 %v9707_v28, %v8713_v58 }
 0x1b5   : > { %6579 = vmatprep.mubr.msk.f32.mxu1 %vm758_vm1, %v3200_v38  ;;  %v1979_v38 = vmul.f32 %v9706_v16, %v8709_v37  ;;  %v3207_v55 = vmul.f32 %v9706_v16, %v8725_v1  ;;  %v8757_v37 = vld [vmem:[#allocation2 + $0xea] sm:$0xff] }
 0x1b6   : > { %6430 = vmatmul.mubr.msk.f32.gmra.mrb[52].mxu0 %vm758_vm1, %v1977_v44  ;;  %v3204_v44 = vmul.f32 %v9699_v20, %v8697_v18  ;;  %v9711_v20 = vld [vmem:[#allocation30_spill] sm:$0xff] }
 0x1b7   : > { %6432 = vmatprep.mubr.msk.f32.mxu0 %vm758_vm1, %v1978_v48  ;;  %v9710_v48 = vld [vmem:[#allocation27_spill] sm:$0xff] }
 0x1b8   : > { %6580 = vmatmul.mubr.msk.f32.gmra.mrb[20].mxu1 %vm758_vm1, %v3201_v26  ;;  %v8729_v26 = vld [vmem:[#allocation2 + $0xd2] sm:$0xff]  ;;  %v3209_v16 = vmul.f32 %v9710_v48, %v8741_v4 }
 0x1b9   : > { %6582 = vmatprep.mubr.msk.f32.mxu1 %vm758_vm1, %v3202_v0  ;;  %9709 = vst [vmem:[#allocation76_spill] sm:$0xff] %v8729_v26  ;;  %v1981_v0 = vmul.f32 %v9710_v48, %v8725_v1  ;;  %v1982_v18 = vmul.f32 %v9711_v20, %v8729_v26  ;;  %v8773_v1 = vld [vmem:[#allocation2 + $0xfa] sm:$0xff] }
 0x1ba   : > { %6433 = vmatmul.mubr.msk.f32.gmra.mrb[54].mxu0 %vm758_vm1, %v1979_v38  ;;  %v3206_v38 = vmul.f32 %v9703_v9, %v8713_v58  ;;  %v9713_v9 = vld [vmem:[#allocation32_spill] sm:$0xff] }
 0x1bb   : > { %6435 = vmatprep.mubr.msk.f32.mxu0 %vm758_vm1, %v1980_v49  ;;  %v9712_v49 = vld [vmem:[#allocation29_spill] sm:$0xff] }
 0x1bc   : > { %6583 = vmatmul.mubr.msk.f32.gmra.mrb[22].mxu1 %vm758_vm1, %v3203_v30  ;;  %v8745_v30 = vld [vmem:[#allocation2 + $0xe2] sm:$0xff] }
 0x1bd   : > { %6585 = vmatprep.mubr.msk.f32.mxu1 %vm758_vm1, %v3204_v44  ;;  %v1983_v44 = vmul.f32 %v9712_v49, %v8741_v4  ;;  %v1984_v58 = vmul.f32 %v9713_v9, %v8745_v30 }
 0x1be   : > { %6436 = vmatmul.mubr.msk.f32.gmra.mrb[56].mxu0 %vm758_vm1, %v1981_v0  ;;  %v3208_v0 = vmul.f32 %v9707_v28, %v8729_v26  ;;  %v9715_v28 = vld [vmem:[#allocation34_spill] sm:$0xff] }
 0x1bf   : > { %6438 = vmatprep.mubr.msk.f32.mxu0 %vm758_vm1, %v1982_v18  ;;  %v9714_v18 = vld [vmem:[#allocation31_spill] sm:$0xff] }
 0x1c0   : > { %6586 = vmatmul.mubr.msk.f32.gmra.mrb[24].mxu1 %vm758_vm1, %v3205_v52  ;;  %v8761_v52 = vld [vmem:[#allocation2 + $0xf2] sm:$0xff] }
 0x1c1   : > { %6588 = vmatprep.mubr.msk.f32.mxu1 %vm758_vm1, %v3206_v38  ;;  %v1985_v38 = vmul.f32 %v9714_v18, %v8757_v37  ;;  %v1986_v26 = vmul.f32 %v9715_v28, %v8761_v52  ;;  %v3212_v48 = vmul.f32 %v9713_v9, %v8761_v52  ;;  %v9718_v9 = vld [vmem:[#allocation35_spill] sm:$0xff] }
 0x1c2   : > { %6439 = vmatmul.mubr.msk.f32.gmra.mrb[58].mxu0 %vm758_vm1, %v1983_v44  ;;  %v3210_v44 = vmul.f32 %v9711_v20, %v8745_v30 }
 0x1c3   : > { %6441 = vmatprep.mubr.msk.f32.mxu0 %vm758_vm1, %v1984_v58 }
 0x1c4   : > { %6589 = vmatmul.mubr.msk.f32.gmra.mrb[26].mxu1 %vm758_vm1, %v3207_v55  ;;  %v9716_v55 = vld [vmem:[#allocation33_spill] sm:$0xff] }
 0x1c5   : > { %6591 = vmatprep.mubr.msk.f32.mxu1 %vm758_vm1, %v3208_v0  ;;  %v1987_v58 = vmul.f32 %v9716_v55, %v8773_v1  ;;  %v3211_v0 = vmul.f32 %v9712_v49, %v8757_v37  ;;  %v8796_v49 = vld [vmem:[#allocation2 + $0x10a] sm:$0xff] }
 0x1c6   : > { %6442 = vmatmul.mubr.msk.f32.gmra.mrb[60].mxu0 %vm758_vm1, %v1985_v38  ;;  %v8787_v38 = vld [vmem:[#allocation2 + $0x102] sm:$0xff] }
 0x1c7   : > { %6444 = vmatprep.mubr.msk.f32.mxu0 %vm758_vm1, %v1986_v26  ;;  %v3213_v26 = vmul.f32 %v9714_v18, %v8773_v1 }
 0x1c8   : > { %6592 = vmatmul.mubr.msk.f32.gmra.mrb[28].mxu1 %vm758_vm1, %v3209_v16  ;;  %v9717_v16 = vld [vmem:[#allocation36_spill] sm:$0xff] }
 0x1c9   : > { %6594 = vmatprep.mubr.msk.f32.mxu1 %vm758_vm1, %v3210_v44  ;;  %v3214_v44 = vmul.f32 %v8787_v38, %v9715_v28  ;;  %v9726_v28 = vld [vmem:[#allocation41_spill] sm:$0xff] }
 0x1ca   : > { %6445 = vmatmul.mubr.msk.f32.gmra.mrb[62].mxu0 %vm758_vm1, %v1987_v58  ;;  %v9719_v58 = vld [vmem:[#allocation39_spill] sm:$0xff] }
 0x1cb   : > { %6451 = vmatprep.mubr.msk.f32.mxu0 %vm758_vm1, %v9717_v16  ;;  %v5774_v16 = vld [vmem:[%s9429_s4 + $0x80] sm:$0xff] }
 0x1cc   : > { %6595 = vmatmul.mubr.msk.f32.gmra.mrb[30].mxu1 %vm758_vm1, %v3211_v0  ;;  %v9720_v0 = vld [vmem:[#allocation40_spill] sm:$0xff] }
 0x1cd   : > { %6597 = vmatprep.mubr.msk.f32.mxu1 %vm758_vm1, %v3212_v48  ;;  %v3215_v48 = vmul.f32 %v8796_v49, %v9716_v55  ;;  %v9723_v55 = vld [vmem:[#allocation44_spill] sm:$0xff] }
 0x1ce   : > { %6452 = vmatmul.mubr.msk.f32.vlgmr.msra.gmra.mrb[32].mxu0 %vm758_vm1, %v9718_v9  ;;  %v5775_v9 = vld [vmem:[%s9429_s4 + $0x88] sm:$0xff] }
 0x1cf   : > { %6454 = vmatprep.mubr.msk.f32.mxu0 %vm758_vm1, %v9719_v58  ;;  %v8819_v58 = vpack.c.bf16 %v5775_v9, %v5774_v16  ;;  %v9728_v16 = vld [vmem:[#allocation42_spill] sm:$0xff]  ;;  %v9730_v9 = vld [vmem:[#allocation45_spill] sm:$0xff] }
 0x1d0   : > { %6598 = vmatmul.mubr.msk.f32.gmra.mrb[32].mxu1 %vm758_vm1, %v3213_v26  ;;  %v9721_v26 = vld [vmem:[#allocation43_spill] sm:$0xff] }
 0x1d1   : > { %6600 = vmatprep.mubr.msk.f32.mxu1 %vm758_vm1, %v3214_v44  ;;  %v9722_v44 = vld [vmem:[#allocation38_spill] sm:$0xff] }
 0x1d2   : > { %6455 = vmatmul.mubr.msk.f32.gmra.mrb[34].mxu0 %vm758_vm1, %v9720_v0  ;;  %v9725_v0 = vld [vmem:[#allocation47_spill] sm:$0xff] }
 0x1d3   : > { %6457 = vmatprep.mubr.msk.f32.mxu0 %vm758_vm1, %v9721_v26  ;;  %v9727_v26 = vld [vmem:[#allocation48_spill] sm:$0xff] }
 0x1d4   : > { %6601 = vmatmul.mubr.msk.f32.gmra.mrb[34].mxu1 %vm758_vm1, %v3215_v48  ;;  %v9724_v48 = vld [vmem:[#allocation37_spill] sm:$0xff] }
 0x1d5   : > { %6607 = vmatprep.mubr.msk.f32.mxu1 %vm758_vm1, %v9722_v44  ;;  %v9731_v44 = vld [vmem:[#allocation52_spill] sm:$0xff] }
 0x1d6   : > { %6458 = vmatmul.mubr.msk.f32.gmra.mrb[36].mxu0 %vm758_vm1, %v9723_v55  ;;  %v9729_v55 = vld [vmem:[#allocation51_spill] sm:$0xff] }
 0x1d7   : > { %6460 = vmatprep.mubr.msk.f32.mxu0 %vm758_vm1, %v9725_v0  ;;  %v9735_v0 = vld [vmem:[#allocation57_spill] sm:$0xff] }
 0x1d8   : > { %6608 = vmatmul.mubr.msk.f32.vlgmr.msra.gmra.mrb[4].mxu1 %vm758_vm1, %v9724_v48  ;;  %v9734_v48 = vld [vmem:[#allocation49_spill] sm:$0xff] }
 0x1d9   : > { %6610 = vmatprep.mubr.msk.f32.mxu1 %vm758_vm1, %v9726_v28  ;;  %6806 = vmatpush3.bf16.msra.mxu1 %v8579_v47  ;;  %v9732_v28 = vld [vmem:[#allocation46_spill] sm:$0xff]  ;;  %v9733_v47 = vld [vmem:[#allocation56_spill] sm:$0xff] }
 0x1da   : > { %6808 = vmatprep.subr.bf16.mxu1 %v8819_v58  ;;  %6461 = vmatmul.mubr.msk.f32.gmra.mrb[38].mxu0 %vm758_vm1, %v9727_v26  ;;  %v9736_v26 = vld [vmem:[#allocation50_spill] sm:$0xff] }
 0x1db   : > { %6463 = vmatprep.mubr.msk.f32.mxu0 %vm758_vm1, %v9729_v55  ;;  %v9738_v55 = vld [vmem:[#allocation54_spill] sm:$0xff] }
 0x1dc   : > { %6611 = vmatmul.mubr.msk.f32.gmra.mrb[6].mxu1 %vm758_vm1, %v9728_v16  ;;  %v9737_v16 = vld [vmem:[#allocation62_spill] sm:$0xff] }
 0x1dd   : > { %6613 = vmatprep.mubr.msk.f32.mxu1 %vm758_vm1, %v9730_v9  ;;  %v9739_v9 = vld [vmem:[#allocation63_spill] sm:$0xff] }
 0x1de   : > { %6464 = vmatmul.mubr.msk.f32.gmra.mrb[40].mxu0 %vm758_vm1, %v9731_v44  ;;  %v9740_v44 = vld [vmem:[#allocation55_spill] sm:$0xff] }
 0x1df   : > { %6466 = vmatprep.mubr.msk.f32.mxu0 %vm758_vm1, %v9733_v47  ;;  %v9742_v47 = vld [vmem:[#allocation60_spill] sm:$0xff] }
 0x1e0   : > { %6614 = vmatmul.mubr.msk.f32.gmra.mrb[8].mxu1 %vm758_vm1, %v9732_v28  ;;  %v9741_v28 = vld [vmem:[#allocation71_spill] sm:$0xff] }
 0x1e1   : > { %6616 = vmatprep.mubr.msk.f32.mxu1 %vm758_vm1, %v9734_v48  ;;  %v9743_v48 = vld [vmem:[#allocation72_spill] sm:$0xff] }
 0x1e2   : > { %6467 = vmatmul.mubr.msk.f32.gmra.mrb[42].mxu0 %vm758_vm1, %v9735_v0  ;;  %v9744_v0 = vld [vmem:[#allocation61_spill] sm:$0xff] }
 0x1e3   : > { %6469 = vmatprep.mubr.msk.f32.mxu0 %vm758_vm1, %v9737_v16  ;;  %v9746_v16 = vld [vmem:[#allocation69_spill] sm:$0xff] }
 0x1e4   : > { %6617 = vmatmul.mubr.msk.f32.gmra.mrb[10].mxu1 %vm758_vm1, %v9736_v26  ;;  %v9745_v26 = vld [vmem:[#allocation81_spill] sm:$0xff] }
 0x1e5   : > { %6619 = vmatprep.mubr.msk.f32.mxu1 %vm758_vm1, %v9738_v55  ;;  %v9747_v55 = vld [vmem:[#allocation82_spill] sm:$0xff] }
 0x1e6   : > { %6470 = vmatmul.mubr.msk.f32.gmra.mrb[44].mxu0 %vm758_vm1, %v9739_v9  ;;  %v9748_v9 = vld [vmem:[#allocation70_spill] sm:$0xff] }
 0x1e7   : > { %6472 = vmatprep.mubr.msk.f32.mxu0 %vm758_vm1, %v9741_v28  ;;  %v9750_v28 = vld [vmem:[#allocation79_spill] sm:$0xff] }
 0x1e8   : > { %6620 = vmatmul.mubr.msk.f32.gmra.mrb[12].mxu1 %vm758_vm1, %v9740_v44  ;;  %v9749_v44 = vld [vmem:[#allocation89_spill] sm:$0xff] }
 0x1e9   : > { %6622 = vmatprep.mubr.msk.f32.mxu1 %vm758_vm1, %v9742_v47  ;;  %v9751_v47 = vld [vmem:[#allocation90_spill] sm:$0xff] }
 0x1ea   : > { %6473 = vmatmul.mubr.msk.f32.gmra.mrb[46].mxu0 %vm758_vm1, %v9743_v48  ;;  %v9752_v48 = vld [vmem:[#allocation80_spill] sm:$0xff] }
 0x1eb   : > { %6475 = vmatprep.mubr.msk.f32.mxu0 %vm758_vm1, %v9745_v26  ;;  %v9754_v26 = vld [vmem:[#allocation87_spill] sm:$0xff] }
 0x1ec   : > { %6623 = vmatmul.mubr.msk.f32.gmra.mrb[14].mxu1 %vm758_vm1, %v9744_v0  ;;  %v9753_v0 = vld [vmem:[#allocation98_spill] sm:$0xff] }
 0x1ed   : > { %6625 = vmatprep.mubr.msk.f32.mxu1 %vm758_vm1, %v9746_v16  ;;  %v9755_v16 = vld [vmem:[#allocation99_spill] sm:$0xff] }
 0x1ee   : > { %6476 = vmatmul.mubr.msk.f32.gmra.mrb[48].mxu0 %vm758_vm1, %v9747_v55  ;;  %v9756_v55 = vld [vmem:[#allocation88_spill] sm:$0xff] }
 0x1ef   : > { %6478 = vmatprep.mubr.msk.f32.mxu0 %vm758_vm1, %v9749_v44  ;;  %v9758_v44 = vld [vmem:[#allocation96_spill] sm:$0xff] }
 0x1f0   : > { %6626 = vmatmul.mubr.msk.f32.gmra.mrb[16].mxu1 %vm758_vm1, %v9748_v9  ;;  %v9757_v9 = vld [vmem:[#allocation106_spill] sm:$0xff] }
 0x1f1   : > { %6628 = vmatprep.mubr.msk.f32.mxu1 %vm758_vm1, %v9750_v28  ;;  %v9759_v28 = vld [vmem:[#allocation107_spill] sm:$0xff] }
 0x1f2   : > { %6479 = vmatmul.mubr.msk.f32.gmra.mrb[50].mxu0 %vm758_vm1, %v9751_v47  ;;  %v9760_v47 = vld [vmem:[#allocation97_spill] sm:$0xff] }
 0x1f3   : > { %6481 = vmatprep.mubr.msk.f32.mxu0 %vm758_vm1, %v9753_v0  ;;  %v9762_v0 = vld [vmem:[#allocation104_spill] sm:$0xff] }
 0x1f4   : > { %6629 = vmatmul.mubr.msk.f32.gmra.mrb[18].mxu1 %vm758_vm1, %v9752_v48  ;;  %v9761_v48 = vld [vmem:[#allocation114_spill] sm:$0xff] }
 0x1f5   : > { %6631 = vmatprep.mubr.msk.f32.mxu1 %vm758_vm1, %v9754_v26  ;;  %v9763_v26 = vld [vmem:[#allocation115_spill] sm:$0xff] }
 0x1f6   : > { %6482 = vmatmul.mubr.msk.f32.gmra.mrb[52].mxu0 %vm758_vm1, %v9755_v16  ;;  %v9764_v16 = vld [vmem:[#allocation105_spill] sm:$0xff] }
 0x1f7   : > { %6484 = vmatprep.mubr.msk.f32.mxu0 %vm758_vm1, %v9757_v9  ;;  %v3600_v9 = vld [vmem:[#allocation2 + $0x100] sm:$0xff] }
 0x1f8   : > { %6632 = vmatmul.mubr.msk.f32.gmra.mrb[20].mxu1 %vm758_vm1, %v9756_v55  ;;  %v9765_v55 = vld [vmem:[#allocation112_spill] sm:$0xff] }
 0x1f9   : > { %6634 = vmatprep.mubr.msk.f32.mxu1 %vm758_vm1, %v9758_v44  ;;  %v9766_v44 = vld [vmem:[#allocation118_spill] sm:$0xff] }
 0x1fa   : > { %6485 = vmatmul.mubr.msk.f32.gmra.mrb[54].mxu0 %vm758_vm1, %v9759_v28  ;;  %v9767_v28 = vld [vmem:[#allocation113_spill] sm:$0xff] }
 0x1fb   : > { %6487 = vmatprep.mubr.msk.f32.mxu0 %vm758_vm1, %v9761_v48  ;;  %v3601_v48 = vld [vmem:[#allocation2 + $0x108] sm:$0xff] }
 0x1fc   : > { %6635 = vmatmul.mubr.msk.f32.gmra.mrb[22].mxu1 %vm758_vm1, %v9760_v47  ;;  %v9768_v47 = vld [vmem:[#allocation116_spill] sm:$0xff] }
 0x1fd   : > { %6637 = vmatprep.mubr.msk.f32.mxu1 %vm758_vm1, %v9762_v0  ;;  %v2406_v0 = vmul.f32 %v3600_v9, %v8507_v27 }
 0x1fe   : > { %6488 = vmatmul.mubr.msk.f32.gmra.mrb[56].mxu0 %vm758_vm1, %v9763_v26  ;;  %v2407_v26 = vmul.f32 %v3601_v48, %v8519_v45 }
 0x1ff   : > { %6490 = vmatprep.mubr.msk.f32.mxu0 %vm758_vm1, %v8316_v61  ;;  %v9769_v61 = vld [vmem:[#allocation117_spill] sm:$0xff] }
 0x200   : > { %6638 = vmatmul.mubr.msk.f32.gmra.mrb[24].mxu1 %vm758_vm1, %v9764_v16  ;;  %v3602_v16 = vld [vmem:[#allocation2 + $0x110] sm:$0xff] }
 0x201   : > { %6640 = vmatprep.mubr.msk.f32.mxu1 %vm758_vm1, %v9765_v55  ;;  %v3634_v55 = vmul.f32 %v3602_v16, %v8507_v27  ;;  %v3996_v27 = vld [vmem:[#allocation2 + $0x41] sm:$0xff]  ;;  %v4002_v16 = vld [vmem:[#allocation2 + $0x71] sm:$0xff] }
 0x202   : > { %6491 = vmatmul.mubr.msk.f32.gmra.mrb[58].mxu0 %vm758_vm1, %v9766_v44  ;;  %v3603_v44 = vld [vmem:[#allocation2 + $0x118] sm:$0xff] }
 0x203   : > { %6493 = vmatprep.mubr.msk.f32.mxu0 %vm758_vm1, %v8367_v6  ;;  %v3632_v6 = vmul.f32 %v3600_v9, %v8348_v22  ;;  %v3992_v22 = vld [vmem:[#allocation2 + $0x21] sm:$0xff]  ;;  %v3993_v9 = vld [vmem:[#allocation2 + $0x29] sm:$0xff] }
 0x204   : > { %6641 = vmatmul.mubr.msk.f32.gmra.mrb[26].mxu1 %vm758_vm1, %v9767_v28  ;;  %v3998_v28 = vld [vmem:[#allocation2 + $0x51] sm:$0xff] }
 0x205   : > { %6643 = vmatprep.mubr.msk.f32.mxu1 %vm758_vm1, %v9768_v47 }
 0x206   : > { %6494 = vmatmul.mubr.msk.f32.gmra.mrb[60].mxu0 %vm758_vm1, %v8371_v41  ;;  %v3633_v41 = vmul.f32 %v3601_v48, %v8350_v32  ;;  %v3995_v32 = vld [vmem:[#allocation2 + $0x39] sm:$0xff] }
 0x207   : > { %6496 = vmatprep.mubr.msk.f32.mxu0 %vm758_vm1, %v2406_v0  ;;  %v3999_v48 = vld [vmem:[#allocation2 + $0x59] sm:$0xff] }
 0x208   : > { %6644 = vmatmul.mubr.msk.f32.gmra.mrb[28].mxu1 %vm758_vm1, %v9769_v61 }
 0x209   : > { %6646 = vmatprep.mubr.msk.f32.mxu1 %vm758_vm1, %v8359_v62  ;;  %v3635_v62 = vmul.f32 %v3603_v44, %v8519_v45  ;;  %v3997_v45 = vld [vmem:[#allocation2 + $0x49] sm:$0xff] }
 0x20a   : > { %6497 = vmatmul.mubr.msk.f32.gmra.mrb[62].mxu0 %vm758_vm1, %v2407_v26  ;;  %v4001_v26 = vld [vmem:[#allocation2 + $0x69] sm:$0xff] }
 0x20b   : > { %v4005_v44 = vld [vmem:[#allocation2 + $0x89] sm:$0xff] }
 0x20c   : > { %6647 = vmatmul.mubr.msk.f32.gmra.mrb[30].mxu1 %vm758_vm1, %v8363_v63  ;;  %v3994_v63 = vld [vmem:[#allocation2 + $0x31] sm:$0xff] }
 0x20d   : > { %6649 = vmatprep.mubr.msk.f32.mxu1 %vm758_vm1, %v3632_v6 }
 0x210   : > { %6650 = vmatmul.mubr.msk.f32.gmra.mrb[32].mxu1 %vm758_vm1, %v3633_v41  ;;  %v4003_v41 = vld [vmem:[#allocation2 + $0x79] sm:$0xff] }
 0x211   : > { %6652 = vmatprep.mubr.msk.f32.mxu1 %vm758_vm1, %v3634_v55  ;;  %v4004_v55 = vld [vmem:[#allocation2 + $0x81] sm:$0xff] }
 0x214   : > { %6653 = vmatmul.mubr.msk.f32.gmra.mrb[34].mxu1 %vm758_vm1, %v3635_v62  ;;  %v4006_v62 = vld [vmem:[#allocation2 + $0x91] sm:$0xff] }
 0x215   : > { %6659 = vmatprep.mubr.msk.f32.mxu1 %vm758_vm1, %v3992_v22  ;;  %v4007_v22 = vld [vmem:[#allocation2 + $0x99] sm:$0xff] }
 0x218   : > { %6660 = vmatmul.mubr.msk.f32.vlgmr.msra.gmra.mrb[4].mxu1 %vm758_vm1, %v3993_v9  ;;  %v4008_v9 = vld [vmem:[#allocation2 + $0xa1] sm:$0xff] }
 0x219   : > { %6662 = vmatprep.mubr.msk.f32.mxu1 %vm758_vm1, %v3994_v63  ;;  %6810 = vmatpush3.bf16.msra.mxu1 %v8819_v58  ;;  %v4000_v58 = vld [vmem:[#allocation2 + $0x61] sm:$0xff]  ;;  %v4009_v63 = vld [vmem:[#allocation2 + $0xa9] sm:$0xff] }
 0x21c   : > { %6663 = vmatmul.mubr.msk.f32.gmra.mrb[6].mxu1 %vm758_vm1, %v3995_v32  ;;  %v4010_v32 = vld [vmem:[#allocation2 + $0xb1] sm:$0xff] }
 0x21d   : > { %6665 = vmatprep.mubr.msk.f32.mxu1 %vm758_vm1, %v3996_v27  ;;  %v4011_v27 = vld [vmem:[#allocation2 + $0xb9] sm:$0xff] }
 0x220   : > { %6666 = vmatmul.mubr.msk.f32.gmra.mrb[8].mxu1 %vm758_vm1, %v3997_v45  ;;  %v9784_v45 = vld [vmem:[#allocation68_spill] sm:$0xff] }
 0x221   : > { %6668 = vmatprep.mubr.msk.f32.mxu1 %vm758_vm1, %v3998_v28  ;;  %v8947_v47 = vpop.f32.mrb[0].mxu1  ;;  %v9785_v28 = vld [vmem:[#allocation24_spill] sm:$0xff] }
 0x222   : > { %v8949_v0 = vpop.f32.mrb[1].mxu1 }
 0x224   : > { %6669 = vmatmul.mubr.msk.f32.gmra.mrb[10].mxu1 %vm758_vm1, %v3999_v48  ;;  %v4432_v48 = vmul.f32 %v9785_v28, %v9784_v45 }
 0x225   : > { %6671 = vmatprep.mubr.msk.f32.mxu1 %vm758_vm1, %v4000_v58  ;;  %v9786_v58 = vld [vmem:[#allocation66_spill] sm:$0xff] }
 0x227   : > { %v8953_v61 = vpop.f32.mrb[2].mxu1 }
 0x228   : > { %v8955_v6 = vpop.f32.mrb[3].mxu1  ;;  %6672 = vmatmul.mubr.msk.f32.gmra.mrb[12].mxu1 %vm758_vm1, %v4001_v26  ;;  %v9787_v26 = vld [vmem:[#allocation23_spill] sm:$0xff] }
 0x229   : > { %6674 = vmatprep.mubr.msk.f32.mxu1 %vm758_vm1, %v4002_v16  ;;  %v4433_v16 = vmul.f32 %v9787_v26, %v9786_v58  ;;  %v9135_v58 = vld [vmem:[%s9431_s6] sm:$0xff] }
 0x22a   : > { %6225 = vmatprep.mubr.msk.f32.mxu0 %vm758_vm1, %v9135_v58 }
 0x22c   : > { %6675 = vmatmul.mubr.msk.f32.gmra.mrb[14].mxu1 %vm758_vm1, %v4003_v41  ;;  %v9788_v41 = vld [vmem:[#allocation76_spill] sm:$0xff] }
 0x22d   : > { %6677 = vmatprep.mubr.msk.f32.mxu1 %vm758_vm1, %v4004_v55  ;;  %v9789_v55 = vld [vmem:[#allocation26_spill] sm:$0xff] }
 0x230   : > { %6678 = vmatmul.mubr.msk.f32.gmra.mrb[16].mxu1 %vm758_vm1, %v4005_v44  ;;  %v4434_v44 = vmul.f32 %v9789_v55, %v9788_v41 }
 0x231   : > { %6680 = vmatprep.mubr.msk.f32.mxu1 %vm758_vm1, %v4006_v62  ;;  %v9790_v62 = vld [vmem:[#allocation25_spill] sm:$0xff] }
 0x234   : > { %6681 = vmatmul.mubr.msk.f32.gmra.mrb[18].mxu1 %vm758_vm1, %v4007_v22  ;;  %v4435_v22 = vmul.f32 %v9790_v62, %v8741_v4 }
 0x235   : > { %6683 = vmatprep.mubr.msk.f32.mxu1 %vm758_vm1, %v4008_v9  ;;  %v9791_v9 = vld [vmem:[#allocation28_spill] sm:$0xff] }
 0x238   : > { %6684 = vmatmul.mubr.msk.f32.gmra.mrb[20].mxu1 %vm758_vm1, %v4009_v63  ;;  %v4436_v63 = vmul.f32 %v9791_v9, %v8745_v30 }
 0x239   : > { %6686 = vmatprep.mubr.msk.f32.mxu1 %vm758_vm1, %v4010_v32  ;;  %v9792_v32 = vld [vmem:[#allocation27_spill] sm:$0xff] }
 0x23c   : > { %6687 = vmatmul.mubr.msk.f32.gmra.mrb[22].mxu1 %vm758_vm1, %v4011_v27  ;;  %v4437_v27 = vmul.f32 %v9792_v32, %v8757_v37  ;;  %v4441_v37 = vmul.f32 %v8796_v49, %v9714_v18 }
 0x23d   : > { %6689 = vmatprep.mubr.msk.f32.mxu1 %vm758_vm1, %v9671_v24  ;;  %v4022_v24 = vld [vmem:[#allocation2 + $0x111] sm:$0xff] }
 0x240   : > { %6690 = vmatmul.mubr.msk.f32.gmra.mrb[24].mxu1 %vm758_vm1, %v9673_v25  ;;  %v4416_v25 = vmul.f32 %v9679_v46, %v8583_v7  ;;  %v9770_v46 = vld [vmem:[#allocation58_spill] sm:$0xff]  ;;  %v9774_v7 = vld [vmem:[#allocation53_spill] sm:$0xff] }
 0x241   : > { %6692 = vmatprep.mubr.msk.f32.mxu1 %vm758_vm1, %v9674_v34  ;;  %v4417_v34 = vmul.f32 %v9680_v53, %v8596_v57  ;;  %v9772_v53 = vld [vmem:[#allocation59_spill] sm:$0xff] }
 0x242   : > { %v9776_v57 = vld [vmem:[#allocation67_spill] sm:$0xff] }
 0x244   : > { %6693 = vmatmul.mubr.msk.f32.gmra.mrb[26].mxu1 %vm758_vm1, %v8281_v60  ;;  %v4023_v60 = vld [vmem:[#allocation2 + $0x119] sm:$0xff] }
 0x245   : > { %6695 = vmatprep.mubr.msk.f32.mxu1 %vm758_vm1, %v8304_v59  ;;  %v4412_v59 = vmul.f32 %v9675_v14, %v8543_v23  ;;  %v4418_v14 = vmul.f32 %v9681_v50, %v8601_v39  ;;  %v4422_v23 = vmul.f32 %v9685_v51, %v8633_v2  ;;  %v9773_v50 = vld [vmem:[#allocation18_spill] sm:$0xff]  ;;  %v9777_v39 = vld [vmem:[#allocation20_spill] sm:$0xff]  ;;  %v9778_v51 = vld [vmem:[#allocation65_spill] sm:$0xff] }
 0x246   : > { %v9782_v2 = vld [vmem:[#allocation64_spill] sm:$0xff] }
 0x248   : > { %6696 = vmatmul.mubr.msk.f32.gmra.mrb[28].mxu1 %vm758_vm1, %v8327_v31  ;;  %v4414_v31 = vmul.f32 %v9677_v17, %v8560_v12  ;;  %v4421_v17 = vmul.f32 %v9684_v10, %v8629_v43  ;;  %v4428_v10 = vmul.f32 %v9777_v39, %v9776_v57 }
 0x249   : > { %6698 = vmatprep.mubr.msk.f32.mxu1 %vm758_vm1, %v8352_v8  ;;  %v4413_v8 = vmul.f32 %v9676_v42, %v8555_v56  ;;  %v4419_v42 = vmul.f32 %v9682_v40, %v8613_v3  ;;  %v9771_v56 = vld [vmem:[#allocation15_spill] sm:$0xff]  ;;  %v9775_v40 = vld [vmem:[#allocation17_spill] sm:$0xff] }
 0x24a   : > { %v4425_v12 = vmul.f32 %v9771_v56, %v9770_v46  ;;  %v9779_v3 = vld [vmem:[#allocation19_spill] sm:$0xff] }
 0x24c   : > { %6699 = vmatmul.mubr.msk.f32.gmra.mrb[30].mxu1 %vm758_vm1, %v8375_v5  ;;  %v4415_v5 = vmul.f32 %v9678_v19, %v8577_v33  ;;  %v4423_v19 = vmul.f32 %v9686_v15, %v8645_v54  ;;  %v4426_v33 = vmul.f32 %v9773_v50, %v9772_v53  ;;  %v9780_v15 = vld [vmem:[#allocation75_spill] sm:$0xff]  ;;  %v9783_v54 = vld [vmem:[#allocation21_spill] sm:$0xff] }
 0x24d   : > { %6701 = vmatprep.mubr.msk.f32.mxu1 %vm758_vm1, %v8537_v13  ;;  %v4420_v13 = vmul.f32 %v9683_v21, %v8617_v11  ;;  %v4427_v21 = vmul.f32 %v9775_v40, %v9774_v7  ;;  %v4429_v11 = vmul.f32 %v9779_v3, %v9778_v51 }
 0x250   : > { %6702 = vmatmul.mubr.msk.f32.gmra.mrb[32].mxu1 %vm758_vm1, %v8550_v36  ;;  %v4424_v36 = vmul.f32 %v9687_v29, %v8649_v35  ;;  %v9781_v29 = vld [vmem:[#allocation22_spill] sm:$0xff]  ;;  %v4431_v35 = vmul.f32 %v9783_v54, %v9782_v2 }
 0x251   : > { %6704 = vmatprep.mubr.msk.f32.mxu1 %vm758_vm1, %v4022_v24  ;;  %v4430_v43 = vmul.f32 %v9781_v29, %v9780_v15  ;;  %v4438_v24 = vmul.f32 %v9711_v20, %v8761_v52  ;;  %v9795_v20 = vld [vmem:[#allocation34_spill] sm:$0xff] }
 0x254   : > { %6705 = vmatmul.mubr.msk.f32.gmra.mrb[34].mxu1 %vm758_vm1, %v4023_v60  ;;  %v9793_v60 = vld [vmem:[#allocation29_spill] sm:$0xff] }
 0x255   : > { %6711 = vmatprep.mubr.msk.f32.mxu1 %vm758_vm1, %v4412_v59  ;;  %v4439_v4 = vmul.f32 %v9793_v60, %v8773_v1  ;;  %v9794_v59 = vld [vmem:[#allocation32_spill] sm:$0xff] }
 0x256   : > { %v4440_v30 = vmul.f32 %v8787_v38, %v9794_v59 }
 0x258   : > { %6712 = vmatmul.mubr.msk.f32.vlgmr.msra.gmra.mrb[4].mxu1 %vm758_vm1, %v4413_v8  ;;  %v4410_v8 = vld [vmem:[#allocation2 + $0x112] sm:$0xff] }
 0x259   : > { %6714 = vmatprep.mubr.msk.f32.mxu1 %vm758_vm1, %v4414_v31  ;;  %v4411_v31 = vld [vmem:[#allocation2 + $0x11a] sm:$0xff]  ;;  %v4442_v52 = vmul.f32 %v4410_v8, %v9795_v20 }
 0x25c   : > { %6715 = vmatmul.mubr.msk.f32.gmra.mrb[6].mxu1 %vm758_vm1, %v4415_v5  ;;  %v9796_v5 = vld [vmem:[#allocation33_spill] sm:$0xff] }
 0x25d   : > { %6717 = vmatprep.mubr.msk.f32.mxu1 %vm758_vm1, %v4416_v25  ;;  %v4443_v1 = vmul.f32 %v4411_v31, %v9796_v5 }
 0x260   : > { %6718 = vmatmul.mubr.msk.f32.gmra.mrb[8].mxu1 %vm758_vm1, %v4417_v34 }
 0x261   : > { %6720 = vmatprep.mubr.msk.f32.mxu1 %vm758_vm1, %v4418_v14 }
 0x264   : > { %6721 = vmatmul.mubr.msk.f32.gmra.mrb[10].mxu1 %vm758_vm1, %v4419_v42 }
 0x265   : > { %6723 = vmatprep.mubr.msk.f32.mxu1 %vm758_vm1, %v4420_v13 }
 0x268   : > { %6724 = vmatmul.mubr.msk.f32.gmra.mrb[12].mxu1 %vm758_vm1, %v4421_v17 }
 0x269   : > { %6726 = vmatprep.mubr.msk.f32.mxu1 %vm758_vm1, %v4422_v23 }
 0x26c   : > { %6727 = vmatmul.mubr.msk.f32.gmra.mrb[14].mxu1 %vm758_vm1, %v4423_v19 }
 0x26d   : > { %6729 = vmatprep.mubr.msk.f32.mxu1 %vm758_vm1, %v4424_v36 }
 0x270   : > { %6730 = vmatmul.mubr.msk.f32.gmra.mrb[16].mxu1 %vm758_vm1, %v4425_v12 }
 0x271   : > { %6732 = vmatprep.mubr.msk.f32.mxu1 %vm758_vm1, %v4426_v33 }
 0x274   : > { %6733 = vmatmul.mubr.msk.f32.gmra.mrb[18].mxu1 %vm758_vm1, %v4427_v21 }
 0x275   : > { %6735 = vmatprep.mubr.msk.f32.mxu1 %vm758_vm1, %v4428_v10 }
 0x278   : > { %6736 = vmatmul.mubr.msk.f32.gmra.mrb[20].mxu1 %vm758_vm1, %v4429_v11 }
 0x279   : > { %6738 = vmatprep.mubr.msk.f32.mxu1 %vm758_vm1, %v4430_v43 }
 0x27c   : > { %6739 = vmatmul.mubr.msk.f32.gmra.mrb[22].mxu1 %vm758_vm1, %v4431_v35 }
 0x27d   : > { %6741 = vmatprep.mubr.msk.f32.mxu1 %vm758_vm1, %v4432_v48 }
 0x280   : > { %6742 = vmatmul.mubr.msk.f32.gmra.mrb[24].mxu1 %vm758_vm1, %v4433_v16 }
 0x281   : > { %6744 = vmatprep.mubr.msk.f32.mxu1 %vm758_vm1, %v4434_v44 }
 0x284   : > { %6745 = vmatmul.mubr.msk.f32.gmra.mrb[26].mxu1 %vm758_vm1, %v4435_v22 }
 0x285   : > { %6747 = vmatprep.mubr.msk.f32.mxu1 %vm758_vm1, %v4436_v63 }
 0x288   : > { %6748 = vmatmul.mubr.msk.f32.gmra.mrb[28].mxu1 %vm758_vm1, %v4437_v27 }
 0x289   : > { %6750 = vmatprep.mubr.msk.f32.mxu1 %vm758_vm1, %v4438_v24 }
 0x28c   : > { %6751 = vmatmul.mubr.msk.f32.gmra.mrb[30].mxu1 %vm758_vm1, %v4439_v4 }
 0x28d   : > { %6753 = vmatprep.mubr.msk.f32.mxu1 %vm758_vm1, %v4440_v30 }
 0x290   : > { %6754 = vmatmul.mubr.msk.f32.gmra.mrb[32].mxu1 %vm758_vm1, %v4441_v37 }
 0x291   : > { %6756 = vmatprep.mubr.msk.f32.mxu1 %vm758_vm1, %v4442_v52 }
 0x294   : > { %6757 = vmatmul.mubr.msk.f32.gmra.mrb[34].mxu1 %vm758_vm1, %v4443_v1 }
 0x2a1   : > { %v6453_v38 = vpop.f32.mrb[32].mxu0 }
 0x2a2   : > { %v2573_v25 = vpop.f32.mrb[33].mxu0 }
 0x2a5   : > { %v6456_v34 = vpop.f32.mrb[34].mxu0 }
 0x2a6   : > { %v2583_v14 = vpop.f32.mrb[35].mxu0 }
 0x2a9   : > { %v6459_v42 = vpop.f32.mrb[36].mxu0 }
 0x2aa   : > { %v2593_v13 = vpop.f32.mrb[37].mxu0 }
 0x2ad   : > { %v6462_v17 = vpop.f32.mrb[38].mxu0 }
 0x2ae   : > { %v2603_v23 = vpop.f32.mrb[39].mxu0 }
 0x2b1   : > { %v6465_v49 = vpop.f32.mrb[40].mxu0 }
 0x2b2   : > { %v2613_v18 = vpop.f32.mrb[41].mxu0 }
 0x2b5   : > { %v9084_v19 = vpop.f32.mrb[42].mxu0 }
 0x2b6   : > { %v9086_v36 = vpop.f32.mrb[43].mxu0 }
 0x2b9   : > { %v9088_v46 = vpop.f32.mrb[44].mxu0 }
 0x2ba   : > { %v9090_v56 = vpop.f32.mrb[45].mxu0 }
 0x2bd   : > { %v9092_v12 = vpop.f32.mrb[46].mxu0 }
 0x2be   : > { %v9094_v53 = vpop.f32.mrb[47].mxu0 }
 0x2c1   : > { %v9096_v50 = vpop.f32.mrb[48].mxu0 }
 0x2c2   : > { %v9098_v33 = vpop.f32.mrb[49].mxu0 }
 0x2c5   : > { %v9100_v7 = vpop.f32.mrb[50].mxu0 }
 0x2c6   : > { %v9102_v40 = vpop.f32.mrb[51].mxu0 }
 0x2c9   : > { %v9104_v21 = vpop.f32.mrb[52].mxu0 }
 0x2ca   : > { %v9106_v57 = vpop.f32.mrb[53].mxu0 }
 0x2cd   : > { %v9108_v39 = vpop.f32.mrb[54].mxu0 }
 0x2ce   : > { %v9110_v10 = vpop.f32.mrb[55].mxu0 }
 0x2d1   : > { %v9112_v51 = vpop.f32.mrb[56].mxu0 }
 0x2d2   : > { %v9114_v3 = vpop.f32.mrb[57].mxu0 }
 0x2d5   : > { %v9116_v11 = vpop.f32.mrb[58].mxu0 }
 0x2d6   : > { %v9118_v15 = vpop.f32.mrb[59].mxu0 }
 0x2d9   : > { %v6495_v29 = vpop.f32.mrb[60].mxu0 }
 0x2da   : > { %v9121_v43 = vadd.f32 %v6495_v29, %v8947_v47  ;;  %v2713_v2 = vpop.f32.mrb[61].mxu0 }
 0x2db   : > { %v9124_v54 = vadd.f32 %v2713_v2, %v8949_v0  ;;  %v9142_v0 = vld [vmem:[%s9430_s5] ss:$0 sm:$0xff] }
 0x2dd   : > { %v6498_v35 = vpop.f32.mrb[62].mxu0 }
 0x2de   : > { %v9127_v45 = vadd.f32 %v6498_v35, %v8953_v61  ;;  %v2723_v28 = vpop.f32.mrb[63].mxu0 }
 0x2df   : > { %v9130_v48 = vadd.f32 %v2723_v28, %v8955_v6 }
 0x32b   : > { %v6713_v47 = vpop.f32.mrb[4].mxu1 }
 0x32c   : > { %v6861_v61 = vadd.f32 %v6713_v47, %v6453_v38  ;;  %v4609_v26 = vpop.f32.mrb[5].mxu1 }
 0x32d   : > { %v6862_v16 = vadd.f32 %v4609_v26, %v2573_v25 }
 0x32e   : > { %v9145_v6 = vadd.f32 %v6861_v61, %v9142_v0 }
 0x32f   : > { %v9148_v41 = vadd.f32 %v6862_v16, %v9142_v0  ;;  %v6716_v55 = vpop.f32.mrb[6].mxu1 }
 0x330   : > { %v6863_v44 = vadd.f32 %v6716_v55, %v6456_v34  ;;  %v4619_v62 = vpop.f32.mrb[7].mxu1 }
 0x331   : > { %v6814_v22 = vpack.c.bf16 %v9145_v6, %v9148_v41  ;;  %v6864_v9 = vadd.f32 %v4619_v62, %v2583_v14 }
 0x332   : > { %v9153_v63 = vadd.f32 %v6863_v44, %v9142_v0 }
 0x333   : > { %v9156_v32 = vadd.f32 %v6864_v9, %v9142_v0  ;;  %v6719_v27 = vpop.f32.mrb[8].mxu1 }
 0x334   : > { %v6865_v24 = vadd.f32 %v6719_v27, %v6459_v42  ;;  %v4629_v60 = vpop.f32.mrb[9].mxu1 }
 0x335   : > { %v6820_v4 = vpack.c.bf16 %v9153_v63, %v9156_v32  ;;  %v6866_v59 = vadd.f32 %v4629_v60, %v2593_v13 }
 0x336   : > { %v9161_v30 = vadd.f32 %v6865_v24, %v9142_v0 }
 0x337   : > { %v9164_v8 = vadd.f32 %v6866_v59, %v9142_v0  ;;  %v6722_v37 = vpop.f32.mrb[10].mxu1 }
 0x338   : > { %v6867_v31 = vadd.f32 %v6722_v37, %v6462_v17  ;;  %v4639_v20 = vpop.f32.mrb[11].mxu1 }
 0x339   : > { %v6826_v52 = vpack.c.bf16 %v9161_v30, %v9164_v8  ;;  %v6868_v5 = vadd.f32 %v4639_v20, %v2603_v23 }
 0x33a   : > { %v9169_v1 = vadd.f32 %v6867_v31, %v9142_v0 }
 0x33b   : > { %v9172_v38 = vadd.f32 %v6868_v5, %v9142_v0  ;;  %v6725_v25 = vpop.f32.mrb[12].mxu1 }
 0x33c   : > { %v6869_v34 = vadd.f32 %v6725_v25, %v6465_v49  ;;  %v4649_v14 = vpop.f32.mrb[13].mxu1 }
 0x33d   : > { %v6832_v42 = vpack.c.bf16 %v9169_v1, %v9172_v38  ;;  %v6870_v13 = vadd.f32 %v4649_v14, %v2613_v18 }
 0x33e   : > { %v9177_v17 = vadd.f32 %v6869_v34, %v9142_v0 }
 0x33f   : > { %v9180_v29 = vadd.f32 %v6870_v13, %v9142_v0  ;;  %v6728_v23 = vpop.f32.mrb[14].mxu1 }
 0x340   : > { %v6871_v2 = vadd.f32 %v6728_v23, %v9084_v19  ;;  %v4659_v35 = vpop.f32.mrb[15].mxu1 }
 0x341   : > { %v6838_v28 = vpack.c.bf16 %v9177_v17, %v9180_v29  ;;  %v6872_v49 = vadd.f32 %v4659_v35, %v9086_v36  ;;  %v5016_v17 = vlaneseq }
 0x342   : > { %v9187_v47 = vadd.f32 %v6871_v2, %v9142_v0 }
 0x343   : > { %v9190_v18 = vadd.f32 %v6872_v49, %v9142_v0  ;;  %v6731_v61 = vpop.f32.mrb[16].mxu1  ;;  %v9310_v29 = vand.u32 127, %v5016_v17 }
 0x344   : > { %v6873_v26 = vadd.f32 %v6731_v61, %v9088_v46  ;;  %v4669_v16 = vpop.f32.mrb[17].mxu1 }
 0x345   : > { %v6844_v55 = vpack.c.bf16 %v9187_v47, %v9190_v18  ;;  %v6874_v19 = vadd.f32 %v4669_v16, %v9090_v56 }
 0x346   : > { %v9197_v44 = vadd.f32 %v6873_v26, %v9142_v0 }
 0x347   : > { %v9200_v36 = vadd.f32 %v6874_v19, %v9142_v0  ;;  %v6734_v62 = vpop.f32.mrb[18].mxu1 }
 0x348   : > { %v6875_v9 = vadd.f32 %v6734_v62, %v9092_v12  ;;  %v4679_v27 = vpop.f32.mrb[19].mxu1 }
 0x349   : > { %v6850_v24 = vpack.c.bf16 %v9197_v44, %v9200_v36  ;;  %v6876_v46 = vadd.f32 %v4679_v27, %v9094_v53 }
 0x34a   : > { %v9207_v60 = vadd.f32 %v6875_v9, %v9142_v0 }
 0x34b   : > { %v9210_v56 = vadd.f32 %v6876_v46, %v9142_v0  ;;  %v6737_v59 = vpop.f32.mrb[20].mxu1 }
 0x34c   : > { %v6877_v37 = vadd.f32 %v6737_v59, %v9096_v50  ;;  %v4689_v31 = vpop.f32.mrb[21].mxu1 }
 0x34d   : > { %v6856_v20 = vpack.c.bf16 %v9207_v60, %v9210_v56  ;;  %v6878_v12 = vadd.f32 %v4689_v31, %v9098_v33 }
 0x34e   : > { %v4824_v5 = vadd.f32 %v6877_v37, %v9142_v0 }
 0x34f   : > { %v4823_v25 = vadd.f32 %v6878_v12, %v9142_v0  ;;  %v6740_v53 = vpop.f32.mrb[22].mxu1 }
 0x350   : > { %v6879_v34 = vadd.f32 %v6740_v53, %v9100_v7  ;;  %v4699_v14 = vpop.f32.mrb[23].mxu1 }
 0x351   : > { %v6811_v50 = vpack.c.bf16 %v4824_v5, %v4823_v25  ;;  %v6880_v23 = vadd.f32 %v4699_v14, %v9102_v40 }
 0x352   : > { %v4826_v2 = vadd.f32 %v6879_v34, %v9142_v0 }
 0x353   : > { %v4825_v33 = vadd.f32 %v6880_v23, %v9142_v0  ;;  %v6743_v35 = vpop.f32.mrb[24].mxu1  ;;  %6813 = vmatprep.subr.msk.bf16.mxu0 %vm9221_vm3, %v6811_v50 }
 0x354   : > { %v6881_v7 = vadd.f32 %v6743_v35, %v9104_v21  ;;  %v4709_v49 = vpop.f32.mrb[25].mxu1  ;;  %6816 = vmatpush3.bf16.xpose.msk.msra.mxu0 %vm9221_vm3, %v6814_v22 }
 0x355   : > { %v6817_v61 = vpack.c.bf16 %v4826_v2, %v4825_v33  ;;  %v6882_v40 = vadd.f32 %v4709_v49, %v9106_v57 }
 0x356   : > { %v4828_v26 = vadd.f32 %v6881_v7, %v9142_v0 }
 0x357   : > { %v4827_v16 = vadd.f32 %v6882_v40, %v9142_v0  ;;  %v6746_v19 = vpop.f32.mrb[26].mxu1  ;;  %6819 = vmatprep.subr.msk.bf16.mxu0 %vm9221_vm3, %v6817_v61 }
 0x358   : > { %v6883_v21 = vadd.f32 %v6746_v19, %v9108_v39  ;;  %v4719_v62 = vpop.f32.mrb[27].mxu1 }
 0x359   : > { %v6823_v9 = vpack.c.bf16 %v4828_v26, %v4827_v16  ;;  %v6884_v6 = vadd.f32 %v4719_v62, %v9110_v10 }
 0x35a   : > { %v4830_v41 = vadd.f32 %v6883_v21, %v9142_v0 }
 0x35b   : > { %v4829_v22 = vadd.f32 %v6884_v6, %v9142_v0  ;;  %v6749_v27 = vpop.f32.mrb[28].mxu1 }
 0x35c   : > { %v6885_v57 = vadd.f32 %v6749_v27, %v9112_v51  ;;  %v4729_v46 = vpop.f32.mrb[29].mxu1  ;;  %6822 = vmatpush3.bf16.xpose.msk.msra.mxu0 %vm9221_vm3, %v6820_v4 }
 0x35d   : > { %v6829_v59 = vpack.c.bf16 %v4830_v41, %v4829_v22  ;;  %v6886_v39 = vadd.f32 %v4729_v46, %v9114_v3  ;;  %6825 = vmatprep.subr.msk.bf16.mxu0 %vm9221_vm3, %v6823_v9 }
 0x35e   : > { %v4832_v10 = vadd.f32 %v6885_v57, %v9142_v0 }
 0x35f   : > { %v4831_v37 = vadd.f32 %v6886_v39, %v9142_v0  ;;  %v6752_v31 = vpop.f32.mrb[30].mxu1 }
 0x360   : > { %v6887_v51 = vadd.f32 %v6752_v31, %v9116_v11  ;;  %v4739_v12 = vpop.f32.mrb[31].mxu1 }
 0x361   : > { %v6835_v5 = vpack.c.bf16 %v4832_v10, %v4831_v37  ;;  %v6888_v63 = vadd.f32 %v4739_v12, %v9118_v15 }
 0x362   : > { %v4834_v32 = vadd.f32 %v6887_v51, %v9142_v0 }
 0x363   : > { %v4833_v4 = vadd.f32 %v6888_v63, %v9142_v0  ;;  %v6755_v25 = vpop.f32.mrb[32].mxu1 }
 0x364   : > { %v6890_v3 = vadd.f32 %v9121_v43, %v6755_v25  ;;  %v4749_v53 = vpop.f32.mrb[33].mxu1  ;;  %6828 = vmatpush3.bf16.xpose.msk.msra.mxu0 %vm9221_vm3, %v6826_v52 }
 0x365   : > { %v6841_v34 = vpack.c.bf16 %v4834_v32, %v4833_v4  ;;  %v6892_v11 = vadd.f32 %v9124_v54, %v4749_v53  ;;  %6831 = vmatprep.subr.msk.bf16.mxu0 %vm9221_vm3, %v6829_v59 }
 0x366   : > { %v4836_v15 = vadd.f32 %v6890_v3, %v9142_v0 }
 0x367   : > { %v4835_v14 = vadd.f32 %v6892_v11, %v9142_v0  ;;  %v6758_v50 = vpop.f32.mrb[34].mxu1 }
 0x368   : > { %v6894_v43 = vadd.f32 %v9127_v45, %v6758_v50  ;;  %v4759_v23 = vpop.f32.mrb[35].mxu1  ;;  %v4844_v45 = vpop.permute.xlu1 %4843 }
 0x369   : > { %v6847_v2 = vpack.c.bf16 %v4836_v15, %v4835_v14  ;;  %v6896_v30 = vadd.f32 %v9130_v48, %v4759_v23 }
 0x36a   : > { %v4838_v8 = vadd.f32 %v6894_v43, %v9142_v0 }
 0x36b   : > { %v4837_v52 = vadd.f32 %v6896_v30, %v9142_v0 }
 0x36c   : > { %6834 = vmatpush3.bf16.xpose.msk.msra.mxu0 %vm9221_vm3, %v6832_v42 }
 0x36d   : > { %v6853_v54 = vpack.c.bf16 %v4838_v8, %v4837_v52  ;;  %6837 = vmatprep.subr.msk.bf16.mxu0 %vm9221_vm3, %v6835_v5 }
 0x374   : > { %6840 = vmatpush3.bf16.xpose.msk.msra.mxu0 %vm9221_vm3, %v6838_v28  ;;  %v9313_v28 = vadd.s32 128, %v9310_v29 }
 0x375   : > { %6843 = vmatprep.subr.msk.bf16.mxu0 %vm9221_vm3, %v6841_v34 }
 0x37c   : > { %6846 = vmatpush3.bf16.xpose.msk.msra.mxu0 %vm9221_vm3, %v6844_v55 }
 0x37d   : > { %6849 = vmatprep.subr.msk.bf16.mxu0 %vm9221_vm3, %v6847_v2 }
 0x384   : > { %6852 = vmatpush3.bf16.xpose.msk.msra.mxu0 %vm9221_vm3, %v6850_v24 }
 0x385   : > { %6855 = vmatprep.subr.msk.bf16.mxu0 %vm9221_vm3, %v6853_v54 }
 0x38c   : > { %6858 = vmatpush3.bf16.xpose.msk.msra.mxu0 %vm9221_vm3, %v6856_v20 }
 0x393   : > { %6226 = vmatmul.mubr.msk.f32.vlgmr.msra.gmra.mrb[64].mxu0 %vm758_vm1, %v9135_v58 }
 0x466   : > { %v5011_v48 = vpop.f32.mrb[64].mxu0 }
 0x467   : > { %v5012_v0 = vadd.f32 %v5011_v48, %v4844_v45  ;;  %v5013_v1 = vpop.f32.mrb[65].mxu0 }
 0x468   : > { %v5014_v38 = vadd.f32 %v5013_v1, %v4844_v45 }
 0x46a   : > { %v5019_v42 = vmax.f32 %v5012_v0, %v5014_v38 }
 0x46c   : > { %5020 = vmax.xlane.f32.xlu0 %v5019_v42 }
 0x4f9   : > { %v9315_v47 = vpop.xlane.xlu0 %5020 }
 0x4fa   : > { %vm5023_vm4 = vcmp.eq.f32.partialorder %v5012_v0, %v9315_v47  ;;  %vm5024_vm5 = vcmp.eq.f32.partialorder %v5014_v38, %v9315_v47 }
 0x4fb   : > { %v5025_v58 = vsel %vm5023_vm4, %v9310_v29, 256  ;;  %v5026_v18 = vsel %vm5024_vm5, %v9313_v28, 256 }
 0x4fc   : > { %vm5027_vm6 = vcmp.lt.s32.totalorder %v5025_v58, %v5026_v18 }
 0x4fd   : > { %v5028_v55 = vsel %vm5027_vm6, %v5025_v58, %v5026_v18 }
 0x4fe   : > { %v5030_v44 = vshra.s32 %v5028_v55, 16  ;;  %v5029_v24 = vand.u32 65535, %v5028_v55 }
 0x500   : > { %v5032_v36 = vcvt.s32.f32 %v5030_v44  ;;  %v5031_v56 = vcvt.s32.f32 %v5029_v24 }
 0x502   : > { %5033 = vmin.xlane.f32.xlu1 %v5032_v36 }
 0x58f   : > { %v5034_v60 = vpop.xlane.xlu1 %5033 }
 0x590   : > { %vm5035_vm7 = vcmp.eq.f32.partialorder %v5032_v36, %v5034_v60  ;;  %v5040_v13 = vcvt.f32.s32 %v5034_v60 }
 0x591   : > { %v5036_v20 = vsel %vm5035_vm7, %v5031_v56, inf }
 0x592   : > { %5037 = vmin.xlane.f32.xlu0 %v5036_v20  ;;  %v5041_v35 = vshll.u32 %v5040_v13, 16 }
 0x61f   : > { %v5038_v33 = vpop.xlane.xlu0 %5037 }
 0x620   : > { %v5039_v7 = vcvt.f32.s32 %v5038_v33 }
 0x622   : > { %v5042_v49 = vadd.s32 %v5041_v35, %v5039_v7 }
 0x624   : > { %vm5043_vm8 = vcmp.eq.s32.totalorder %v9310_v29, %v5042_v49  ;;  %vm5044_vm9 = vcmp.eq.s32.totalorder %v9313_v28, %v5042_v49 }
 0x625   : > { %v5045_v61 = vsel %vm5043_vm8, -inf, %v5012_v0  ;;  %v5046_v40 = vsel %vm5044_vm9, -inf, %v5014_v38 }
 0x626   : > { %v5047_v26 = vmax.f32 %v5045_v61, %v5046_v40 }
 0x628   : > { %5048 = vmax.xlane.f32.xlu0 %v5047_v26 }
 0x6b5   : > { %v9323_v16 = vpop.xlane.xlu0 %5048 }
 0x6b6   : > { %vm5051_vm10 = vcmp.eq.f32.partialorder %v5045_v61, %v9323_v16  ;;  %vm5052_vm11 = vcmp.eq.f32.partialorder %v5046_v40, %v9323_v16 }
 0x6b7   : > { %v5053_v19 = vsel %vm5051_vm10, %v9310_v29, 256  ;;  %v5054_v21 = vsel %vm5052_vm11, %v9313_v28, 256 }
 0x6b8   : > { %vm5055_vm12 = vcmp.lt.s32.totalorder %v5053_v19, %v5054_v21 }
 0x6b9   : > { %v5056_v62 = vsel %vm5055_vm12, %v5053_v19, %v5054_v21 }
 0x6ba   : > { %v5058_v9 = vshra.s32 %v5056_v62, 16  ;;  %v5057_v41 = vand.u32 65535, %v5056_v62 }
 0x6bc   : > { %v5060_v6 = vcvt.s32.f32 %v5058_v9  ;;  %v5059_v27 = vcvt.s32.f32 %v5057_v41 }
 0x6be   : > { %5061 = vmin.xlane.f32.xlu1 %v5060_v6 }
 0x74b   : > { %v5062_v22 = vpop.xlane.xlu1 %5061 }
 0x74c   : > { %vm5063_vm13 = vcmp.eq.f32.partialorder %v5060_v6, %v5062_v22  ;;  %v5068_v46 = vcvt.f32.s32 %v5062_v22 }
 0x74d   : > { %v5064_v57 = vsel %vm5063_vm13, %v5059_v27, inf }
 0x74e   : > { %5065 = vmin.xlane.f32.xlu0 %v5064_v57  ;;  %v5069_v39 = vshll.u32 %v5068_v46, 16 }
 0x7db   : > { %v5066_v59 = vpop.xlane.xlu0 %5065 }
 0x7dc   : > { %v5067_v10 = vcvt.f32.s32 %v5066_v59 }
 0x7de   : > { %v5070_v37 = vadd.s32 %v5069_v39, %v5067_v10 }
 0x7e0   : > { %vm5071_vm14 = vcmp.eq.s32.totalorder %v9310_v29, %v5070_v37  ;;  %vm5072_vm15 = vcmp.eq.s32.totalorder %v9313_v28, %v5070_v37 }
 0x7e1   : > { %v5073_v31 = vsel %vm5071_vm14, -inf, %v5045_v61  ;;  %v5074_v51 = vsel %vm5072_vm15, -inf, %v5046_v40 }
 0x7e2   : > { %v5075_v12 = vmax.f32 %v5073_v31, %v5074_v51 }
 0x7e4   : > { %5076 = vmax.xlane.f32.xlu1 %v5075_v12 }
 0x871   : > { %v9331_v5 = vpop.xlane.xlu1 %5076 }
 0x872   : > { %vm5079_vm0 = vcmp.eq.f32.partialorder %v5073_v31, %v9331_v5  ;;  %vm5080_vm1 = vcmp.eq.f32.partialorder %v5074_v51, %v9331_v5 }
 0x873   : > { %v5081_v63 = vsel %vm5079_vm0, %v9310_v29, 256  ;;  %v5082_v32 = vsel %vm5080_vm1, %v9313_v28, 256 }
 0x874   : > { %vm5083_vm2 = vcmp.lt.s32.totalorder %v5081_v63, %v5082_v32 }
 0x875   : > { %v5084_v4 = vsel %vm5083_vm2, %v5081_v63, %v5082_v32 }
 0x876   : > { %v5086_v25 = vshra.s32 %v5084_v4, 16  ;;  %v5085_v53 = vand.u32 65535, %v5084_v4 }
 0x878   : > { %v5088_v3 = vcvt.s32.f32 %v5086_v25  ;;  %v5087_v11 = vcvt.s32.f32 %v5085_v53 }
 0x87a   : > { %5089 = vmin.xlane.f32.xlu0 %v5088_v3 }
 0x907   : > { %v5090_v34 = vpop.xlane.xlu0 %5089 }
 0x908   : > { %vm5091_vm3 = vcmp.eq.f32.partialorder %v5088_v3, %v5090_v34  ;;  %v5096_v14 = vcvt.f32.s32 %v5090_v34 }
 0x909   : > { %v5092_v15 = vsel %vm5091_vm3, %v5087_v11, inf }
 0x90a   : > { %5093 = vmin.xlane.f32.xlu1 %v5092_v15  ;;  %v5097_v43 = vshll.u32 %v5096_v14, 16 }
 0x997   : > { %v5094_v50 = vpop.xlane.xlu1 %5093 }
 0x998   : > { %v5095_v23 = vcvt.f32.s32 %v5094_v50 }
 0x99a   : > { %v5098_v2 = vadd.s32 %v5097_v43, %v5095_v23 }
 0x99c   : > { %vm5099_vm4 = vcmp.eq.s32.totalorder %v9310_v29, %v5098_v2  ;;  %vm5100_vm5 = vcmp.eq.s32.totalorder %v9313_v28, %v5098_v2 }
 0x99d   : > { %v5101_v30 = vsel %vm5099_vm4, -inf, %v5073_v31  ;;  %v5102_v8 = vsel %vm5100_vm5, -inf, %v5074_v51 }
 0x99e   : > { %v5103_v52 = vmax.f32 %v5101_v30, %v5102_v8 }
 0x9a0   : > { %5104 = vmax.xlane.f32.xlu0 %v5103_v52 }
 0xa2d   : > { %v9339_v54 = vpop.xlane.xlu0 %5104 }
 0xa2e   : > { %vm5107_vm6 = vcmp.eq.f32.partialorder %v5101_v30, %v9339_v54  ;;  %vm5108_vm7 = vcmp.eq.f32.partialorder %v5102_v8, %v9339_v54 }
 0xa2f   : > { %v5109_v45 = vsel %vm5107_vm6, %v9310_v29, 256  ;;  %v5110_v48 = vsel %vm5108_vm7, %v9313_v28, 256 }
 0xa30   : > { %vm5111_vm8 = vcmp.lt.s32.totalorder %v5109_v45, %v5110_v48 }
 0xa31   : > { %v5112_v0 = vsel %vm5111_vm8, %v5109_v45, %v5110_v48 }
 0xa32   : > { %v5114_v1 = vshra.s32 %v5112_v0, 16  ;;  %v5113_v42 = vand.u32 65535, %v5112_v0 }
 0xa34   : > { %v5116_v38 = vcvt.s32.f32 %v5114_v1  ;;  %v5115_v58 = vcvt.s32.f32 %v5113_v42 }
 0xa36   : > { %5117 = vmin.xlane.f32.xlu1 %v5116_v38 }
 0xac3   : > { %v5118_v17 = vpop.xlane.xlu1 %5117 }
 0xac4   : > { %vm5119_vm9 = vcmp.eq.f32.partialorder %v5116_v38, %v5118_v17  ;;  %v5124_v55 = vcvt.f32.s32 %v5118_v17 }
 0xac5   : > { %v5120_v18 = vsel %vm5119_vm9, %v5115_v58, inf }
 0xac6   : > { %5121 = vmin.xlane.f32.xlu0 %v5120_v18  ;;  %v5125_v36 = vshll.u32 %v5124_v55, 16 }
 0xb53   : > { %v5122_v44 = vpop.xlane.xlu0 %5121 }
 0xb54   : > { %v5123_v24 = vcvt.f32.s32 %v5122_v44 }
 0xb56   : > { %v5126_v60 = vadd.s32 %v5125_v36, %v5123_v24 }
 0xb58   : > { %vm5127_vm10 = vcmp.eq.s32.totalorder %v9310_v29, %v5126_v60  ;;  %vm5128_vm11 = vcmp.eq.s32.totalorder %v9313_v28, %v5126_v60 }
 0xb59   : > { %v5129_v56 = vsel %vm5127_vm10, -inf, %v5101_v30  ;;  %v5130_v20 = vsel %vm5128_vm11, -inf, %v5102_v8 }
 0xb5a   : > { %v5131_v13 = vmax.f32 %v5129_v56, %v5130_v20 }
 0xb5c   : > { %5132 = vmax.xlane.f32.xlu1 %v5131_v13 }
 0xbe9   : > { %v9347_v33 = vpop.xlane.xlu1 %5132 }
 0xbea   : > { %vm5135_vm12 = vcmp.eq.f32.partialorder %v5129_v56, %v9347_v33  ;;  %vm5136_vm13 = vcmp.eq.f32.partialorder %v5130_v20, %v9347_v33 }
 0xbeb   : > { %v5137_v35 = vsel %vm5135_vm12, %v9310_v29, 256  ;;  %v5138_v7 = vsel %vm5136_vm13, %v9313_v28, 256 }
 0xbec   : > { %vm5139_vm14 = vcmp.lt.s32.totalorder %v5137_v35, %v5138_v7 }
 0xbed   : > { %v5140_v49 = vsel %vm5139_vm14, %v5137_v35, %v5138_v7 }
 0xbee   : > { %v5142_v61 = vshra.s32 %v5140_v49, 16  ;;  %v5141_v26 = vand.u32 65535, %v5140_v49 }
 0xbf0   : > { %v5144_v40 = vcvt.s32.f32 %v5142_v61  ;;  %v5143_v21 = vcvt.s32.f32 %v5141_v26 }
 0xbf2   : > { %5145 = vmin.xlane.f32.xlu0 %v5144_v40 }
 0xc7f   : > { %v5146_v19 = vpop.xlane.xlu0 %5145 }
 0xc80   : > { %vm5147_vm15 = vcmp.eq.f32.partialorder %v5144_v40, %v5146_v19  ;;  %v5152_v9 = vcvt.f32.s32 %v5146_v19 }
 0xc81   : > { %v5148_v62 = vsel %vm5147_vm15, %v5143_v21, inf }
 0xc82   : > { %5149 = vmin.xlane.f32.xlu1 %v5148_v62  ;;  %v5153_v41 = vshll.u32 %v5152_v9, 16 }
 0xd0f   : > { %v5150_v6 = vpop.xlane.xlu1 %5149 }
 0xd10   : > { %v5151_v22 = vcvt.f32.s32 %v5150_v6 }
 0xd12   : > { %v5154_v27 = vadd.s32 %v5153_v41, %v5151_v22 }
 0xd14   : > { %vm5155_vm0 = vcmp.eq.s32.totalorder %v9310_v29, %v5154_v27  ;;  %vm5156_vm1 = vcmp.eq.s32.totalorder %v9313_v28, %v5154_v27 }
 0xd15   : > { %v5157_v57 = vsel %vm5155_vm0, -inf, %v5129_v56  ;;  %v5158_v46 = vsel %vm5156_vm1, -inf, %v5130_v20 }
 0xd16   : > { %v5159_v59 = vmax.f32 %v5157_v57, %v5158_v46 }
 0xd18   : > { %5160 = vmax.xlane.f32.xlu0 %v5159_v59 }
 0xda5   : > { %v9355_v39 = vpop.xlane.xlu0 %5160 }
 0xda6   : > { %vm5163_vm2 = vcmp.eq.f32.partialorder %v5157_v57, %v9355_v39  ;;  %vm5164_vm3 = vcmp.eq.f32.partialorder %v5158_v46, %v9355_v39 }
 0xda7   : > { %v5165_v10 = vsel %vm5163_vm2, %v9310_v29, 256  ;;  %v5166_v37 = vsel %vm5164_vm3, %v9313_v28, 256 }
 0xda8   : > { %vm5167_vm4 = vcmp.lt.s32.totalorder %v5165_v10, %v5166_v37 }
 0xda9   : > { %v5168_v31 = vsel %vm5167_vm4, %v5165_v10, %v5166_v37 }
 0xdaa   : > { %v5170_v51 = vshra.s32 %v5168_v31, 16  ;;  %v5169_v63 = vand.u32 65535, %v5168_v31 }
 0xdac   : > { %v5172_v12 = vcvt.s32.f32 %v5170_v51  ;;  %v5171_v4 = vcvt.s32.f32 %v5169_v63 }
 0xdae   : > { %5173 = vmin.xlane.f32.xlu1 %v5172_v12 }
 0xe3b   : > { %v5174_v32 = vpop.xlane.xlu1 %5173 }
 0xe3c   : > { %vm5175_vm5 = vcmp.eq.f32.partialorder %v5172_v12, %v5174_v32  ;;  %v5180_v3 = vcvt.f32.s32 %v5174_v32 }
 0xe3d   : > { %v5176_v25 = vsel %vm5175_vm5, %v5171_v4, inf }
 0xe3e   : > { %5177 = vmin.xlane.f32.xlu0 %v5176_v25  ;;  %v5181_v34 = vshll.u32 %v5180_v3, 16 }
 0xecb   : > { %v5178_v53 = vpop.xlane.xlu0 %5177 }
 0xecc   : > { %v5179_v11 = vcvt.f32.s32 %v5178_v53 }
 0xece   : > { %v5182_v15 = vadd.s32 %v5181_v34, %v5179_v11 }
 0xed0   : > { %vm5183_vm6 = vcmp.eq.s32.totalorder %v9310_v29, %v5182_v15  ;;  %vm5184_vm7 = vcmp.eq.s32.totalorder %v9313_v28, %v5182_v15 }
 0xed1   : > { %v5185_v14 = vsel %vm5183_vm6, -inf, %v5157_v57  ;;  %v5186_v50 = vsel %vm5184_vm7, -inf, %v5158_v46 }
 0xed2   : > { %v5187_v43 = vmax.f32 %v5185_v14, %v5186_v50 }
 0xed4   : > { %5188 = vmax.xlane.f32.xlu1 %v5187_v43 }
 0xf61   : > { %v9363_v23 = vpop.xlane.xlu1 %5188 }
 0xf62   : > { %vm5191_vm8 = vcmp.eq.f32.partialorder %v5185_v14, %v9363_v23  ;;  %vm5192_vm9 = vcmp.eq.f32.partialorder %v5186_v50, %v9363_v23 }
 0xf63   : > { %v5193_v2 = vsel %vm5191_vm8, %v9310_v29, 256  ;;  %v5194_v30 = vsel %vm5192_vm9, %v9313_v28, 256 }
 0xf64   : > { %vm5195_vm10 = vcmp.lt.s32.totalorder %v5193_v2, %v5194_v30 }
 0xf65   : > { %v5196_v8 = vsel %vm5195_vm10, %v5193_v2, %v5194_v30 }
 0xf66   : > { %v5198_v52 = vshra.s32 %v5196_v8, 16  ;;  %v5197_v48 = vand.u32 65535, %v5196_v8 }
 0xf68   : > { %v5200_v45 = vcvt.s32.f32 %v5198_v52  ;;  %v5199_v1 = vcvt.s32.f32 %v5197_v48 }
 0xf6a   : > { %5201 = vmin.xlane.f32.xlu0 %v5200_v45 }
 0xff7   : > { %v5202_v0 = vpop.xlane.xlu0 %5201 }
 0xff8   : > { %vm5203_vm11 = vcmp.eq.f32.partialorder %v5200_v45, %v5202_v0  ;;  %v5208_v42 = vcvt.f32.s32 %v5202_v0 }
 0xff9   : > { %v5204_v38 = vsel %vm5203_vm11, %v5199_v1, inf }
 0xffa   : > { %5205 = vmin.xlane.f32.xlu1 %v5204_v38  ;;  %v5209_v58 = vshll.u32 %v5208_v42, 16 }
0x1087   : > { %v5206_v17 = vpop.xlane.xlu1 %5205 }
0x1088   : > { %v5207_v18 = vcvt.f32.s32 %v5206_v17 }
0x108a   : > { %v5210_v55 = vadd.s32 %v5209_v58, %v5207_v18 }
0x108c   : > { %vm5211_vm12 = vcmp.eq.s32.totalorder %v9310_v29, %v5210_v55  ;;  %vm5212_vm13 = vcmp.eq.s32.totalorder %v9313_v28, %v5210_v55 }
0x108d   : > { %v5213_v44 = vsel %vm5211_vm12, -inf, %v5185_v14  ;;  %v5214_v36 = vsel %vm5212_vm13, -inf, %v5186_v50 }
0x108e   : > { %v5215_v24 = vmax.f32 %v5213_v44, %v5214_v36 }
0x1090   : > { %5216 = vmax.xlane.f32.xlu0 %v5215_v24 }
0x111d   : > { %v9371_v60 = vpop.xlane.xlu0 %5216 }
0x111e   : > { %vm5219_vm14 = vcmp.eq.f32.partialorder %v5213_v44, %v9371_v60  ;;  %vm5220_vm15 = vcmp.eq.f32.partialorder %v5214_v36, %v9371_v60 }
0x111f   : > { %v5221_v56 = vsel %vm5219_vm14, %v9310_v29, 256  ;;  %v5222_v20 = vsel %vm5220_vm15, %v9313_v28, 256 }
0x1120   : > { %vm5223_vm0 = vcmp.lt.s32.totalorder %v5221_v56, %v5222_v20 }
0x1121   : > { %v5224_v13 = vsel %vm5223_vm0, %v5221_v56, %v5222_v20 }
0x1122   : > { %v5226_v35 = vshra.s32 %v5224_v13, 16  ;;  %v5225_v49 = vand.u32 65535, %v5224_v13 }
0x1124   : > { %v5228_v7 = vcvt.s32.f32 %v5226_v35  ;;  %v5227_v40 = vcvt.s32.f32 %v5225_v49 }
0x1126   : > { %5229 = vmin.xlane.f32.xlu1 %v5228_v7 }
0x11b3   : > { %v5230_v61 = vpop.xlane.xlu1 %5229 }
0x11b4   : > { %vm5231_vm1 = vcmp.eq.f32.partialorder %v5228_v7, %v5230_v61  ;;  %v5236_v19 = vcvt.f32.s32 %v5230_v61 }
0x11b5   : > { %v5232_v26 = vsel %vm5231_vm1, %v5227_v40, inf }
0x11b6   : > { %5233 = vmin.xlane.f32.xlu0 %v5232_v26  ;;  %v5237_v62 = vshll.u32 %v5236_v19, 16 }
0x1243   : > { %v5234_v21 = vpop.xlane.xlu0 %5233 }
0x1244   : > { %v5235_v9 = vcvt.f32.s32 %v5234_v21 }
0x1246   : > { %v5238_v6 = vadd.s32 %v5237_v62, %v5235_v9 }
0x1248   : > { %vm5239_vm2 = vcmp.eq.s32.totalorder %v9310_v29, %v5238_v6  ;;  %vm5240_vm3 = vcmp.eq.s32.totalorder %v9313_v28, %v5238_v6 }
0x1249   : > { %v5241_v41 = vsel %vm5239_vm2, -inf, %v5213_v44  ;;  %v5242_v22 = vsel %vm5240_vm3, -inf, %v5214_v36 }
0x124a   : > { %v5243_v27 = vmax.f32 %v5241_v41, %v5242_v22 }
0x124c   : > { %5244 = vmax.xlane.f32.xlu1 %v5243_v27 }
0x12d9   : > { %v9379_v57 = vpop.xlane.xlu1 %5244 }
0x12da   : > { %vm5247_vm4 = vcmp.eq.f32.partialorder %v5241_v41, %v9379_v57  ;;  %vm5248_vm5 = vcmp.eq.f32.partialorder %v5242_v22, %v9379_v57 }
0x12db   : > { %v5249_v46 = vsel %vm5247_vm4, %v9310_v29, 256  ;;  %v5250_v59 = vsel %vm5248_vm5, %v9313_v28, 256 }
0x12dc   : > { %vm5251_vm6 = vcmp.lt.s32.totalorder %v5249_v46, %v5250_v59 }
0x12dd   : > { %v5252_v10 = vsel %vm5251_vm6, %v5249_v46, %v5250_v59 }
0x12de   : > { %v5254_v37 = vshra.s32 %v5252_v10, 16  ;;  %v5253_v51 = vand.u32 65535, %v5252_v10 }
0x12e0   : > { %v5256_v31 = vcvt.s32.f32 %v5254_v37  ;;  %v5255_v63 = vcvt.s32.f32 %v5253_v51 }
0x12e2   : > { %5257 = vmin.xlane.f32.xlu0 %v5256_v31 }
0x136f   : > { %v5258_v12 = vpop.xlane.xlu0 %5257 }
0x1370   : > { %vm5259_vm7 = vcmp.eq.f32.partialorder %v5256_v31, %v5258_v12  ;;  %v5264_v4 = vcvt.f32.s32 %v5258_v12 }
0x1371   : > { %v5260_v32 = vsel %vm5259_vm7, %v5255_v63, inf }
0x1372   : > { %5261 = vmin.xlane.f32.xlu1 %v5260_v32  ;;  %v5265_v3 = vshll.u32 %v5264_v4, 16 }
0x13ff   : > { %v5262_v25 = vpop.xlane.xlu1 %5261 }
0x1400   : > { %v5263_v53 = vcvt.f32.s32 %v5262_v25 }
0x1402   : > { %v5266_v34 = vadd.s32 %v5265_v3, %v5263_v53 }
0x1404   : > { %vm5267_vm8 = vcmp.eq.s32.totalorder %v9310_v29, %v5266_v34  ;;  %vm5268_vm9 = vcmp.eq.s32.totalorder %v9313_v28, %v5266_v34 }
0x1405   : > { %v5269_v11 = vsel %vm5267_vm8, -inf, %v5241_v41  ;;  %v5270_v15 = vsel %vm5268_vm9, -inf, %v5242_v22 }
0x1406   : > { %v5271_v14 = vmax.f32 %v5269_v11, %v5270_v15 }
0x1408   : > { %5272 = vmax.xlane.f32.xlu0 %v5271_v14 }
0x1495   : > { %v9387_v50 = vpop.xlane.xlu0 %5272 }
0x1496   : > { %vm5275_vm10 = vcmp.eq.f32.partialorder %v5269_v11, %v9387_v50  ;;  %vm5276_vm11 = vcmp.eq.f32.partialorder %v5270_v15, %v9387_v50 }
0x1497   : > { %v5277_v43 = vsel %vm5275_vm10, %v9310_v29, 256  ;;  %v5278_v2 = vsel %vm5276_vm11, %v9313_v28, 256 }
0x1498   : > { %vm5279_vm12 = vcmp.lt.s32.totalorder %v5277_v43, %v5278_v2 }
0x1499   : > { %v5280_v30 = vsel %vm5279_vm12, %v5277_v43, %v5278_v2  ;;  %v5050_v2 = vadd.f32 %v9323_v16, %v9315_v47  ;;  %vm5360_vm12 = vcmask 7168  }
0x149a   : > { %v5282_v8 = vshra.s32 %v5280_v30, 16  ;;  %v5281_v45 = vand.u32 65535, %v5280_v30 }
0x149b   : > { %v5078_v30 = vadd.f32 %v9331_v5, %v5050_v2 }
0x149c   : > { %v5284_v52 = vcvt.s32.f32 %v5282_v8  ;;  %v5283_v0 = vcvt.s32.f32 %v5281_v45 }
0x149d   : > { %v5106_v8 = vadd.f32 %v9339_v54, %v5078_v30 }
0x149e   : > { %5285 = vmin.xlane.f32.xlu1 %v5284_v52 }
0x152b   : > { %v5286_v48 = vpop.xlane.xlu1 %5285 }
0x152c   : > { %vm5287_vm13 = vcmp.eq.f32.partialorder %v5284_v52, %v5286_v48  ;;  %v5292_v38 = vcvt.f32.s32 %v5286_v48  ;;  %v5134_v52 = vadd.f32 %v9347_v33, %v5106_v8 }
0x152d   : > { %v5288_v1 = vsel %vm5287_vm13, %v5283_v0, inf }
0x152e   : > { %5289 = vmin.xlane.f32.xlu0 %v5288_v1  ;;  %v5293_v17 = vshll.u32 %v5292_v38, 16  ;;  %v5162_v45 = vadd.f32 %v9355_v39, %v5134_v52 }
0x15bb   : > { %v5290_v42 = vpop.xlane.xlu0 %5289 }
0x15bc   : > { %v5291_v58 = vcvt.f32.s32 %v5290_v42 }
0x15be   : > { %v5294_v18 = vadd.s32 %v5293_v17, %v5291_v58 }
0x15c0   : > { %vm5295_vm14 = vcmp.eq.s32.totalorder %v9310_v29, %v5294_v18  ;;  %vm5296_vm15 = vcmp.eq.s32.totalorder %v9313_v28, %v5294_v18 }
0x15c1   : > { %v5297_v55 = vsel %vm5295_vm14, -inf, %v5269_v11  ;;  %v5298_v44 = vsel %vm5296_vm15, -inf, %v5270_v15 }
0x15c2   : > { %v5299_v36 = vmax.f32 %v5297_v55, %v5298_v44 }
0x15c4   : > { %5300 = vmax.xlane.f32.xlu1 %v5299_v36 }
0x1651   : > { %v9395_v24 = vpop.xlane.xlu1 %5300 }
0x1652   : > { %vm5303_vm0 = vcmp.eq.f32.partialorder %v5297_v55, %v9395_v24  ;;  %vm5304_vm1 = vcmp.eq.f32.partialorder %v5298_v44, %v9395_v24 }
0x1653   : > { %v5305_v56 = vsel %vm5303_vm0, %v9310_v29, 256  ;;  %v5306_v20 = vsel %vm5304_vm1, %v9313_v28, 256 }
0x1654   : > { %vm5307_vm2 = vcmp.lt.s32.totalorder %v5305_v56, %v5306_v20 }
0x1655   : > { %v5308_v13 = vsel %vm5307_vm2, %v5305_v56, %v5306_v20 }
0x1656   : > { %v5310_v35 = vshra.s32 %v5308_v13, 16  ;;  %v5309_v49 = vand.u32 65535, %v5308_v13 }
0x1658   : > { %v5312_v7 = vcvt.s32.f32 %v5310_v35  ;;  %v5311_v40 = vcvt.s32.f32 %v5309_v49 }
0x165a   : > { %5313 = vmin.xlane.f32.xlu0 %v5312_v7 }
0x16e7   : > { %v5314_v61 = vpop.xlane.xlu0 %5313 }
0x16e8   : > { %vm5315_vm3 = vcmp.eq.f32.partialorder %v5312_v7, %v5314_v61  ;;  %v5320_v19 = vcvt.f32.s32 %v5314_v61 }
0x16e9   : > { %v5316_v26 = vsel %vm5315_vm3, %v5311_v40, inf }
0x16ea   : > { %5317 = vmin.xlane.f32.xlu1 %v5316_v26  ;;  %v5321_v62 = vshll.u32 %v5320_v19, 16 }
0x1777   : > { %v5318_v21 = vpop.xlane.xlu1 %5317 }
0x1778   : > { %v5319_v9 = vcvt.f32.s32 %v5318_v21 }
0x177a   : > { %v5322_v6 = vadd.s32 %v5321_v62, %v5319_v9 }
0x177c   : > { %vm5323_vm4 = vcmp.eq.s32.totalorder %v9310_v29, %v5322_v6  ;;  %vm5324_vm5 = vcmp.eq.s32.totalorder %v9313_v28, %v5322_v6 }
0x177d   : > { %v5325_v41 = vsel %vm5323_vm4, -inf, %v5297_v55  ;;  %v5326_v22 = vsel %vm5324_vm5, -inf, %v5298_v44 }
0x177e   : > { %v5327_v27 = vmax.f32 %v5325_v41, %v5326_v22 }
0x1780   : > { %5328 = vmax.xlane.f32.xlu0 %v5327_v27 }
0x180d   : > { %v5329_v46 = vpop.xlane.xlu0 %5328 }
0x180e   : > { %vm5331_vm6 = vcmp.eq.f32.partialorder %v5325_v41, %v5329_v46  ;;  %vm5332_vm7 = vcmp.eq.f32.partialorder %v5326_v22, %v5329_v46 }
0x180f   : > { %v5333_v59 = vsel %vm5331_vm6, %v9310_v29, 256  ;;  %v5334_v10 = vsel %vm5332_vm7, %v9313_v28, 256 }
0x1810   : > { %vm5335_vm8 = vcmp.lt.s32.totalorder %v5333_v59, %v5334_v10 }
0x1811   : > { %v5336_v37 = vsel %vm5335_vm8, %v5333_v59, %v5334_v10 }
0x1812   : > { %v5338_v31 = vshra.s32 %v5336_v37, 16  ;;  %v5337_v12 = vand.u32 65535, %v5336_v37 }
0x1814   : > { %v5340_v51 = vcvt.s32.f32 %v5338_v31  ;;  %v5339_v32 = vcvt.s32.f32 %v5337_v12 }
0x1816   : > { %5341 = vmin.xlane.f32.xlu1 %v5340_v51 }
0x18a3   : > { %v5342_v63 = vpop.xlane.xlu1 %5341 }
0x18a4   : > { %vm5343_vm9 = vcmp.eq.f32.partialorder %v5340_v51, %v5342_v63  ;;  %v5348_v25 = vcvt.f32.s32 %v5342_v63 }
0x18a5   : > { %v5344_v4 = vsel %vm5343_vm9, %v5339_v32, inf }
0x18a6   : > { %5345 = vmin.xlane.f32.xlu0 %v5344_v4  ;;  %v5349_v53 = vshll.u32 %v5348_v25, 16 }
0x1933   : > { %v5346_v3 = vpop.xlane.xlu0 %5345 }
0x1934   : > { %v5347_v34 = vcvt.f32.s32 %v5346_v3 }
0x1936   : > { %v5350_v11 = vadd.s32 %v5349_v53, %v5347_v34 }
0x1938   : > { %vm5351_vm10 = vcmp.eq.s32.totalorder %v9310_v29, %v5350_v11  ;;  %vm5352_vm11 = vcmp.eq.s32.totalorder %v9313_v28, %v5350_v11  ;;  %v5190_v29 = vadd.f32 %v9363_v23, %v5162_v45 }
0x1939   : > { %v5353_v15 = vsel %vm5351_vm10, -inf, %v5325_v41  ;;  %v5354_v14 = vsel %vm5352_vm11, -inf, %v5326_v22 }
0x193a   : > { %v5355_v43 = vmax.f32 %v5353_v15, %v5354_v14  ;;  %v5218_v48 = vadd.f32 %v9371_v60, %v5190_v29 }
0x193c   : > { %5356 = vmax.xlane.f32.xlu1 %v5355_v43  ;;  %v5246_v28 = vadd.f32 %v9379_v57, %v5218_v48 }
0x193e   : > { %v5274_v0 = vadd.f32 %v9387_v50, %v5246_v28 }
0x1940   : > { %v5302_v1 = vadd.f32 %v9395_v24, %v5274_v0 }
0x1942   : > { %v5330_v47 = vadd.f32 %v5329_v46, %v5302_v1 }
0x19c9   : > { %v5357_v16 = vpop.xlane.xlu1 %5356 }
0x19ca   : > { %v5358_v5 = vadd.f32 %v5357_v16, %v5330_v47 }
0x19cc   : > { %v5359_v54 = vmul.f32 0.07692308, %v5358_v5 }
0x19ce   : > { %5361 = vst.msk [vmem:[%s363_s24] sm:$0xff] %vm5360_vm12, %v5359_v54 }
0x19cf PF: > { %s20_s30 = sadd.s32 1, %s7138_s30  }
0x19d0   : > { %p17_p4 = scmp.ge.s32.totalorder %s20_s30, 4  }
0x19d2   :  { %19 = sbr.rel (!%p17_p4) target bundleno = 1 (0x1), region = 105 }

</bundles_post_ra>
